<compile_context>
chip_gen: v7x
topology: tpu7x:2x2x1
jax: 0.10.0
libtpu: 0.0.40
codegen_flags: <defaults>
</compile_context>

<pallas_src>
import math

import numpy as np
import jax
import jax.numpy as jnp
from jax import lax
from jax.experimental import pallas as pl
from jax.experimental.pallas import tpu as pltpu


# ----------------------------------------------------------------------------
# Constant-matrix construction (runs once, outside the kernel, in numpy).
# ----------------------------------------------------------------------------
def _build_constants(conv_params, fc_params, img_shape, in_channels, num_classes,
                     mxu_dtype):
    """Returns (geoms, consts): per-layer geometry tuples and the flat list of
    constant device arrays in the exact order the kernel consumes them."""
    geoms = []
    consts = []
    H = W = img_shape
    Cin = in_channels

    for (w, b) in conv_params:
        w_np = np.asarray(w, dtype=np.float32)               # (K, K, Cin, Cout) HWIO
        b_np = np.asarray(b, dtype=np.float32).reshape(-1)   # (Cout,)
        K = w_np.shape[0]
        Cout = w_np.shape[3]
        assert K == 3, "fused kernel supports kernel_size=3 (padding=1) only"
        Hc, Wc = H, W                                        # K=3, padding=1 -> same
        assert Hc % 2 == 0, "fused kernel needs even height at every pool (img%32==0)"
        Hp, Wp = Hc // 2, Wc // 2                            # MaxPool2d(2), floor

        # Merged banded tap matrix (K*W*Cin, Wc*Cout):
        #   y[r, wc*Cout+co] = sum_{di,dj,ci} a_shift_di[r, (wc+dj-1)*Cin+ci] * w[di,dj,ci,co]
        # OOB columns (wc+dj-1 outside [0,W)) are simply absent -> padding=1 along W.
        M = np.zeros((K * W * Cin, Wc * Cout), np.float32)
        for di in range(K):
            for dj in range(K):
                for wc in range(Wc):
                    col_w = wc + dj - 1
                    if 0 <= col_w < W:
                        M[di * W * Cin + col_w * Cin: di * W * Cin + (col_w + 1) * Cin,
                          wc * Cout:(wc + 1) * Cout] = w_np[di, dj]

        # Bias tiled across output pixels: (1, Wc*Cout), index w*Cout + c -> b[c].
        brow = np.tile(b_np[None, :], (1, Wc)).astype(np.float32)

        # Column-pool selectors: (2, Wc*Cout, Wp*Cout), pick even / odd pixel blocks.
        SelC = np.zeros((2, Wc * Cout, Wp * Cout), np.float32)
        for wp in range(Wp):
            for c in range(Cout):
                SelC[0, (2 * wp) * Cout + c, wp * Cout + c] = 1.0
                SelC[1, (2 * wp + 1) * Cout + c, wp * Cout + c] = 1.0

        geoms.append((H, W, Cin, Cout))
        consts.extend([jnp.asarray(M, mxu_dtype),            # MXU operand
                       jnp.asarray(brow),                    # f32 (VPU)
                       jnp.asarray(SelC, mxu_dtype)])        # 0/1 -> exact in bf16
        H, W, Cin = Hp, Wp, Cout

    # Final Linear: permute weight rows from PyTorch NCHW-flatten order into the
    # kernel's row-major (h, w*C + c) layout, flattened to 2-D (feat, num_classes).
    wl, bl = fc_params
    wl_np = np.asarray(wl, np.float32)                        # (feat, num_classes)
    Hf, Wf, Cf = H, W, Cin
    wl2 = np.zeros((Hf * Wf * Cf, num_classes), np.float32)
    for h in range(Hf):
        for w_ in range(Wf):
            for c in range(Cf):
                wl2[h * (Wf * Cf) + w_ * Cf + c, :] = wl_np[c * Hf * Wf + h * Wf + w_, :]
    consts.append(jnp.asarray(wl2, mxu_dtype))
    consts.append(jnp.asarray(np.asarray(bl, np.float32).reshape(1, num_classes)))
    return geoms, consts


# ----------------------------------------------------------------------------
# Fused kernel: per grid step = B images, all 5 conv blocks + final Linear.
# Activations live as (B*H, W*C) f32 in VMEM/vregs; no HBM between layers.
# ----------------------------------------------------------------------------
def _make_kernel(geoms, num_classes, mxu_dtype):
    H0 = geoms[0][0]

    def kernel(*refs):
        x_ref = refs[0]
        o_ref = refs[-1]
        crefs = refs[1:-1]

        a = x_ref[...]                                   # (B*H0, W0*C0) f32
        B = a.shape[0] // H0

        idx = 0
        for (H, W, Cin, Cout) in geoms:
            M_ref, b_ref, C_ref = crefs[idx:idx + 3]
            idx += 3
            BH = B * H
            L = W * Cin

            # Row shifts for padding=1 along H, zero-masked at per-image boundaries.
            row = lax.broadcasted_iota(jnp.int32, (BH, 1), 0) % H
            zrow = jnp.zeros((1, L), jnp.float32)
            down = jnp.concatenate([zrow, a[:BH - 1, :]], axis=0)   # row r -> a[r-1]
            up = jnp.concatenate([a[1:, :], zrow], axis=0)          # row r -> a[r+1]
            down = jnp.where(row == 0, 0.0, down)
            up = jnp.where(row == H - 1, 0.0, up)

            # Single merged conv matmul: contraction dim = 3*W*Cin.
            a_stack = jnp.concatenate([down, a, up], axis=1).astype(mxu_dtype)
            y = jnp.dot(a_stack, M_ref[...], preferred_element_type=jnp.float32)
            y = jnp.maximum(y + b_ref[...], 0.0)                    # bias + ReLU (f32)

            # 2x2 max-pool: rows via pair-reshape + max (no MXU), cols via 0/1
            # selection matmuls (exact) + max.
            r = jnp.max(y.reshape(BH // 2, 2, W * Cout), axis=1)    # (B*H/2, W*Cout)
            rc = r.astype(mxu_dtype)
            a = jnp.maximum(
                jnp.dot(rc, C_ref[0], preferred_element_type=jnp.float32),
                jnp.dot(rc, C_ref[1], preferred_element_type=jnp.float32))
            # a: (B*(H//2), (W//2)*Cout) f32

        # Final Linear for the whole batch tile: one (B, feat) @ (feat, 10) matmul.
        wl_ref, bl_ref = crefs[idx], crefs[idx + 1]
        feat = wl_ref.shape[0]
        af = a.reshape(B, feat).astype(mxu_dtype)
        logits = jnp.dot(af, wl_ref[...], preferred_element_type=jnp.float32) + bl_ref[...]
        o_ref[0] = logits.astype(o_ref.dtype)            # single (B, num_classes) store

    return kernel


def make_fused_forward(conv_params, fc_params, img_shape, in_channels,
                       num_classes=10, batch_block=128, mxu_dtype=jnp.bfloat16):
    geoms, consts = _build_constants(conv_params, fc_params, img_shape, in_channels,
                                     num_classes, mxu_dtype)
    kernel = _make_kernel(geoms, num_classes, mxu_dtype)
    H0 = W0 = img_shape
    C0 = in_channels

    def forward(x_nchw):
        N = x_nchw.shape[0]
        B = max(1, min(batch_block, N))
        G = -(-N // B)
        Npad = G * B

        # NCHW -> lane-dense (N, H, W*C) layout (done in XLA, once), then row-stack
        # the batch so each grid step sees a (B*H0, W0*C0) tile.
        x2d = jnp.transpose(x_nchw, (0, 2, 3, 1)).reshape(N, H0, W0 * C0)
        x2d = x2d.astype(jnp.float32)
        if Npad != N:
            pad = jnp.zeros((Npad - N, H0, W0 * C0), jnp.float32)
            x2d = jnp.concatenate([x2d, pad], axis=0)
        x2d = x2d.reshape(Npad * H0, W0 * C0)

        in_specs = [pl.BlockSpec((B * H0, W0 * C0), lambda n: (n, 0))]
        in_specs += [pl.BlockSpec(c.shape, lambda n, nd=c.ndim: (0,) * nd)
                     for c in consts]

        out = pl.pallas_call(
            kernel,
            out_shape=jax.ShapeDtypeStruct((G, B, num_classes), jnp.float32),
            grid=(G,),
            in_specs=in_specs,
            out_specs=pl.BlockSpec((1, B, num_classes), lambda n: (n, 0, 0)),
            compiler_params=pltpu.CompilerParams(
                dimension_semantics=("parallel",),
                vmem_limit_bytes=48 * 1024 * 1024),
        )(x2d, *consts)
        return out.reshape(Npad, num_classes)[:N]

    return forward


# ----------------------------------------------------------------------------
# Parameter init (deterministic, PyTorch-style uniform fan-in bounds).
# ----------------------------------------------------------------------------
def init_params(key, num_filters, filter_size, img_shape, num_classes=10):
    if len(filter_size) == 1:
        filter_size = 5 * [filter_size[0]]
    conv_params = []
    dim = img_shape
    for i in range(5):
        k = filter_size[i]
        cin, cout = num_filters[i], num_filters[i + 1]
        key, k1, k2 = jax.random.split(key, 3)
        bound = 1.0 / math.sqrt(cin * k * k)
        w = jax.random.uniform(k1, (k, k, cin, cout), jnp.float32, -bound, bound)
        b = jax.random.uniform(k2, (1, cout), jnp.float32, -bound, bound)
        conv_params.append((w, b))
        dim = dim + 2 - (k - 1)
        dim = (dim - 1 - 1) // 2 + 1
    feat = dim * dim * num_filters[-1]
    key, k1, k2 = jax.random.split(key, 3)
    bound = 1.0 / math.sqrt(feat)
    wl = jax.random.uniform(k1, (feat, num_classes), jnp.float32, -bound, bound)
    bl = jax.random.uniform(k2, (1, num_classes), jnp.float32, -bound, bound)
    return conv_params, (wl, bl)


# ----------------------------------------------------------------------------
# Pure-JAX reference for verification (flatten in PyTorch NCHW order).
# ----------------------------------------------------------------------------
def reference_forward(x_nchw, conv_params, fc_params):
    x = jnp.transpose(x_nchw, (0, 2, 3, 1))
    for w, b in conv_params:
        y = lax.conv_general_dilated(
            x, w, window_strides=(1, 1), padding=((1, 1), (1, 1)),
            dimension_numbers=("NHWC", "HWIO", "NHWC"))
        y = jnp.maximum(y + b.reshape(1, 1, 1, -1), 0.0)
        x = lax.reduce_window(y, -jnp.inf, lax.max,
                              (1, 2, 2, 1), (1, 2, 2, 1), "VALID")
    x = jnp.transpose(x, (0, 3, 1, 2)).reshape(x.shape[0], -1)
    wl, bl = fc_params
    return x @ wl + bl


if __name__ == "__main__":
    # 5 conv blocks, kernel 3, padding 1, pool 2, ReLU; img_shape=32 so spatial dims
    # stay well-defined: 32 -> 16 -> 8 -> 4 -> 2 -> 1.
    num_filters = [3, 4, 4, 4, 4, 4]
    filter_size = [3]
    img_shape = 32
    num_classes = 10
    N = 6                      # batch_block=4 -> grid of 2 tiles + padded last tile

    key = jax.random.PRNGKey(0)
    key, xkey = jax.random.split(key)
    x = jax.random.normal(xkey, (N, num_filters[0], img_shape, img_shape), jnp.float32)

    conv_params, fc_params = init_params(key, num_filters, filter_size,
                                         img_shape, num_classes)
    ref = jax.block_until_ready(reference_forward(x, conv_params, fc_params))

    # Exact-math configuration (f32 MXU inputs) — tight tolerance.
    fwd_f32 = make_fused_forward(conv_params, fc_params, img_shape, num_filters[0],
                                 num_classes, batch_block=4, mxu_dtype=jnp.float32)
    out_f32 = jax.block_until_ready(fwd_f32(x))
    assert out_f32.shape == (N, num_classes), out_f32.shape
    assert jnp.allclose(out_f32, ref, rtol=1e-4, atol=1e-4), (
        "f32 mismatch", float(jnp.max(jnp.abs(out_f32 - ref))))

    # Performance configuration: bf16 at the MXU, f32 accumulation/elementwise.
    fwd_bf16 = make_fused_forward(conv_params, fc_params, img_shape, num_filters[0],
                                  num_classes, batch_block=4, mxu_dtype=jnp.bfloat16)
    out_bf16 = jax.block_until_ready(fwd_bf16(x))
    assert out_bf16.shape == (N, num_classes), out_bf16.shape
    assert jnp.allclose(out_bf16, ref, rtol=3e-2, atol=3e-2), (
        "bf16 mismatch", float(jnp.max(jnp.abs(out_bf16 - ref))))

    print("KERNEL_OK")
</pallas_src>

<mosaic_0001>
module attributes {stable_mosaic.version = 11 : i64} {
  func.func @kernel(%arg0: i32, %arg1: memref<128x96xf32, #tpu.memory_space<vmem>>, %arg2: memref<288x128xf32, #tpu.memory_space<vmem>>, %arg3: memref<1x128xf32, #tpu.memory_space<vmem>>, %arg4: memref<2x128x64xf32, #tpu.memory_space<vmem>>, %arg5: memref<192x64xf32, #tpu.memory_space<vmem>>, %arg6: memref<1x64xf32, #tpu.memory_space<vmem>>, %arg7: memref<2x64x32xf32, #tpu.memory_space<vmem>>, %arg8: memref<96x32xf32, #tpu.memory_space<vmem>>, %arg9: memref<1x32xf32, #tpu.memory_space<vmem>>, %arg10: memref<2x32x16xf32, #tpu.memory_space<vmem>>, %arg11: memref<48x16xf32, #tpu.memory_space<vmem>>, %arg12: memref<1x16xf32, #tpu.memory_space<vmem>>, %arg13: memref<2x16x8xf32, #tpu.memory_space<vmem>>, %arg14: memref<24x8xf32, #tpu.memory_space<vmem>>, %arg15: memref<1x8xf32, #tpu.memory_space<vmem>>, %arg16: memref<2x8x4xf32, #tpu.memory_space<vmem>>, %arg17: memref<4x10xf32, #tpu.memory_space<vmem>>, %arg18: memref<1x10xf32, #tpu.memory_space<vmem>>, %arg19: memref<1x4x10xf32, #tpu.memory_space<vmem>>) attributes {dimension_semantics = [#tpu.dimension_semantics<parallel>], iteration_bounds = array<i64: 2>, scalar_prefetch = 0 : i64, scratch_operands = 0 : i64, tpu.core_type = #tpu.core_type<tc>, window_params = [{transform_indices = @transform_0, window_bounds = array<i64: 128, 96>}, {pipeline_mode = #tpu.pipeline_mode<synchronous>, transform_indices = @transform_1, window_bounds = array<i64: 288, 128>}, {pipeline_mode = #tpu.pipeline_mode<synchronous>, transform_indices = @transform_2, window_bounds = array<i64: 1, 128>}, {pipeline_mode = #tpu.pipeline_mode<synchronous>, transform_indices = @transform_3, window_bounds = array<i64: 2, 128, 64>}, {pipeline_mode = #tpu.pipeline_mode<synchronous>, transform_indices = @transform_4, window_bounds = array<i64: 192, 64>}, {pipeline_mode = #tpu.pipeline_mode<synchronous>, transform_indices = @transform_5, window_bounds = array<i64: 1, 64>}, {pipeline_mode = #tpu.pipeline_mode<synchronous>, transform_indices = @transform_6, window_bounds = array<i64: 2, 64, 32>}, {pipeline_mode = #tpu.pipeline_mode<synchronous>, transform_indices = @transform_7, window_bounds = array<i64: 96, 32>}, {pipeline_mode = #tpu.pipeline_mode<synchronous>, transform_indices = @transform_8, window_bounds = array<i64: 1, 32>}, {pipeline_mode = #tpu.pipeline_mode<synchronous>, transform_indices = @transform_9, window_bounds = array<i64: 2, 32, 16>}, {pipeline_mode = #tpu.pipeline_mode<synchronous>, transform_indices = @transform_10, window_bounds = array<i64: 48, 16>}, {pipeline_mode = #tpu.pipeline_mode<synchronous>, transform_indices = @transform_11, window_bounds = array<i64: 1, 16>}, {pipeline_mode = #tpu.pipeline_mode<synchronous>, transform_indices = @transform_12, window_bounds = array<i64: 2, 16, 8>}, {pipeline_mode = #tpu.pipeline_mode<synchronous>, transform_indices = @transform_13, window_bounds = array<i64: 24, 8>}, {pipeline_mode = #tpu.pipeline_mode<synchronous>, transform_indices = @transform_14, window_bounds = array<i64: 1, 8>}, {pipeline_mode = #tpu.pipeline_mode<synchronous>, transform_indices = @transform_15, window_bounds = array<i64: 2, 8, 4>}, {pipeline_mode = #tpu.pipeline_mode<synchronous>, transform_indices = @transform_16, window_bounds = array<i64: 4, 10>}, {pipeline_mode = #tpu.pipeline_mode<synchronous>, transform_indices = @transform_17, window_bounds = array<i64: 1, 10>}, {transform_indices = @transform_18, window_bounds = array<i64: 1, 4, 10>}]} {
    %c0 = arith.constant 0 : index
    %c0_0 = arith.constant 0 : index
    %0 = vector.load %arg1[%c0, %c0_0] : memref<128x96xf32, #tpu.memory_space<vmem>>, vector<128x96xf32>
    %1 = tpu.iota {dimensions = array<i32: 0>} : vector<128x1xi32>
    %c32_i32 = arith.constant 32 : i32
    %c0_i32 = arith.constant 0 : i32
    %2 = arith.cmpi eq, %c32_i32, %c0_i32 : i32
    %c1_i32 = arith.constant 1 : i32
    %3 = arith.select %2, %c1_i32, %c32_i32 : i32
    %4 = vector.broadcast %3 : i32 to vector<128x1xi32>
    %5 = arith.remsi %1, %4 : vector<128x1xi32>
    %c0_i32_1 = arith.constant 0 : i32
    %6 = vector.broadcast %c0_i32_1 : i32 to vector<128x1xi32>
    %7 = arith.cmpi ne, %5, %6 : vector<128x1xi32>
    %c0_i32_2 = arith.constant 0 : i32
    %8 = vector.broadcast %c0_i32_2 : i32 to vector<128x1xi32>
    %9 = arith.cmpi slt, %5, %8 : vector<128x1xi32>
    %c0_i32_3 = arith.constant 0 : i32
    %10 = arith.cmpi slt, %3, %c0_i32_3 : i32
    %11 = vector.broadcast %10 : i1 to vector<128x1xi1>
    %12 = vector.broadcast %11 : vector<128x1xi1> to vector<128x1xi1>
    %13 = arith.xori %9, %12 : vector<128x1xi1>
    %14 = arith.andi %13, %7 : vector<128x1xi1>
    %15 = vector.broadcast %3 : i32 to vector<128x1xi32>
    %16 = arith.addi %5, %15 : vector<128x1xi32>
    %17 = arith.select %14, %16, %5 : vector<128x1xi1>, vector<128x1xi32>
    %cst = arith.constant 0.000000e+00 : f32
    %18 = vector.broadcast %cst : f32 to vector<1x96xf32>
    %19 = vector.extract_strided_slice %0 {offsets = [0, 0], sizes = [127, 96], strides = [1, 1]} : vector<128x96xf32> to vector<127x96xf32>
    %20 = tpu.concatenate %18, %19 in 0 : vector<1x96xf32>, vector<127x96xf32> -> vector<128x96xf32>
    %21 = vector.extract_strided_slice %0 {offsets = [1, 0], sizes = [127, 96], strides = [1, 1]} : vector<128x96xf32> to vector<127x96xf32>
    %22 = tpu.concatenate %21, %18 in 0 : vector<127x96xf32>, vector<1x96xf32> -> vector<128x96xf32>
    %c0_i32_4 = arith.constant 0 : i32
    %23 = vector.broadcast %c0_i32_4 : i32 to vector<128x1xi32>
    %24 = arith.cmpi eq, %17, %23 : vector<128x1xi32>
    %cst_5 = arith.constant 0.000000e+00 : f32
    %25 = vector.shape_cast %24 : vector<128x1xi1> to vector<128x1xi1>
    %26 = vector.broadcast %25 : vector<128x1xi1> to vector<128x96xi1>
    %27 = vector.broadcast %cst_5 : f32 to vector<128x96xf32>
    %28 = arith.select %26, %27, %20 : vector<128x96xi1>, vector<128x96xf32>
    %c31_i32 = arith.constant 31 : i32
    %29 = vector.broadcast %c31_i32 : i32 to vector<128x1xi32>
    %30 = arith.cmpi eq, %17, %29 : vector<128x1xi32>
    %cst_6 = arith.constant 0.000000e+00 : f32
    %31 = vector.shape_cast %30 : vector<128x1xi1> to vector<128x1xi1>
    %32 = vector.broadcast %31 : vector<128x1xi1> to vector<128x96xi1>
    %33 = vector.broadcast %cst_6 : f32 to vector<128x96xf32>
    %34 = arith.select %32, %33, %22 : vector<128x96xi1>, vector<128x96xf32>
    %35 = tpu.concatenate %28, %0, %34 in 1 : vector<128x96xf32>, vector<128x96xf32>, vector<128x96xf32> -> vector<128x288xf32>
    %c0_7 = arith.constant 0 : index
    %c0_8 = arith.constant 0 : index
    %36 = vector.load %arg2[%c0_7, %c0_8] : memref<288x128xf32, #tpu.memory_space<vmem>>, vector<288x128xf32>
    %cst_9 = arith.constant dense<0.000000e+00> : vector<128x128xf32>
    %37 = tpu.matmul %35, %36, %cst_9 {dimension_numbers = #tpu.dot_dimension_numbers<[1], [0], [0], [1], [0, 0, 1, 1], [], []>} : vector<128x288xf32>, vector<288x128xf32>, vector<128x128xf32> -> vector<128x128xf32>
    %c0_10 = arith.constant 0 : index
    %c0_11 = arith.constant 0 : index
    %38 = vector.load %arg3[%c0_10, %c0_11] : memref<1x128xf32, #tpu.memory_space<vmem>>, vector<1x128xf32>
    %39 = vector.broadcast %38 : vector<1x128xf32> to vector<128x128xf32>
    %40 = arith.addf %37, %39 : vector<128x128xf32>
    %cst_12 = arith.constant 0.000000e+00 : f32
    %41 = vector.broadcast %cst_12 : f32 to vector<128x128xf32>
    %42 = arith.maximumf %40, %41 : vector<128x128xf32>
    %43 = vector.shape_cast %42 : vector<128x128xf32> to vector<64x2x128xf32>
    %cst_13 = arith.constant dense<0xFF800000> : vector<64x128xf32>
    %44 = vector.multi_reduction <maximumf>, %43, %cst_13 [1] : vector<64x2x128xf32> to vector<64x128xf32>
    %c0_14 = arith.constant 0 : index
    %c0_15 = arith.constant 0 : index
    %c0_16 = arith.constant 0 : index
    %45 = vector.load %arg4[%c0_14, %c0_15, %c0_16] : memref<2x128x64xf32, #tpu.memory_space<vmem>>, vector<1x128x64xf32>
    %46 = vector.shape_cast %45 : vector<1x128x64xf32> to vector<128x64xf32>
    %cst_17 = arith.constant dense<0.000000e+00> : vector<64x64xf32>
    %47 = tpu.matmul %44, %46, %cst_17 {dimension_numbers = #tpu.dot_dimension_numbers<[1], [0], [0], [1], [0, 0, 1, 1], [], []>} : vector<64x128xf32>, vector<128x64xf32>, vector<64x64xf32> -> vector<64x64xf32>
    %c1 = arith.constant 1 : index
    %c0_18 = arith.constant 0 : index
    %c0_19 = arith.constant 0 : index
    %48 = vector.load %arg4[%c1, %c0_18, %c0_19] : memref<2x128x64xf32, #tpu.memory_space<vmem>>, vector<1x128x64xf32>
    %49 = vector.shape_cast %48 : vector<1x128x64xf32> to vector<128x64xf32>
    %cst_20 = arith.constant dense<0.000000e+00> : vector<64x64xf32>
    %50 = tpu.matmul %44, %49, %cst_20 {dimension_numbers = #tpu.dot_dimension_numbers<[1], [0], [0], [1], [0, 0, 1, 1], [], []>} : vector<64x128xf32>, vector<128x64xf32>, vector<64x64xf32> -> vector<64x64xf32>
    %51 = arith.maximumf %47, %50 : vector<64x64xf32>
    %52 = tpu.iota {dimensions = array<i32: 0>} : vector<64x1xi32>
    %c16_i32 = arith.constant 16 : i32
    %c0_i32_21 = arith.constant 0 : i32
    %53 = arith.cmpi eq, %c16_i32, %c0_i32_21 : i32
    %c1_i32_22 = arith.constant 1 : i32
    %54 = arith.select %53, %c1_i32_22, %c16_i32 : i32
    %55 = vector.broadcast %54 : i32 to vector<64x1xi32>
    %56 = arith.remsi %52, %55 : vector<64x1xi32>
    %c0_i32_23 = arith.constant 0 : i32
    %57 = vector.broadcast %c0_i32_23 : i32 to vector<64x1xi32>
    %58 = arith.cmpi ne, %56, %57 : vector<64x1xi32>
    %c0_i32_24 = arith.constant 0 : i32
    %59 = vector.broadcast %c0_i32_24 : i32 to vector<64x1xi32>
    %60 = arith.cmpi slt, %56, %59 : vector<64x1xi32>
    %c0_i32_25 = arith.constant 0 : i32
    %61 = arith.cmpi slt, %54, %c0_i32_25 : i32
    %62 = vector.broadcast %61 : i1 to vector<64x1xi1>
    %63 = vector.broadcast %62 : vector<64x1xi1> to vector<64x1xi1>
    %64 = arith.xori %60, %63 : vector<64x1xi1>
    %65 = arith.andi %64, %58 : vector<64x1xi1>
    %66 = vector.broadcast %54 : i32 to vector<64x1xi32>
    %67 = arith.addi %56, %66 : vector<64x1xi32>
    %68 = arith.select %65, %67, %56 : vector<64x1xi1>, vector<64x1xi32>
    %cst_26 = arith.constant 0.000000e+00 : f32
    %69 = vector.broadcast %cst_26 : f32 to vector<1x64xf32>
    %70 = vector.extract_strided_slice %51 {offsets = [0, 0], sizes = [63, 64], strides = [1, 1]} : vector<64x64xf32> to vector<63x64xf32>
    %71 = tpu.concatenate %69, %70 in 0 : vector<1x64xf32>, vector<63x64xf32> -> vector<64x64xf32>
    %72 = vector.extract_strided_slice %51 {offsets = [1, 0], sizes = [63, 64], strides = [1, 1]} : vector<64x64xf32> to vector<63x64xf32>
    %73 = tpu.concatenate %72, %69 in 0 : vector<63x64xf32>, vector<1x64xf32> -> vector<64x64xf32>
    %c0_i32_27 = arith.constant 0 : i32
    %74 = vector.broadcast %c0_i32_27 : i32 to vector<64x1xi32>
    %75 = arith.cmpi eq, %68, %74 : vector<64x1xi32>
    %cst_28 = arith.constant 0.000000e+00 : f32
    %76 = vector.shape_cast %75 : vector<64x1xi1> to vector<64x1xi1>
    %77 = vector.broadcast %76 : vector<64x1xi1> to vector<64x64xi1>
    %78 = vector.broadcast %cst_28 : f32 to vector<64x64xf32>
    %79 = arith.select %77, %78, %71 : vector<64x64xi1>, vector<64x64xf32>
    %c15_i32 = arith.constant 15 : i32
    %80 = vector.broadcast %c15_i32 : i32 to vector<64x1xi32>
    %81 = arith.cmpi eq, %68, %80 : vector<64x1xi32>
    %cst_29 = arith.constant 0.000000e+00 : f32
    %82 = vector.shape_cast %81 : vector<64x1xi1> to vector<64x1xi1>
    %83 = vector.broadcast %82 : vector<64x1xi1> to vector<64x64xi1>
    %84 = vector.broadcast %cst_29 : f32 to vector<64x64xf32>
    %85 = arith.select %83, %84, %73 : vector<64x64xi1>, vector<64x64xf32>
    %86 = tpu.concatenate %79, %51, %85 in 1 : vector<64x64xf32>, vector<64x64xf32>, vector<64x64xf32> -> vector<64x192xf32>
    %c0_30 = arith.constant 0 : index
    %c0_31 = arith.constant 0 : index
    %87 = vector.load %arg5[%c0_30, %c0_31] : memref<192x64xf32, #tpu.memory_space<vmem>>, vector<192x64xf32>
    %cst_32 = arith.constant dense<0.000000e+00> : vector<64x64xf32>
    %88 = tpu.matmul %86, %87, %cst_32 {dimension_numbers = #tpu.dot_dimension_numbers<[1], [0], [0], [1], [0, 0, 1, 1], [], []>} : vector<64x192xf32>, vector<192x64xf32>, vector<64x64xf32> -> vector<64x64xf32>
    %c0_33 = arith.constant 0 : index
    %c0_34 = arith.constant 0 : index
    %89 = vector.load %arg6[%c0_33, %c0_34] : memref<1x64xf32, #tpu.memory_space<vmem>>, vector<1x64xf32>
    %90 = vector.broadcast %89 : vector<1x64xf32> to vector<64x64xf32>
    %91 = arith.addf %88, %90 : vector<64x64xf32>
    %cst_35 = arith.constant 0.000000e+00 : f32
    %92 = vector.broadcast %cst_35 : f32 to vector<64x64xf32>
    %93 = arith.maximumf %91, %92 : vector<64x64xf32>
    %94 = vector.shape_cast %93 : vector<64x64xf32> to vector<32x2x64xf32>
    %cst_36 = arith.constant dense<0xFF800000> : vector<32x64xf32>
    %95 = vector.multi_reduction <maximumf>, %94, %cst_36 [1] : vector<32x2x64xf32> to vector<32x64xf32>
    %c0_37 = arith.constant 0 : index
    %c0_38 = arith.constant 0 : index
    %c0_39 = arith.constant 0 : index
    %96 = vector.load %arg7[%c0_37, %c0_38, %c0_39] : memref<2x64x32xf32, #tpu.memory_space<vmem>>, vector<1x64x32xf32>
    %97 = vector.shape_cast %96 : vector<1x64x32xf32> to vector<64x32xf32>
    %cst_40 = arith.constant dense<0.000000e+00> : vector<32x32xf32>
    %98 = tpu.matmul %95, %97, %cst_40 {dimension_numbers = #tpu.dot_dimension_numbers<[1], [0], [0], [1], [0, 0, 1, 1], [], []>} : vector<32x64xf32>, vector<64x32xf32>, vector<32x32xf32> -> vector<32x32xf32>
    %c1_41 = arith.constant 1 : index
    %c0_42 = arith.constant 0 : index
    %c0_43 = arith.constant 0 : index
    %99 = vector.load %arg7[%c1_41, %c0_42, %c0_43] : memref<2x64x32xf32, #tpu.memory_space<vmem>>, vector<1x64x32xf32>
    %100 = vector.shape_cast %99 : vector<1x64x32xf32> to vector<64x32xf32>
    %cst_44 = arith.constant dense<0.000000e+00> : vector<32x32xf32>
    %101 = tpu.matmul %95, %100, %cst_44 {dimension_numbers = #tpu.dot_dimension_numbers<[1], [0], [0], [1], [0, 0, 1, 1], [], []>} : vector<32x64xf32>, vector<64x32xf32>, vector<32x32xf32> -> vector<32x32xf32>
    %102 = arith.maximumf %98, %101 : vector<32x32xf32>
    %103 = tpu.iota {dimensions = array<i32: 0>} : vector<32x1xi32>
    %c8_i32 = arith.constant 8 : i32
    %c0_i32_45 = arith.constant 0 : i32
    %104 = arith.cmpi eq, %c8_i32, %c0_i32_45 : i32
    %c1_i32_46 = arith.constant 1 : i32
    %105 = arith.select %104, %c1_i32_46, %c8_i32 : i32
    %106 = vector.broadcast %105 : i32 to vector<32x1xi32>
    %107 = arith.remsi %103, %106 : vector<32x1xi32>
    %c0_i32_47 = arith.constant 0 : i32
    %108 = vector.broadcast %c0_i32_47 : i32 to vector<32x1xi32>
    %109 = arith.cmpi ne, %107, %108 : vector<32x1xi32>
    %c0_i32_48 = arith.constant 0 : i32
    %110 = vector.broadcast %c0_i32_48 : i32 to vector<32x1xi32>
    %111 = arith.cmpi slt, %107, %110 : vector<32x1xi32>
    %c0_i32_49 = arith.constant 0 : i32
    %112 = arith.cmpi slt, %105, %c0_i32_49 : i32
    %113 = vector.broadcast %112 : i1 to vector<32x1xi1>
    %114 = vector.broadcast %113 : vector<32x1xi1> to vector<32x1xi1>
    %115 = arith.xori %111, %114 : vector<32x1xi1>
    %116 = arith.andi %115, %109 : vector<32x1xi1>
    %117 = vector.broadcast %105 : i32 to vector<32x1xi32>
    %118 = arith.addi %107, %117 : vector<32x1xi32>
    %119 = arith.select %116, %118, %107 : vector<32x1xi1>, vector<32x1xi32>
    %cst_50 = arith.constant 0.000000e+00 : f32
    %120 = vector.broadcast %cst_50 : f32 to vector<1x32xf32>
    %121 = vector.extract_strided_slice %102 {offsets = [0, 0], sizes = [31, 32], strides = [1, 1]} : vector<32x32xf32> to vector<31x32xf32>
    %122 = tpu.concatenate %120, %121 in 0 : vector<1x32xf32>, vector<31x32xf32> -> vector<32x32xf32>
    %123 = vector.extract_strided_slice %102 {offsets = [1, 0], sizes = [31, 32], strides = [1, 1]} : vector<32x32xf32> to vector<31x32xf32>
    %124 = tpu.concatenate %123, %120 in 0 : vector<31x32xf32>, vector<1x32xf32> -> vector<32x32xf32>
    %c0_i32_51 = arith.constant 0 : i32
    %125 = vector.broadcast %c0_i32_51 : i32 to vector<32x1xi32>
    %126 = arith.cmpi eq, %119, %125 : vector<32x1xi32>
    %cst_52 = arith.constant 0.000000e+00 : f32
    %127 = vector.shape_cast %126 : vector<32x1xi1> to vector<32x1xi1>
    %128 = vector.broadcast %127 : vector<32x1xi1> to vector<32x32xi1>
    %129 = vector.broadcast %cst_52 : f32 to vector<32x32xf32>
    %130 = arith.select %128, %129, %122 : vector<32x32xi1>, vector<32x32xf32>
    %c7_i32 = arith.constant 7 : i32
    %131 = vector.broadcast %c7_i32 : i32 to vector<32x1xi32>
    %132 = arith.cmpi eq, %119, %131 : vector<32x1xi32>
    %cst_53 = arith.constant 0.000000e+00 : f32
    %133 = vector.shape_cast %132 : vector<32x1xi1> to vector<32x1xi1>
    %134 = vector.broadcast %133 : vector<32x1xi1> to vector<32x32xi1>
    %135 = vector.broadcast %cst_53 : f32 to vector<32x32xf32>
    %136 = arith.select %134, %135, %124 : vector<32x32xi1>, vector<32x32xf32>
    %137 = tpu.concatenate %130, %102, %136 in 1 : vector<32x32xf32>, vector<32x32xf32>, vector<32x32xf32> -> vector<32x96xf32>
    %c0_54 = arith.constant 0 : index
    %c0_55 = arith.constant 0 : index
    %138 = vector.load %arg8[%c0_54, %c0_55] : memref<96x32xf32, #tpu.memory_space<vmem>>, vector<96x32xf32>
    %cst_56 = arith.constant dense<0.000000e+00> : vector<32x32xf32>
    %139 = tpu.matmul %137, %138, %cst_56 {dimension_numbers = #tpu.dot_dimension_numbers<[1], [0], [0], [1], [0, 0, 1, 1], [], []>} : vector<32x96xf32>, vector<96x32xf32>, vector<32x32xf32> -> vector<32x32xf32>
    %c0_57 = arith.constant 0 : index
    %c0_58 = arith.constant 0 : index
    %140 = vector.load %arg9[%c0_57, %c0_58] : memref<1x32xf32, #tpu.memory_space<vmem>>, vector<1x32xf32>
    %141 = vector.broadcast %140 : vector<1x32xf32> to vector<32x32xf32>
    %142 = arith.addf %139, %141 : vector<32x32xf32>
    %cst_59 = arith.constant 0.000000e+00 : f32
    %143 = vector.broadcast %cst_59 : f32 to vector<32x32xf32>
    %144 = arith.maximumf %142, %143 : vector<32x32xf32>
    %145 = vector.shape_cast %144 : vector<32x32xf32> to vector<16x2x32xf32>
    %cst_60 = arith.constant dense<0xFF800000> : vector<16x32xf32>
    %146 = vector.multi_reduction <maximumf>, %145, %cst_60 [1] : vector<16x2x32xf32> to vector<16x32xf32>
    %c0_61 = arith.constant 0 : index
    %c0_62 = arith.constant 0 : index
    %c0_63 = arith.constant 0 : index
    %147 = vector.load %arg10[%c0_61, %c0_62, %c0_63] : memref<2x32x16xf32, #tpu.memory_space<vmem>>, vector<1x32x16xf32>
    %148 = vector.shape_cast %147 : vector<1x32x16xf32> to vector<32x16xf32>
    %cst_64 = arith.constant dense<0.000000e+00> : vector<16x16xf32>
    %149 = tpu.matmul %146, %148, %cst_64 {dimension_numbers = #tpu.dot_dimension_numbers<[1], [0], [0], [1], [0, 0, 1, 1], [], []>} : vector<16x32xf32>, vector<32x16xf32>, vector<16x16xf32> -> vector<16x16xf32>
    %c1_65 = arith.constant 1 : index
    %c0_66 = arith.constant 0 : index
    %c0_67 = arith.constant 0 : index
    %150 = vector.load %arg10[%c1_65, %c0_66, %c0_67] : memref<2x32x16xf32, #tpu.memory_space<vmem>>, vector<1x32x16xf32>
    %151 = vector.shape_cast %150 : vector<1x32x16xf32> to vector<32x16xf32>
    %cst_68 = arith.constant dense<0.000000e+00> : vector<16x16xf32>
    %152 = tpu.matmul %146, %151, %cst_68 {dimension_numbers = #tpu.dot_dimension_numbers<[1], [0], [0], [1], [0, 0, 1, 1], [], []>} : vector<16x32xf32>, vector<32x16xf32>, vector<16x16xf32> -> vector<16x16xf32>
    %153 = arith.maximumf %149, %152 : vector<16x16xf32>
    %154 = tpu.iota {dimensions = array<i32: 0>} : vector<16x1xi32>
    %c4_i32 = arith.constant 4 : i32
    %c0_i32_69 = arith.constant 0 : i32
    %155 = arith.cmpi eq, %c4_i32, %c0_i32_69 : i32
    %c1_i32_70 = arith.constant 1 : i32
    %156 = arith.select %155, %c1_i32_70, %c4_i32 : i32
    %157 = vector.broadcast %156 : i32 to vector<16x1xi32>
    %158 = arith.remsi %154, %157 : vector<16x1xi32>
    %c0_i32_71 = arith.constant 0 : i32
    %159 = vector.broadcast %c0_i32_71 : i32 to vector<16x1xi32>
    %160 = arith.cmpi ne, %158, %159 : vector<16x1xi32>
    %c0_i32_72 = arith.constant 0 : i32
    %161 = vector.broadcast %c0_i32_72 : i32 to vector<16x1xi32>
    %162 = arith.cmpi slt, %158, %161 : vector<16x1xi32>
    %c0_i32_73 = arith.constant 0 : i32
    %163 = arith.cmpi slt, %156, %c0_i32_73 : i32
    %164 = vector.broadcast %163 : i1 to vector<16x1xi1>
    %165 = vector.broadcast %164 : vector<16x1xi1> to vector<16x1xi1>
    %166 = arith.xori %162, %165 : vector<16x1xi1>
    %167 = arith.andi %166, %160 : vector<16x1xi1>
    %168 = vector.broadcast %156 : i32 to vector<16x1xi32>
    %169 = arith.addi %158, %168 : vector<16x1xi32>
    %170 = arith.select %167, %169, %158 : vector<16x1xi1>, vector<16x1xi32>
    %cst_74 = arith.constant 0.000000e+00 : f32
    %171 = vector.broadcast %cst_74 : f32 to vector<1x16xf32>
    %172 = vector.extract_strided_slice %153 {offsets = [0, 0], sizes = [15, 16], strides = [1, 1]} : vector<16x16xf32> to vector<15x16xf32>
    %173 = tpu.concatenate %171, %172 in 0 : vector<1x16xf32>, vector<15x16xf32> -> vector<16x16xf32>
    %174 = vector.extract_strided_slice %153 {offsets = [1, 0], sizes = [15, 16], strides = [1, 1]} : vector<16x16xf32> to vector<15x16xf32>
    %175 = tpu.concatenate %174, %171 in 0 : vector<15x16xf32>, vector<1x16xf32> -> vector<16x16xf32>
    %c0_i32_75 = arith.constant 0 : i32
    %176 = vector.broadcast %c0_i32_75 : i32 to vector<16x1xi32>
    %177 = arith.cmpi eq, %170, %176 : vector<16x1xi32>
    %cst_76 = arith.constant 0.000000e+00 : f32
    %178 = vector.shape_cast %177 : vector<16x1xi1> to vector<16x1xi1>
    %179 = vector.broadcast %178 : vector<16x1xi1> to vector<16x16xi1>
    %180 = vector.broadcast %cst_76 : f32 to vector<16x16xf32>
    %181 = arith.select %179, %180, %173 : vector<16x16xi1>, vector<16x16xf32>
    %c3_i32 = arith.constant 3 : i32
    %182 = vector.broadcast %c3_i32 : i32 to vector<16x1xi32>
    %183 = arith.cmpi eq, %170, %182 : vector<16x1xi32>
    %cst_77 = arith.constant 0.000000e+00 : f32
    %184 = vector.shape_cast %183 : vector<16x1xi1> to vector<16x1xi1>
    %185 = vector.broadcast %184 : vector<16x1xi1> to vector<16x16xi1>
    %186 = vector.broadcast %cst_77 : f32 to vector<16x16xf32>
    %187 = arith.select %185, %186, %175 : vector<16x16xi1>, vector<16x16xf32>
    %188 = tpu.concatenate %181, %153, %187 in 1 : vector<16x16xf32>, vector<16x16xf32>, vector<16x16xf32> -> vector<16x48xf32>
    %c0_78 = arith.constant 0 : index
    %c0_79 = arith.constant 0 : index
    %189 = vector.load %arg11[%c0_78, %c0_79] : memref<48x16xf32, #tpu.memory_space<vmem>>, vector<48x16xf32>
    %cst_80 = arith.constant dense<0.000000e+00> : vector<16x16xf32>
    %190 = tpu.matmul %188, %189, %cst_80 {dimension_numbers = #tpu.dot_dimension_numbers<[1], [0], [0], [1], [0, 0, 1, 1], [], []>} : vector<16x48xf32>, vector<48x16xf32>, vector<16x16xf32> -> vector<16x16xf32>
    %c0_81 = arith.constant 0 : index
    %c0_82 = arith.constant 0 : index
    %191 = vector.load %arg12[%c0_81, %c0_82] : memref<1x16xf32, #tpu.memory_space<vmem>>, vector<1x16xf32>
    %192 = vector.broadcast %191 : vector<1x16xf32> to vector<16x16xf32>
    %193 = arith.addf %190, %192 : vector<16x16xf32>
    %cst_83 = arith.constant 0.000000e+00 : f32
    %194 = vector.broadcast %cst_83 : f32 to vector<16x16xf32>
    %195 = arith.maximumf %193, %194 : vector<16x16xf32>
    %196 = vector.shape_cast %195 : vector<16x16xf32> to vector<8x2x16xf32>
    %cst_84 = arith.constant dense<0xFF800000> : vector<8x16xf32>
    %197 = vector.multi_reduction <maximumf>, %196, %cst_84 [1] : vector<8x2x16xf32> to vector<8x16xf32>
    %c0_85 = arith.constant 0 : index
    %c0_86 = arith.constant 0 : index
    %c0_87 = arith.constant 0 : index
    %198 = vector.load %arg13[%c0_85, %c0_86, %c0_87] : memref<2x16x8xf32, #tpu.memory_space<vmem>>, vector<1x16x8xf32>
    %199 = vector.shape_cast %198 : vector<1x16x8xf32> to vector<16x8xf32>
    %cst_88 = arith.constant dense<0.000000e+00> : vector<8x8xf32>
    %200 = tpu.matmul %197, %199, %cst_88 {dimension_numbers = #tpu.dot_dimension_numbers<[1], [0], [0], [1], [0, 0, 1, 1], [], []>} : vector<8x16xf32>, vector<16x8xf32>, vector<8x8xf32> -> vector<8x8xf32>
    %c1_89 = arith.constant 1 : index
    %c0_90 = arith.constant 0 : index
    %c0_91 = arith.constant 0 : index
    %201 = vector.load %arg13[%c1_89, %c0_90, %c0_91] : memref<2x16x8xf32, #tpu.memory_space<vmem>>, vector<1x16x8xf32>
    %202 = vector.shape_cast %201 : vector<1x16x8xf32> to vector<16x8xf32>
    %cst_92 = arith.constant dense<0.000000e+00> : vector<8x8xf32>
    %203 = tpu.matmul %197, %202, %cst_92 {dimension_numbers = #tpu.dot_dimension_numbers<[1], [0], [0], [1], [0, 0, 1, 1], [], []>} : vector<8x16xf32>, vector<16x8xf32>, vector<8x8xf32> -> vector<8x8xf32>
    %204 = arith.maximumf %200, %203 : vector<8x8xf32>
    %205 = tpu.iota {dimensions = array<i32: 0>} : vector<8x1xi32>
    %c2_i32 = arith.constant 2 : i32
    %c0_i32_93 = arith.constant 0 : i32
    %206 = arith.cmpi eq, %c2_i32, %c0_i32_93 : i32
    %c1_i32_94 = arith.constant 1 : i32
    %207 = arith.select %206, %c1_i32_94, %c2_i32 : i32
    %208 = vector.broadcast %207 : i32 to vector<8x1xi32>
    %209 = arith.remsi %205, %208 : vector<8x1xi32>
    %c0_i32_95 = arith.constant 0 : i32
    %210 = vector.broadcast %c0_i32_95 : i32 to vector<8x1xi32>
    %211 = arith.cmpi ne, %209, %210 : vector<8x1xi32>
    %c0_i32_96 = arith.constant 0 : i32
    %212 = vector.broadcast %c0_i32_96 : i32 to vector<8x1xi32>
    %213 = arith.cmpi slt, %209, %212 : vector<8x1xi32>
    %c0_i32_97 = arith.constant 0 : i32
    %214 = arith.cmpi slt, %207, %c0_i32_97 : i32
    %215 = vector.broadcast %214 : i1 to vector<8x1xi1>
    %216 = vector.broadcast %215 : vector<8x1xi1> to vector<8x1xi1>
    %217 = arith.xori %213, %216 : vector<8x1xi1>
    %218 = arith.andi %217, %211 : vector<8x1xi1>
    %219 = vector.broadcast %207 : i32 to vector<8x1xi32>
    %220 = arith.addi %209, %219 : vector<8x1xi32>
    %221 = arith.select %218, %220, %209 : vector<8x1xi1>, vector<8x1xi32>
    %cst_98 = arith.constant 0.000000e+00 : f32
    %222 = vector.broadcast %cst_98 : f32 to vector<1x8xf32>
    %223 = vector.extract_strided_slice %204 {offsets = [0, 0], sizes = [7, 8], strides = [1, 1]} : vector<8x8xf32> to vector<7x8xf32>
    %224 = tpu.concatenate %222, %223 in 0 : vector<1x8xf32>, vector<7x8xf32> -> vector<8x8xf32>
    %225 = vector.extract_strided_slice %204 {offsets = [1, 0], sizes = [7, 8], strides = [1, 1]} : vector<8x8xf32> to vector<7x8xf32>
    %226 = tpu.concatenate %225, %222 in 0 : vector<7x8xf32>, vector<1x8xf32> -> vector<8x8xf32>
    %c0_i32_99 = arith.constant 0 : i32
    %227 = vector.broadcast %c0_i32_99 : i32 to vector<8x1xi32>
    %228 = arith.cmpi eq, %221, %227 : vector<8x1xi32>
    %cst_100 = arith.constant 0.000000e+00 : f32
    %229 = vector.shape_cast %228 : vector<8x1xi1> to vector<8x1xi1>
    %230 = vector.broadcast %229 : vector<8x1xi1> to vector<8x8xi1>
    %231 = vector.broadcast %cst_100 : f32 to vector<8x8xf32>
    %232 = arith.select %230, %231, %224 : vector<8x8xi1>, vector<8x8xf32>
    %c1_i32_101 = arith.constant 1 : i32
    %233 = vector.broadcast %c1_i32_101 : i32 to vector<8x1xi32>
    %234 = arith.cmpi eq, %221, %233 : vector<8x1xi32>
    %cst_102 = arith.constant 0.000000e+00 : f32
    %235 = vector.shape_cast %234 : vector<8x1xi1> to vector<8x1xi1>
    %236 = vector.broadcast %235 : vector<8x1xi1> to vector<8x8xi1>
    %237 = vector.broadcast %cst_102 : f32 to vector<8x8xf32>
    %238 = arith.select %236, %237, %226 : vector<8x8xi1>, vector<8x8xf32>
    %239 = tpu.concatenate %232, %204, %238 in 1 : vector<8x8xf32>, vector<8x8xf32>, vector<8x8xf32> -> vector<8x24xf32>
    %c0_103 = arith.constant 0 : index
    %c0_104 = arith.constant 0 : index
    %240 = vector.load %arg14[%c0_103, %c0_104] : memref<24x8xf32, #tpu.memory_space<vmem>>, vector<24x8xf32>
    %cst_105 = arith.constant dense<0.000000e+00> : vector<8x8xf32>
    %241 = tpu.matmul %239, %240, %cst_105 {dimension_numbers = #tpu.dot_dimension_numbers<[1], [0], [0], [1], [0, 0, 1, 1], [], []>} : vector<8x24xf32>, vector<24x8xf32>, vector<8x8xf32> -> vector<8x8xf32>
    %c0_106 = arith.constant 0 : index
    %c0_107 = arith.constant 0 : index
    %242 = vector.load %arg15[%c0_106, %c0_107] : memref<1x8xf32, #tpu.memory_space<vmem>>, vector<1x8xf32>
    %243 = vector.broadcast %242 : vector<1x8xf32> to vector<8x8xf32>
    %244 = arith.addf %241, %243 : vector<8x8xf32>
    %cst_108 = arith.constant 0.000000e+00 : f32
    %245 = vector.broadcast %cst_108 : f32 to vector<8x8xf32>
    %246 = arith.maximumf %244, %245 : vector<8x8xf32>
    %247 = vector.shape_cast %246 : vector<8x8xf32> to vector<4x2x8xf32>
    %cst_109 = arith.constant dense<0xFF800000> : vector<4x8xf32>
    %248 = vector.multi_reduction <maximumf>, %247, %cst_109 [1] : vector<4x2x8xf32> to vector<4x8xf32>
    %c0_110 = arith.constant 0 : index
    %c0_111 = arith.constant 0 : index
    %c0_112 = arith.constant 0 : index
    %249 = vector.load %arg16[%c0_110, %c0_111, %c0_112] : memref<2x8x4xf32, #tpu.memory_space<vmem>>, vector<1x8x4xf32>
    %250 = vector.shape_cast %249 : vector<1x8x4xf32> to vector<8x4xf32>
    %cst_113 = arith.constant dense<0.000000e+00> : vector<4x4xf32>
    %251 = tpu.matmul %248, %250, %cst_113 {dimension_numbers = #tpu.dot_dimension_numbers<[1], [0], [0], [1], [0, 0, 1, 1], [], []>} : vector<4x8xf32>, vector<8x4xf32>, vector<4x4xf32> -> vector<4x4xf32>
    %c1_114 = arith.constant 1 : index
    %c0_115 = arith.constant 0 : index
    %c0_116 = arith.constant 0 : index
    %252 = vector.load %arg16[%c1_114, %c0_115, %c0_116] : memref<2x8x4xf32, #tpu.memory_space<vmem>>, vector<1x8x4xf32>
    %253 = vector.shape_cast %252 : vector<1x8x4xf32> to vector<8x4xf32>
    %cst_117 = arith.constant dense<0.000000e+00> : vector<4x4xf32>
    %254 = tpu.matmul %248, %253, %cst_117 {dimension_numbers = #tpu.dot_dimension_numbers<[1], [0], [0], [1], [0, 0, 1, 1], [], []>} : vector<4x8xf32>, vector<8x4xf32>, vector<4x4xf32> -> vector<4x4xf32>
    %255 = arith.maximumf %251, %254 : vector<4x4xf32>
    %c0_118 = arith.constant 0 : index
    %c0_119 = arith.constant 0 : index
    %256 = vector.load %arg17[%c0_118, %c0_119] : memref<4x10xf32, #tpu.memory_space<vmem>>, vector<4x10xf32>
    %cst_120 = arith.constant dense<0.000000e+00> : vector<4x10xf32>
    %257 = tpu.matmul %255, %256, %cst_120 {dimension_numbers = #tpu.dot_dimension_numbers<[1], [0], [0], [1], [0, 0, 1, 1], [], []>} : vector<4x4xf32>, vector<4x10xf32>, vector<4x10xf32> -> vector<4x10xf32>
    %c0_121 = arith.constant 0 : index
    %c0_122 = arith.constant 0 : index
    %258 = vector.load %arg18[%c0_121, %c0_122] : memref<1x10xf32, #tpu.memory_space<vmem>>, vector<1x10xf32>
    %259 = vector.broadcast %258 : vector<1x10xf32> to vector<4x10xf32>
    %260 = arith.addf %257, %259 : vector<4x10xf32>
    %c0_123 = arith.constant 0 : index
    %c0_124 = arith.constant 0 : index
    %c0_125 = arith.constant 0 : index
    %261 = vector.load %arg19[%c0_123, %c0_124, %c0_125] : memref<1x4x10xf32, #tpu.memory_space<vmem>>, vector<1x4x10xf32>
    %262 = vector.shape_cast %261 : vector<1x4x10xf32> to vector<4x10xf32>
    %263 = vector.shape_cast %260 : vector<4x10xf32> to vector<1x4x10xf32>
    tpu.vector_store %arg19[%c0_123, %c0_124, %c0_125], %263 {strides = array<i32>} : memref<1x4x10xf32, #tpu.memory_space<vmem>>, vector<1x4x10xf32>,
    return
  }
  func.func @transform_0(%arg0: i32) -> (i32, i32) {
    %c0_i32 = arith.constant 0 : i32
    %c0_i32_0 = arith.constant 0 : i32
    return %arg0, %c0_i32 : i32, i32
  }
  func.func @transform_1(%arg0: i32) -> (i32, i32) {
    %c0_i32 = arith.constant 0 : i32
    %c0_i32_0 = arith.constant 0 : i32
    %c0_i32_1 = arith.constant 0 : i32
    return %c0_i32, %c0_i32_0 : i32, i32
  }
  func.func @transform_2(%arg0: i32) -> (i32, i32) {
    %c0_i32 = arith.constant 0 : i32
    %c0_i32_0 = arith.constant 0 : i32
    %c0_i32_1 = arith.constant 0 : i32
    return %c0_i32, %c0_i32_0 : i32, i32
  }
  func.func @transform_3(%arg0: i32) -> (i32, i32, i32) {
    %c0_i32 = arith.constant 0 : i32
    %c0_i32_0 = arith.constant 0 : i32
    %c0_i32_1 = arith.constant 0 : i32
    %c0_i32_2 = arith.constant 0 : i32
    return %c0_i32, %c0_i32_0, %c0_i32_1 : i32, i32, i32
  }
  func.func @transform_4(%arg0: i32) -> (i32, i32) {
    %c0_i32 = arith.constant 0 : i32
    %c0_i32_0 = arith.constant 0 : i32
    %c0_i32_1 = arith.constant 0 : i32
    return %c0_i32, %c0_i32_0 : i32, i32
  }
  func.func @transform_5(%arg0: i32) -> (i32, i32) {
    %c0_i32 = arith.constant 0 : i32
    %c0_i32_0 = arith.constant 0 : i32
    %c0_i32_1 = arith.constant 0 : i32
    return %c0_i32, %c0_i32_0 : i32, i32
  }
  func.func @transform_6(%arg0: i32) -> (i32, i32, i32) {
    %c0_i32 = arith.constant 0 : i32
    %c0_i32_0 = arith.constant 0 : i32
    %c0_i32_1 = arith.constant 0 : i32
    %c0_i32_2 = arith.constant 0 : i32
    return %c0_i32, %c0_i32_0, %c0_i32_1 : i32, i32, i32
  }
  func.func @transform_7(%arg0: i32) -> (i32, i32) {
    %c0_i32 = arith.constant 0 : i32
    %c0_i32_0 = arith.constant 0 : i32
    %c0_i32_1 = arith.constant 0 : i32
    return %c0_i32, %c0_i32_0 : i32, i32
  }
  func.func @transform_8(%arg0: i32) -> (i32, i32) {
    %c0_i32 = arith.constant 0 : i32
    %c0_i32_0 = arith.constant 0 : i32
    %c0_i32_1 = arith.constant 0 : i32
    return %c0_i32, %c0_i32_0 : i32, i32
  }
  func.func @transform_9(%arg0: i32) -> (i32, i32, i32) {
    %c0_i32 = arith.constant 0 : i32
    %c0_i32_0 = arith.constant 0 : i32
    %c0_i32_1 = arith.constant 0 : i32
    %c0_i32_2 = arith.constant 0 : i32
    return %c0_i32, %c0_i32_0, %c0_i32_1 : i32, i32, i32
  }
  func.func @transform_10(%arg0: i32) -> (i32, i32) {
    %c0_i32 = arith.constant 0 : i32
    %c0_i32_0 = arith.constant 0 : i32
    %c0_i32_1 = arith.constant 0 : i32
    return %c0_i32, %c0_i32_0 : i32, i32
  }
  func.func @transform_11(%arg0: i32) -> (i32, i32) {
    %c0_i32 = arith.constant 0 : i32
    %c0_i32_0 = arith.constant 0 : i32
    %c0_i32_1 = arith.constant 0 : i32
    return %c0_i32, %c0_i32_0 : i32, i32
  }
  func.func @transform_12(%arg0: i32) -> (i32, i32, i32) {
    %c0_i32 = arith.constant 0 : i32
    %c0_i32_0 = arith.constant 0 : i32
    %c0_i32_1 = arith.constant 0 : i32
    %c0_i32_2 = arith.constant 0 : i32
    return %c0_i32, %c0_i32_0, %c0_i32_1 : i32, i32, i32
  }
  func.func @transform_13(%arg0: i32) -> (i32, i32) {
    %c0_i32 = arith.constant 0 : i32
    %c0_i32_0 = arith.constant 0 : i32
    %c0_i32_1 = arith.constant 0 : i32
    return %c0_i32, %c0_i32_0 : i32, i32
  }
  func.func @transform_14(%arg0: i32) -> (i32, i32) {
    %c0_i32 = arith.constant 0 : i32
    %c0_i32_0 = arith.constant 0 : i32
    %c0_i32_1 = arith.constant 0 : i32
    return %c0_i32, %c0_i32_0 : i32, i32
  }
  func.func @transform_15(%arg0: i32) -> (i32, i32, i32) {
    %c0_i32 = arith.constant 0 : i32
    %c0_i32_0 = arith.constant 0 : i32
    %c0_i32_1 = arith.constant 0 : i32
    %c0_i32_2 = arith.constant 0 : i32
    return %c0_i32, %c0_i32_0, %c0_i32_1 : i32, i32, i32
  }
  func.func @transform_16(%arg0: i32) -> (i32, i32) {
    %c0_i32 = arith.constant 0 : i32
    %c0_i32_0 = arith.constant 0 : i32
    %c0_i32_1 = arith.constant 0 : i32
    return %c0_i32, %c0_i32_0 : i32, i32
  }
  func.func @transform_17(%arg0: i32) -> (i32, i32) {
    %c0_i32 = arith.constant 0 : i32
    %c0_i32_0 = arith.constant 0 : i32
    %c0_i32_1 = arith.constant 0 : i32
    return %c0_i32, %c0_i32_0 : i32, i32
  }
  func.func @transform_18(%arg0: i32) -> (i32, i32, i32) {
    %c0_i32 = arith.constant 0 : i32
    %c0_i32_0 = arith.constant 0 : i32
    %c0_i32_1 = arith.constant 0 : i32
    return %arg0, %c0_i32, %c0_i32_0 : i32, i32, i32
  }
}

</mosaic_0001>

<bundles_post_ra>
// kernel: tpu_custom_call.1
= control target key start
LH: loop header
LB: loop body
LE: loop exit
PB: predicated region body
PF: predicated region fallthrough
CT: control target
= control target key end

     0   :  { %s8229_s0 = inlined_call_operand.vmem [shape: f32[256,96], index: 0, kind: input, shape index: {}]   ;;  %s8230_s1 = inlined_call_operand.vmem [shape: f32[288,128], index: 1, kind: input, shape index: {}]   ;;  %s8231_s2 = inlined_call_operand.vmem [shape: f32[1,128], index: 2, kind: input, shape index: {}]   ;;  %s8232_s3 = inlined_call_operand.vmem [shape: f32[2,128,64], index: 3, kind: input, shape index: {}]   ;;  %s8233_s4 = inlined_call_operand.vmem [shape: f32[192,64], index: 4, kind: input, shape index: {}]   ;;  %s8234_s5 = inlined_call_operand.vmem [shape: f32[1,64], index: 5, kind: input, shape index: {}]   ;;  %s8235_s6 = inlined_call_operand.vmem [shape: f32[2,64,32], index: 6, kind: input, shape index: {}]   ;;  %s8236_s7 = inlined_call_operand.vmem [shape: f32[96,32], index: 7, kind: input, shape index: {}]   ;;  %s8237_s8 = inlined_call_operand.vmem [shape: f32[1,32], index: 8, kind: input, shape index: {}]   ;;  %s8238_s9 = inlined_call_operand.vmem [shape: f32[2,32,16], index: 9, kind: input, shape index: {}]   ;;  %s8239_s10 = inlined_call_operand.vmem [shape: f32[48,16], index: 10, kind: input, shape index: {}]   ;;  %s8240_s11 = inlined_call_operand.vmem [shape: f32[1,16], index: 11, kind: input, shape index: {}]   ;;  %s8241_s12 = inlined_call_operand.vmem [shape: f32[2,16,8], index: 12, kind: input, shape index: {}]   ;;  %s8242_s13 = inlined_call_operand.vmem [shape: f32[24,8], index: 13, kind: input, shape index: {}]   ;;  %s8243_s14 = inlined_call_operand.vmem [shape: f32[1,8], index: 14, kind: input, shape index: {}]   ;;  %s8244_s15 = inlined_call_operand.vmem [shape: f32[2,8,4], index: 15, kind: input, shape index: {}]   ;;  %s8245_s16 = inlined_call_operand.vmem [shape: f32[4,10], index: 16, kind: input, shape index: {}]   ;;  %s8246_s17 = inlined_call_operand.vmem [shape: f32[1,10], index: 17, kind: input, shape index: {}]   ;;  %s8247_s18 = inlined_call_operand.hbm [shape: f32[2,4,10], index: 18, kind: output, shape index: {}]  }
   0x1   :  { %8271 = sst [smem:[#allocation24_spill]] %s8229_s0 }
   0x2   :  { %8272 = sst [smem:[#allocation25_spill]] %s8230_s1 }
   0x3   :  { %8273 = sst [smem:[#allocation26_spill]] %s8231_s2 }
   0x4   :  { %8274 = sst [smem:[#allocation27_spill]] %s8232_s3 }
   0x5   :  { %8275 = sst [smem:[#allocation28_spill]] %s8233_s4 }
   0x6   :  { %8276 = sst [smem:[#allocation29_spill]] %s8247_s18 }
   0x7   :  { %23 = vsyncpa [#allocation3], 0 }
   0x8   :  { %25 = vsyncpa [#allocation3 + $0x1], 0  ;;  %s6456_s27 = smov 0   ;;  %s6458_s28 = smov 0  }
   0x9   :  { %s6460_s29 = smov 0   ;;  %s6462_s30 = smov 0  }
   0xa LB: > { %8277 = sst [smem:[#allocation5_spill]] %s6337_s27  ;;  %s6477_s0 = sadd.s32 4294967295, %s6349_s30   ;;  %s6349_s30 = sphi %s6462_s30, %s8358_s30   ;;  %s6345_s29 = sphi %s6460_s29, %s8360_s29   ;;  %s6341_s28 = sphi %s6458_s28, %s8362_s28   ;;  %s6337_s27 = sphi %s6456_s27, %s8361_s27  }
   0xb   : > { %8278 = sst [smem:[#allocation6_spill]] %s6345_s29  ;;  %s5415_s19 = sadd.s32 4294967294, %s6349_s30  }
   0xc   : > { %8279 = sst [smem:[#allocation7_spill]] %s6349_s30  ;;  %s6481_s1 = sadd.s32 1, %s6349_s30  }
   0xd   : > { %8280 = sst [smem:[#allocation8_spill]] %s6481_s1  ;;  %s421_s20 = sadd.s32 1, %s6345_s29 }
   0xe   : > { %s418_s21 = ssub.s32 %s6349_s30, %s6481_s1  ;;  %p431_p0 = scmp.ne.s32.totalorder %s6345_s29, %s6341_s28 }
   0xf   : > { %p419_p1 = scmp.eq.s32.totalorder %s418_s21, 0  ;;  %p432_p2 = scmp.eq.s32.totalorder %s6477_s0, 1 }
  0x10   : > { %p437_p3 = scmp.ne.s32.totalorder %s6341_s28, %s6337_s27  ;;  %p438_p4 = scmp.eq.s32.totalorder %s5415_s19, 1 }
  0x11   : > { %s6492_s22 = scalar_select %p419_p1, %s6345_s29, %s421_s20  }
  0x12   : > { %p6494_p5 = por %p432_p2, %p431_p0  ;;  %p6498_p6 = por %p438_p4, %p437_p3 }
  0x13   : > { %8281 = sst [smem:[#allocation9_spill]] %s6492_s22  ;;  %p5418_p7 = scmp.ge.s32.totalorder %s6349_s30, 1 }
  0x14   : > { %s8283_s23 = scalar_select %p6498_p6, 1, 0 }
  0x15   : > { %p516_p8 = scmp.lt.s32.totalorder %s6349_s30, 3 }
  0x16   : > { %8284 = sst [smem:[#allocation10_spill]] %s8283_s23 }
  0x17   : > { %p517_p9 = pnand %p5418_p7, %p516_p8 }
  0x19   : > { %520 = sbr.rel (%p517_p9) target bundleno = 3399 (0xd47), region = 92 }
  0x20   : > { %s5420_s24 = sshll.u32 %s6477_s0, 4  ;;  %v592_v0 = vlaneseq  ;;  %s8285_s19 = sld [smem:[#allocation25_spill]]  ;;  %vm866_vm0 = vcmask 1046528   ;;  %vm817_vm2 = vcmask 1040384   ;;  %vm1232_vm7 = vcmask 261120  }
  0x21   : > { %p571_p10 = scmp.lt.s32.totalorder %s5420_s24, 31  ;;  %s8287_s29 = sld [smem:[#allocation24_spill]]  ;;  %vm1172_vm8 = vcmask 523264   ;;  %vm1155_vm9 = vcmask 785408   ;;  %vm1923_vm13 = vcmask 1041408   ;;  %vm2452_vm14 = vcmask 1041409  }
  0x22   : > { %v6517_v5 = vshrl.u32 %v592_v0, 7  ;;  %s8291_s27 = smov 96   ;;  %s8295_s3 = sld [smem:[#allocation27_spill]]  ;;  %vm2454_vm15 = vcmask 1042434  }
  0x23   : > { %s8364_s24 = smov (!%p571_p10, %s5420_s24), 31  ;;  %s8326_s4 = sld [smem:[#allocation28_spill]] }
  0x24   : > { %8286 = vst [vmem:[#allocation11_spill] sm:$0xff] %v6517_v5  ;;  %s5421_s30 = sshll.u32 %s8364_s24, 3  ;;  %v6546_v17 = vadd.s32 24, %v6517_v5  ;;  %s8259_s24 = smov 64  }
  0x25   : > { %s6359_s22 = smov 8   ;;  %s567_s21 = sand.u32 1, %s6341_s28  }
  0x26   : > { %v1205_v1 = vld [vmem:[%s8285_s19 + $0x80] sm:$0xff]  ;;  %v1206_v2 = vld [vmem:[%s8285_s19 + $0x88] sm:$0xff]  ;;  %v1207_v8 = vld [vmem:[%s8285_s19 + $0x90] sm:$0xff]  ;;  %8288 = vst [vmem:[#allocation12_spill] sm:$0xff] %v6546_v17  ;;  %v634_v33 = vand.u32 31, %v6546_v17 }
  0x27   : > { %v1189_v3 = vld [vmem:[%s8285_s19] sm:$0xff]  ;;  %v1190_v4 = vld [vmem:[%s8285_s19 + $0x8] sm:$0xff]  ;;  %v6005_v6 = vpack.c.bf16 %v1206_v2, %v1205_v1  ;;  %v1208_v9 = vld [vmem:[%s8285_s19 + $0x98] sm:$0xff]  ;;  %s6543_s1 = scalar_lea.vmem %s8287_s29, %s5421_s30  ;;  %s8257_s30 = smov 96  }
  0x28   : > { %v6007_v7 = vpack.c.bf16 %v1190_v4, %v1189_v3  ;;  %v1191_v10 = vld [vmem:[%s8285_s19 + $0x10] sm:$0xff]  ;;  %v6009_v11 = vpack.c.bf16 %v1208_v9, %v1207_v8  ;;  %v1192_v12 = vld [vmem:[%s8285_s19 + $0x18] sm:$0xff]  ;;  %v1209_v13 = vld [vmem:[%s8285_s19 + $0xa0] sm:$0xff]  ;;  %vm6600_vm1 = vcmp.eq.s32.totalorder %v634_v33, 31  ;;  %s8292_s29 = smov 64  }
  0x29   : > { %v1210_v14 = vld [vmem:[%s8285_s19 + $0xa8] sm:$0xff]  ;;  %6006 = vmatprep.subr.bf16.mxu0 %v6005_v6  ;;  %v6011_v15 = vpack.c.bf16 %v1192_v12, %v1191_v10  ;;  %v1193_v16 = vld [vmem:[%s8285_s19 + $0x20] sm:$0xff]  ;;  %v1211_v20 = vld [vmem:[%s8285_s19 + $0xb0] sm:$0xff] }
  0x2a   : > { %6008 = vmatpush3.bf16.msra.mxu0 %v6007_v7  ;;  %v6013_v18 = vpack.c.bf16 %v1210_v14, %v1209_v13  ;;  %v1194_v19 = vld [vmem:[%s8285_s19 + $0x28] sm:$0xff]  ;;  %v1212_v21 = vld [vmem:[%s8285_s19 + $0xb8] sm:$0xff]  ;;  %v6561_v23 = vld [vmem:[%s6543_s1] sm:$0xff] }
  0x2b   : > { %6010 = vmatprep.subr.bf16.mxu0 %v6009_v11  ;;  %v6558_v22 = vld [vmem:[%s6543_s1 + $0x8] sm:$0xff]  ;;  %v6564_v24 = vld [vmem:[%s6543_s1 + $0x10] sm:$0xff]  ;;  %1043 = vrot.lane.b32.xlu0 %v6561_v23, %s8257_s30  ;;  %v867_v26 = vrot.slane %v6561_v23, 1  ;;  %v6573_v27 = vld [vmem:[%s6543_s1 + $0x18] sm:$0xff]  ;;  %v6015_v31 = vpack.c.bf16 %v1194_v19, %v1193_v16  ;;  %v6017_v35 = vpack.c.bf16 %v1212_v21, %v1211_v20  ;;  %v818_v62 = vrot.slane %v6561_v23, 7 }
  0x2c   : > { %1045 = vrot.lane.b32.xlu1 %v6558_v22, %s8257_s30  ;;  %v868_v25 = vrot.slane %v6558_v22, 1  ;;  %v6576_v28 = vld [vmem:[%s6543_s1 + $0x20] sm:$0xff]  ;;  %v870_v29 = vrot.slane %v6564_v24, 1  ;;  %v872_v30 = vrot.slane %v6573_v27, 1  ;;  %v1195_v36 = vld [vmem:[%s8285_s19 + $0x30] sm:$0xff]  ;;  %v1196_v37 = vld [vmem:[%s8285_s19 + $0x38] sm:$0xff] }
  0x2d   : > { %v874_v34 = vrot.slane %v6576_v28, 1  ;;  %v6594_v40 = vld [vmem:[%s6543_s1 + $0x28] sm:$0xff]  ;;  %v6019_v41 = vpack.c.bf16 %v1196_v37, %v1195_v36  ;;  %v1213_v42 = vld [vmem:[%s8285_s19 + $0xc0] sm:$0xff]  ;;  %v1215_v48 = vld [vmem:[%s8285_s19 + $0xd0] sm:$0xff]  ;;  %v819_v51 = vrot.slane %v6558_v22, 7  ;;  %v821_v9 = vrot.slane %v6564_v24, 7 }
  0x2e   : > { %6012 = vmatpush3.bf16.msra.mxu0 %v6011_v15  ;;  %v869_v32 = vsel %vm866_vm0, %v867_v26, %v868_v25  ;;  %v871_v38 = vsel %vm866_vm0, %v868_v25, %v870_v29  ;;  %v873_v39 = vsel %vm866_vm0, %v870_v29, %v872_v30  ;;  %v1214_v45 = vld [vmem:[%s8285_s19 + $0xc8] sm:$0xff]  ;;  %v1197_v46 = vld [vmem:[%s8285_s19 + $0x40] sm:$0xff]  ;;  %v1216_v49 = vld [vmem:[%s8285_s19 + $0xd8] sm:$0xff]  ;;  %v876_v50 = vrot.slane %v6594_v40, 1  ;;  %s6355_s30 = smov 32  }
  0x2f   : > { %6014 = vmatprep.subr.bf16.mxu0 %v6013_v18  ;;  %1107 = vrot.lane.b32.xlu0 %v869_v32, %s8259_s24  ;;  %v875_v43 = vsel %vm866_vm0, %v872_v30, %v874_v34  ;;  %v1198_v47 = vld [vmem:[%s8285_s19 + $0x48] sm:$0xff]  ;;  %v6627_v53 = vld [vmem:[%s6543_s1 + $0x30] sm:$0xff]  ;;  %v6021_v54 = vpack.c.bf16 %v1214_v45, %v1213_v42  ;;  %v1221_v56 = vld [vmem:[%s8285_s19 + $0x100] sm:$0xff]  ;;  %v6025_v58 = vpack.c.bf16 %v1216_v49, %v1215_v48  ;;  %v6667_v11 = vadd.s32 56, %v6517_v5 }
  0x30   : > { %1109 = vrot.lane.b32.xlu1 %v871_v38, %s8259_s24  ;;  %v1030_v52 = vsel %vm6600_vm1, 0.0, %v875_v43  ;;  %v6023_v55 = vpack.c.bf16 %v1198_v47, %v1197_v46  ;;  %v1222_v57 = vld [vmem:[%s8285_s19 + $0x108] sm:$0xff]  ;;  %v1199_v59 = vld [vmem:[%s8285_s19 + $0x50] sm:$0xff]  ;;  %v1200_v60 = vld [vmem:[%s8285_s19 + $0x58] sm:$0xff]  ;;  %v877_v2 = vsel %vm866_vm0, %v874_v34, %v876_v50  ;;  %v878_v3 = vrot.slane %v6627_v53, 1 }
  0x31   : > { %v1217_v61 = vld [vmem:[%s8285_s19 + $0xe0] sm:$0xff]  ;;  %v1218_v63 = vld [vmem:[%s8285_s19 + $0xe8] sm:$0xff]  ;;  %v1223_v0 = vld [vmem:[%s8285_s19 + $0x110] sm:$0xff]  ;;  %v6037_v4 = vpack.c.bf16 %v1222_v57, %v1221_v56  ;;  %v6027_v6 = vpack.c.bf16 %v1200_v60, %v1199_v59  ;;  %v6662_v8 = vsel %vm817_vm2, %v818_v62, %v819_v51  ;;  %8293 = vst [vmem:[#allocation13_spill] sm:$0xff] %v6667_v11  ;;  %v823_v15 = vrot.slane %v6573_v27, 7 }
  0x32   : > { %6016 = vmatpush3.bf16.msra.mxu0 %v6015_v31  ;;  %v1224_v1 = vld [vmem:[%s8285_s19 + $0x118] sm:$0xff]  ;;  %v6029_v12 = vpack.c.bf16 %v1218_v63, %v1217_v61  ;;  %v1201_v13 = vld [vmem:[%s8285_s19 + $0x60] sm:$0xff]  ;;  %v1202_v14 = vld [vmem:[%s8285_s19 + $0x68] sm:$0xff]  ;;  %v825_v16 = vrot.slane %v6576_v28, 7  ;;  %v6685_v21 = vsel %vm817_vm2, %v819_v51, %v821_v9  ;;  %v827_v22 = vrot.slane %v6594_v40, 7 }
  0x33   : > { %6018 = vmatprep.subr.bf16.mxu0 %v6017_v35  ;;  %1047 = vrot.lane.b32.xlu0 %v6564_v24, %s8291_s27  ;;  %v6041_v7 = vpack.c.bf16 %v1224_v1, %v1223_v0  ;;  %v583_v10 = vld [vmem:[%s6543_s1 + $0x38] sm:$0xff]  ;;  %v584_v18 = vld [vmem:[%s6543_s1 + $0x40] sm:$0xff]  ;;  %v1219_v19 = vld [vmem:[%s8285_s19 + $0xf0] sm:$0xff]  ;;  %v829_v24 = vrot.slane %v6627_v53, 7  ;;  %v879_v25 = vsel %vm866_vm0, %v876_v50, %v878_v3  ;;  %v6694_v26 = vsel %vm817_vm2, %v821_v9, %v823_v15 }
  0x34   : > { %1111 = vrot.lane.b32.xlu1 %v873_v39, %s8259_s24  ;;  %6038 = vmatprep.subr.bf16.mxu1 %v6037_v4  ;;  %v1220_v20 = vld [vmem:[%s8285_s19 + $0xf8] sm:$0xff]  ;;  %v831_v29 = vrot.slane %v583_v10, 7  ;;  %v880_v30 = vrot.slane %v583_v10, 1  ;;  %v6031_v31 = vpack.c.bf16 %v1202_v14, %v1201_v13  ;;  %v6700_v32 = vsel %vm817_vm2, %v825_v16, %v827_v22  ;;  %v1203_v36 = vld [vmem:[%s8285_s19 + $0x70] sm:$0xff]  ;;  %v585_v45 = vld [vmem:[%s6543_s1 + $0x48] sm:$0xff]  ;;  %s5419_s24 = sshll.u32 %s567_s21, 2 }
  0x35   : > { %6040 = vmatpush3.bf16.msra.mxu1 %v6037_v4  ;;  %v6703_v33 = vsel %vm817_vm2, %v827_v22, %v829_v24  ;;  %v882_v34 = vrot.slane %v584_v18, 1  ;;  %v6033_v35 = vpack.c.bf16 %v1220_v20, %v1219_v19  ;;  %v1204_v37 = vld [vmem:[%s8285_s19 + $0x78] sm:$0xff]  ;;  %v833_v39 = vrot.slane %v584_v18, 7  ;;  %v586_v48 = vld [vmem:[%s6543_s1 + $0x50] sm:$0xff]  ;;  %v588_v56 = vld [vmem:[%s6543_s1 + $0x60] sm:$0xff] }
  0x36   : > { %6020 = vmatpush3.bf16.msra.mxu0 %v6019_v41  ;;  %6042 = vmatprep.subr.bf16.mxu1 %v6041_v7  ;;  %v6713_v38 = vsel %vm817_vm2, %v829_v24, %v831_v29  ;;  %v881_v41 = vsel %vm866_vm0, %v878_v3, %v880_v30  ;;  %v6035_v42 = vpack.c.bf16 %v1204_v37, %v1203_v36  ;;  %v884_v47 = vrot.slane %v585_v45, 1  ;;  %v589_v4 = vld [vmem:[%s6543_s1 + $0x68] sm:$0xff] }
  0x37   : > { %6022 = vmatprep.subr.bf16.mxu0 %v6021_v54  ;;  %1049 = vrot.lane.b32.xlu0 %v6573_v27, %s8291_s27  ;;  %v6697_v27 = vsel %vm817_vm2, %v823_v15, %v825_v16  ;;  %v6720_v43 = vsel %vm817_vm2, %v831_v29, %v833_v39  ;;  %v883_v44 = vsel %vm866_vm0, %v880_v30, %v882_v34  ;;  %v837_v50 = vrot.slane %v586_v48, 7  ;;  %v587_v54 = vld [vmem:[%s6543_s1 + $0x58] sm:$0xff] }
  0x38   : > { %1113 = vrot.lane.b32.xlu1 %v1030_v52, %s8292_s29  ;;  %v885_v51 = vsel %vm866_vm0, %v882_v34, %v884_v47  ;;  %v886_v52 = vrot.slane %v586_v48, 1  ;;  %v839_v57 = vrot.slane %v587_v54, 7  ;;  %v888_v59 = vrot.slane %v587_v54, 1  ;;  %v591_v16 = vld [vmem:[%s6543_s1 + $0x78] sm:$0xff] }
  0x39   : > { %6044 = vmatpush3.bf16.msra.mxu1 %v6041_v7  ;;  %v890_v61 = vrot.slane %v588_v56, 1  ;;  %v841_v0 = vrot.slane %v588_v56, 7  ;;  %v892_v9 = vrot.slane %v589_v4, 1  ;;  %v847_v20 = vrot.slane %v591_v16, 7 }
  0x3a   : > { %6024 = vmatpush3.bf16.msra.mxu0 %v6023_v55  ;;  %v604_v55 = vadd.s32 88, %v6517_v5  ;;  %v6744_v63 = vsel %vm817_vm2, %v837_v50, %v839_v57  ;;  %v889_v1 = vsel %vm866_vm0, %v886_v52, %v888_v59  ;;  %v896_v24 = vrot.slane %v591_v16, 1 }
  0x3b   : > { %6026 = vmatprep.subr.bf16.mxu0 %v6025_v58  ;;  %1051 = vrot.lane.b32.xlu0 %v6576_v28, %s8291_s27  ;;  %v662_v28 = vand.u32 31, %v6667_v11  ;;  %v887_v58 = vsel %vm866_vm0, %v884_v47, %v886_v52  ;;  %v891_v3 = vsel %vm866_vm0, %v888_v59, %v890_v61  ;;  %v893_v14 = vsel %vm866_vm0, %v890_v61, %v892_v9 }
  0x3c   : > { %1115 = vrot.lane.b32.xlu1 %v877_v2, %s8292_s29  ;;  %v690_v60 = vand.u32 31, %v604_v55  ;;  %v6750_v2 = vsel %vm817_vm2, %v839_v57, %v841_v0  ;;  %v613_v34 = vand.u32 31, %v6517_v5  ;;  %v865_v37 = vsel %vm817_vm2, 0.0, %v818_v62 }
  0x3d   : > { %vm986_vm3 = vcmp.eq.s32.totalorder %v662_v28, 31  ;;  %v6791_v23 = vadd.s32 32, %v6517_v5  ;;  %vm2456_vm1 = vcmask 1043459  }
  0x3e   : > { %6028 = vmatpush3.bf16.msra.mxu0 %v6027_v6  ;;  %v1034_v46 = vsel %vm986_vm3, 0.0, %v883_v44  ;;  %vm990_vm4 = vcmp.eq.s32.totalorder %v690_v60, 31  ;;  %v843_v6 = vrot.slane %v589_v4, 7  ;;  %vm915_vm6 = vcmp.eq.s32.totalorder %v613_v34, 0 }
  0x3f   : > { %6030 = vmatprep.subr.bf16.mxu0 %v6029_v12  ;;  %1053 = vrot.lane.b32.xlu0 %v6594_v40, %s8291_s27  ;;  %v835_v40 = vrot.slane %v585_v45, 7  ;;  %v1038_v7 = vsel %vm990_vm4, 0.0, %v891_v3  ;;  %8294 = vst [vmem:[#allocation14_spill] sm:$0xff] %v6791_v23  ;;  %vm2458_vm3 = vcmask 1044484   ;;  %vm2460_vm4 = vcmask 1045509  }
  0x40   : > { %1117 = vrot.lane.b32.xlu1 %v879_v25, %s8292_s29  ;;  %v6758_v12 = vsel %vm817_vm2, %v841_v0, %v843_v6 }
  0x41   : > { %v6729_v49 = vsel %vm817_vm2, %v833_v39, %v835_v40  ;;  %v963_v39 = vsel %vm915_vm6, 0.0, %v865_v37  ;;  %vm8269_vm6 = vcmask 1047559  }
  0x42   : > { %6032 = vmatpush3.bf16.msra.mxu0 %v6031_v31  ;;  %v914_v31 = vsel %vm866_vm0, %v896_v24, 0.0 }
  0x43   : > { %6034 = vmatprep.subr.bf16.mxu0 %v6033_v35  ;;  %1055 = vrot.lane.b32.xlu0 %v6627_v53, %s8291_s27  ;;  %v6737_v53 = vsel %vm817_vm2, %v835_v40, %v837_v50  ;;  %v641_v50 = vand.u32 31, %v6791_v23 }
  0x44   : > { %1119 = vrot.lane.b32.xlu1 %v881_v41, %s8292_s29 }
  0x45   : > { %vm919_vm10 = vcmp.eq.s32.totalorder %v641_v50, 0 }
  0x46   : > { %6036 = vmatpush3.bf16.msra.mxu0 %v6035_v42  ;;  %v967_v59 = vsel %vm919_vm10, 0.0, %v6697_v27 }
  0x47   : > { %1057 = vrot.lane.b32.xlu0 %v583_v10, %s8291_s27  ;;  %v590_v10 = vld [vmem:[%s6543_s1 + $0x70] sm:$0xff]  ;;  %s5509_s1 = sshll.u32 %s6477_s0, 6  ;;  %s6360_s0 = smov [#allocation2]  }
  0x48   : > { %1121 = vrot.lane.b32.xlu1 %v1034_v46, %s8292_s29  ;;  %v845_v13 = vrot.slane %v590_v10, 7  ;;  %v894_v15 = vrot.slane %v590_v10, 1 }
  0x4a   : > { %v6766_v19 = vsel %vm817_vm2, %v843_v6, %v845_v13  ;;  %v895_v22 = vsel %vm866_vm0, %v892_v9, %v894_v15  ;;  %v6772_v29 = vsel %vm817_vm2, %v845_v13, %v847_v20  ;;  %v897_v30 = vsel %vm866_vm0, %v894_v15, %v896_v24 }
  0x4b   : > { %1059 = vrot.lane.b32.xlu0 %v584_v18, %s8291_s27  ;;  %v608_v18 = vadd.s32 120, %v6517_v5 }
  0x4c   : > { %1123 = vrot.lane.b32.xlu1 %v885_v51, %s8292_s29 }
  0x4d   : > { %v718_v25 = vand.u32 31, %v608_v18 }
  0x4f   : > { %1061 = vrot.lane.b32.xlu0 %v585_v45, %s8291_s27  ;;  %vm994_vm5 = vcmp.eq.s32.totalorder %v718_v25, 31  ;;  %v605_v25 = vadd.s32 96, %v6517_v5 }
  0x50   : > { %1125 = vrot.lane.b32.xlu1 %v887_v58, %s8292_s29  ;;  %v1042_v28 = vsel %vm994_vm5, 0.0, %v914_v31  ;;  %vm8270_vm5 = vcmask 1046534  }
  0x53   : > { %1063 = vrot.lane.b32.xlu0 %v586_v48, %s8291_s27 }
  0x54   : > { %1127 = vrot.lane.b32.xlu1 %v889_v1, %s8292_s29  ;;  %v601_v1 = vadd.s32 64, %v6517_v5 }
  0x56   : > { %v669_v6 = vand.u32 31, %v601_v1  ;;  %v2381_v1 = vld [vmem:[%s8295_s3 + $0x48] sm:$0xff] }
  0x57   : > { %1065 = vrot.lane.b32.xlu0 %v587_v54, %s8291_s27 }
  0x58   : > { %1129 = vrot.lane.b32.xlu1 %v1038_v7, %s8292_s29  ;;  %vm923_vm11 = vcmp.eq.s32.totalorder %v669_v6, 0  ;;  %v2384_v6 = vld [vmem:[%s8295_s3 + $0x60] sm:$0xff] }
  0x59   : > { %v971_v18 = vsel %vm923_vm11, 0.0, %v6720_v43 }
  0x5b   : > { %1067 = vrot.lane.b32.xlu0 %v588_v56, %s8291_s27 }
  0x5c   : > { %1131 = vrot.lane.b32.xlu1 %v893_v14, %s8292_s29 }
  0x5f   : > { %1069 = vrot.lane.b32.xlu0 %v589_v4, %s8291_s27 }
  0x60   : > { %1133 = vrot.lane.b32.xlu1 %v895_v22, %s8292_s29 }
  0x63   : > { %1071 = vrot.lane.b32.xlu0 %v590_v10, %s8291_s27 }
  0x64   : > { %1135 = vrot.lane.b32.xlu1 %v897_v30, %s8292_s29 }
  0x67   : > { %1073 = vrot.lane.b32.xlu0 %v591_v16, %s8291_s27  ;;  %s8296_s27 = sld [smem:[#allocation26_spill]] }
  0x68   : > { %1137 = vrot.lane.b32.xlu1 %v1042_v28, %s8292_s29  ;;  %v697_v28 = vand.u32 31, %v605_v25 }
  0x6a   : > { %vm927_vm12 = vcmp.eq.s32.totalorder %v697_v28, 0 }
  0x6d   : > { %s8297_s18 = smov %s8296_s27 }
  0x9d   : > { %v1044_v36 = vpop.permute.xlu0 %1043 }
  0x9e   : > { %v1046_v35 = vpop.permute.xlu1 %1045  ;;  %v1156_v45 = vsel %vm1155_vm9, %v963_v39, %v1044_v36 }
  0x9f   : > { %v1157_v48 = vsel %vm1155_vm9, %v6662_v8, %v1046_v35 }
  0xa1   : > { %v1108_v42 = vpop.permute.xlu0 %1107 }
  0xa2   : > { %v1110_v41 = vpop.permute.xlu1 %1109  ;;  %5744 = vmatprep.mubr.msk.f32.mxu1 %vm1232_vm7, %v1108_v42  ;;  %v1173_v44 = vsel %vm1172_vm8, %v1044_v36, %v1108_v42 }
  0xa3   : > { %1329 = vmatprep.mubr.f32.mxu0 %v1173_v44  ;;  %5745 = vmatmul.mubr.msk.f32.vlgmr.msra.gmra.mrb[0].mxu1 %vm1232_vm7, %v1110_v41  ;;  %v1174_v62 = vsel %vm1172_vm8, %v1046_v35, %v1110_v41  ;;  %v975_v44 = vsel %vm927_vm12, 0.0, %v6750_v2 }
  0xa4   : > { %1330 = vmatmul.mubr.f32.vlgmr.msra.gmra.mrb[0].mxu0 %v1156_v45 }
  0xa5   : > { %1334 = vmatprep.mubr.f32.mxu0 %v1174_v62  ;;  %v1048_v46 = vpop.permute.xlu0 %1047 }
  0xa6   : > { %v1112_v40 = vpop.permute.xlu1 %1111  ;;  %v1158_v52 = vsel %vm1155_vm9, %v6685_v21, %v1048_v46 }
  0xa7   : > { %5747 = vmatprep.mubr.msk.f32.mxu1 %vm1232_vm7, %v1112_v40  ;;  %v1175_v47 = vsel %vm1172_vm8, %v1048_v46, %v1112_v40 }
  0xa8   : > { %1335 = vmatmul.mubr.f32.gmra.mrb[2].mxu0 %v1157_v48 }
  0xa9   : > { %1339 = vmatprep.mubr.f32.mxu0 %v1175_v47  ;;  %v1050_v54 = vpop.permute.xlu0 %1049 }
  0xaa   : > { %v1114_v51 = vpop.permute.xlu1 %1113  ;;  %v1159_v8 = vsel %vm1155_vm9, %v6694_v26, %v1050_v54 }
  0xab   : > { %5748 = vmatmul.mubr.msk.f32.gmra.mrb[2].mxu1 %vm1232_vm7, %v1114_v51  ;;  %v1176_v55 = vsel %vm1172_vm8, %v1050_v54, %v1114_v51  ;;  %v2372_v54 = vld [vmem:[%s8295_s3] sm:$0xff] }
  0xac   : > { %1340 = vmatmul.mubr.f32.gmra.mrb[4].mxu0 %v1158_v52 }
  0xad   : > { %1344 = vmatprep.mubr.f32.mxu0 %v1176_v55  ;;  %v1052_v57 = vpop.permute.xlu0 %1051  ;;  %v2373_v55 = vld [vmem:[%s8295_s3 + $0x8] sm:$0xff] }
  0xae   : > { %v1116_v56 = vpop.permute.xlu1 %1115  ;;  %v1160_v60 = vsel %vm1155_vm9, %v967_v59, %v1052_v57 }
  0xaf   : > { %5750 = vmatprep.mubr.msk.f32.mxu1 %vm1232_vm7, %v1116_v56  ;;  %v1177_v58 = vsel %vm1172_vm8, %v1052_v57, %v1116_v56  ;;  %v2374_v56 = vld [vmem:[%s8295_s3 + $0x10] sm:$0xff]  ;;  %v2376_v57 = vld [vmem:[%s8295_s3 + $0x20] sm:$0xff] }
  0xb0   : > { %1345 = vmatmul.mubr.f32.gmra.mrb[6].mxu0 %v1159_v8 }
  0xb1   : > { %1349 = vmatprep.mubr.f32.mxu0 %v1177_v58  ;;  %v1054_v61 = vpop.permute.xlu0 %1053  ;;  %v2377_v58 = vld [vmem:[%s8295_s3 + $0x28] sm:$0xff] }
  0xb2   : > { %v1118_v21 = vpop.permute.xlu1 %1117  ;;  %v1161_v3 = vsel %vm1155_vm9, %v6700_v32, %v1054_v61  ;;  %v6053_v59 = vpack.c.bf16 %v2377_v58, %v2376_v57 }
  0xb3   : > { %5751 = vmatmul.mubr.msk.f32.gmra.mrb[4].mxu1 %vm1232_vm7, %v1118_v21  ;;  %v1178_v0 = vsel %vm1172_vm8, %v1054_v61, %v1118_v21  ;;  %v2378_v21 = vld [vmem:[%s8295_s3 + $0x30] sm:$0xff] }
  0xb4   : > { %1350 = vmatmul.mubr.f32.gmra.mrb[8].mxu0 %v1160_v60  ;;  %v2379_v60 = vld [vmem:[%s8295_s3 + $0x38] sm:$0xff] }
  0xb5   : > { %1354 = vmatprep.mubr.f32.mxu0 %v1178_v0  ;;  %v1056_v4 = vpop.permute.xlu0 %1055  ;;  %v6057_v61 = vpack.c.bf16 %v2379_v60, %v2378_v21  ;;  %v2380_v0 = vld [vmem:[%s8295_s3 + $0x40] sm:$0xff] }
  0xb6   : > { %v1120_v26 = vpop.permute.xlu1 %1119  ;;  %v1162_v9 = vsel %vm1155_vm9, %v6703_v33, %v1056_v4 }
  0xb7   : > { %5753 = vmatprep.mubr.msk.f32.mxu1 %vm1232_vm7, %v1120_v26  ;;  %v1179_v27 = vsel %vm1172_vm8, %v1056_v4, %v1120_v26  ;;  %v6061_v26 = vpack.c.bf16 %v2381_v1, %v2380_v0  ;;  %v2383_v4 = vld [vmem:[%s8295_s3 + $0x58] sm:$0xff] }
  0xb8   : > { %1355 = vmatmul.mubr.f32.gmra.mrb[10].mxu0 %v1161_v3  ;;  %v2382_v3 = vld [vmem:[%s8295_s3 + $0x50] sm:$0xff] }
  0xb9   : > { %1359 = vmatprep.mubr.f32.mxu0 %v1179_v27  ;;  %v1058_v10 = vpop.permute.xlu0 %1057  ;;  %v6065_v27 = vpack.c.bf16 %v2383_v4, %v2382_v3 }
  0xba   : > { %v1122_v7 = vpop.permute.xlu1 %1121  ;;  %v1163_v14 = vsel %vm1155_vm9, %v6713_v38, %v1058_v10 }
  0xbb   : > { %5754 = vmatmul.mubr.msk.f32.gmra.mrb[6].mxu1 %vm1232_vm7, %v1122_v7  ;;  %v1180_v13 = vsel %vm1172_vm8, %v1058_v10, %v1122_v7  ;;  %v2385_v7 = vld [vmem:[%s8295_s3 + $0x68] sm:$0xff]  ;;  %v2386_v10 = vld [vmem:[%s8295_s3 + $0x70] sm:$0xff] }
  0xbc   : > { %1360 = vmatmul.mubr.f32.gmra.mrb[12].mxu0 %v1162_v9  ;;  %v6069_v9 = vpack.c.bf16 %v2385_v7, %v2384_v6 }
  0xbd   : > { %1364 = vmatprep.mubr.f32.mxu0 %v1180_v13  ;;  %v1060_v15 = vpop.permute.xlu0 %1059  ;;  %v2387_v13 = vld [vmem:[%s8295_s3 + $0x78] sm:$0xff] }
  0xbe   : > { %v1124_v32 = vpop.permute.xlu1 %1123  ;;  %v1164_v20 = vsel %vm1155_vm9, %v971_v18, %v1060_v15 }
  0xbf   : > { %5756 = vmatprep.mubr.msk.f32.mxu1 %vm1232_vm7, %v1124_v32  ;;  %v1181_v16 = vsel %vm1172_vm8, %v1060_v15, %v1124_v32  ;;  %v6073_v32 = vpack.c.bf16 %v2387_v13, %v2386_v10 }
  0xc0   : > { %1365 = vmatmul.mubr.f32.gmra.mrb[14].mxu0 %v1163_v14  ;;  %v6353_v14 = vmov 1983009808  }
  0xc1   : > { %1369 = vmatprep.mubr.f32.mxu0 %v1181_v16  ;;  %v1062_v22 = vpop.permute.xlu0 %1061  ;;  %v1589_v15 = vunpack.c.l.s4 %v6353_v14 }
  0xc2   : > { %v1126_v33 = vpop.permute.xlu1 %1125  ;;  %v1165_v30 = vsel %vm1155_vm9, %v6729_v49, %v1062_v22 }
  0xc3   : > { %5757 = vmatmul.mubr.msk.f32.gmra.mrb[8].mxu1 %vm1232_vm7, %v1126_v33  ;;  %v1182_v24 = vsel %vm1172_vm8, %v1062_v22, %v1126_v33  ;;  %v6906_v22 = vld [vmem:[%s8296_s27] ss:$0 sm:$0xff] }
  0xc4   : > { %1370 = vmatmul.mubr.f32.gmra.mrb[16].mxu0 %v1164_v20 }
  0xc5   : > { %1374 = vmatprep.mubr.f32.mxu0 %v1182_v24  ;;  %v1064_v31 = vpop.permute.xlu0 %1063  ;;  %v1590_v24 = vunpack.c.0.s8 %v1589_v15 }
  0xc6   : > { %v1128_v38 = vpop.permute.xlu1 %1127  ;;  %v1166_v35 = vsel %vm1155_vm9, %v6737_v53, %v1064_v31 }
  0xc7   : > { %5759 = vmatprep.mubr.msk.f32.mxu1 %vm1232_vm7, %v1128_v38  ;;  %v1183_v43 = vsel %vm1172_vm8, %v1064_v31, %v1128_v38 }
  0xc8   : > { %1375 = vmatmul.mubr.f32.gmra.mrb[18].mxu0 %v1165_v30 }
  0xc9   : > { %1379 = vmatprep.mubr.f32.mxu0 %v1183_v43  ;;  %v1066_v36 = vpop.permute.xlu0 %1065  ;;  %v6910_v43 = vsub.s32 %v1590_v24, %v6517_v5 }
  0xca   : > { %v1130_v34 = vpop.permute.xlu1 %1129  ;;  %v1167_v39 = vsel %vm1155_vm9, %v6744_v63, %v1066_v36 }
  0xcb   : > { %5760 = vmatmul.mubr.msk.f32.gmra.mrb[10].mxu1 %vm1232_vm7, %v1130_v34  ;;  %v1184_v37 = vsel %vm1172_vm8, %v1066_v36, %v1130_v34 }
  0xcc   : > { %1380 = vmatmul.mubr.f32.gmra.mrb[20].mxu0 %v1166_v35 }
  0xcd   : > { %1384 = vmatprep.mubr.f32.mxu0 %v1184_v37  ;;  %v1068_v41 = vpop.permute.xlu0 %1067 }
  0xce   : > { %v1132_v49 = vpop.permute.xlu1 %1131  ;;  %v1168_v45 = vsel %vm1155_vm9, %v975_v44, %v1068_v41 }
  0xcf   : > { %5762 = vmatprep.mubr.msk.f32.mxu1 %vm1232_vm7, %v1132_v49  ;;  %v1185_v42 = vsel %vm1172_vm8, %v1068_v41, %v1132_v49 }
  0xd0   : > { %1385 = vmatmul.mubr.f32.gmra.mrb[22].mxu0 %v1167_v39 }
  0xd1   : > { %1389 = vmatprep.mubr.f32.mxu0 %v1185_v42  ;;  %v1070_v62 = vpop.permute.xlu0 %1069 }
  0xd2   : > { %v1134_v53 = vpop.permute.xlu1 %1133  ;;  %v1169_v46 = vsel %vm1155_vm9, %v6758_v12, %v1070_v62 }
  0xd3   : > { %5763 = vmatmul.mubr.msk.f32.gmra.mrb[12].mxu1 %vm1232_vm7, %v1134_v53  ;;  %v1186_v40 = vsel %vm1172_vm8, %v1070_v62, %v1134_v53 }
  0xd4   : > { %1390 = vmatmul.mubr.f32.gmra.mrb[24].mxu0 %v1168_v45 }
  0xd5   : > { %1394 = vmatprep.mubr.f32.mxu0 %v1186_v40  ;;  %v1072_v47 = vpop.permute.xlu0 %1071 }
  0xd6   : > { %v1136_v63 = vpop.permute.xlu1 %1135  ;;  %v1170_v50 = vsel %vm1155_vm9, %v6766_v19, %v1072_v47  ;;  %v6045_v19 = vpack.c.bf16 %v2373_v55, %v2372_v54 }
  0xd7   : > { %5765 = vmatprep.mubr.msk.f32.mxu1 %vm1232_vm7, %v1136_v63  ;;  %v1187_v2 = vsel %vm1172_vm8, %v1072_v47, %v1136_v63 }
  0xd8   : > { %1395 = vmatmul.mubr.f32.gmra.mrb[26].mxu0 %v1169_v46  ;;  %6046 = vmatprep.subr.bf16.mxu1 %v6045_v19 }
  0xd9   : > { %1399 = vmatprep.mubr.f32.mxu0 %v1187_v2  ;;  %v1074_v51 = vpop.permute.xlu0 %1073  ;;  %6048 = vmatpush3.bf16.msra.mxu1 %v6045_v19 }
  0xda   : > { %v1138_v48 = vpop.permute.xlu1 %1137  ;;  %v1171_v12 = vsel %vm1155_vm9, %v6772_v29, %v1074_v51  ;;  %v2375_v29 = vld [vmem:[%s8295_s3 + $0x18] sm:$0xff] }
  0xdb   : > { %5766 = vmatmul.mubr.msk.f32.gmra.mrb[14].mxu1 %vm1232_vm7, %v1138_v48  ;;  %v1188_v52 = vsel %vm1172_vm8, %v1074_v51, %v1138_v48  ;;  %v6049_v8 = vpack.c.bf16 %v2375_v29, %v2374_v56 }
  0xdc   : > { %1400 = vmatmul.mubr.f32.gmra.mrb[28].mxu0 %v1170_v50 }
  0xdd   : > { %1404 = vmatprep.mubr.f32.mxu0 %v1188_v52  ;;  %6050 = vmatprep.subr.bf16.mxu1 %v6049_v8 }
  0xde   : > { %6052 = vmatpush3.bf16.msra.mxu1 %v6049_v8 }
  0xdf   : > { %6054 = vmatprep.subr.bf16.mxu1 %v6053_v59 }
  0xe0   : > { %1405 = vmatmul.mubr.f32.gmra.mrb[30].mxu0 %v1171_v12 }
  0xe2   : > { %6056 = vmatpush3.bf16.msra.mxu1 %v6053_v59 }
  0xe3   : > { %6058 = vmatprep.subr.bf16.mxu1 %v6057_v61 }
  0xe6   : > { %6060 = vmatpush3.bf16.msra.mxu1 %v6057_v61 }
  0xe7   : > { %6062 = vmatprep.subr.bf16.mxu1 %v6061_v26 }
  0xea   : > { %6064 = vmatpush3.bf16.msra.mxu1 %v6061_v26 }
  0xeb   : > { %6066 = vmatprep.subr.bf16.mxu1 %v6065_v27 }
  0xee   : > { %6068 = vmatpush3.bf16.msra.mxu1 %v6065_v27 }
  0xef   : > { %6070 = vmatprep.subr.bf16.mxu1 %v6069_v9 }
  0xf2   : > { %6072 = vmatpush3.bf16.msra.mxu1 %v6069_v9 }
  0xf3   : > { %6074 = vmatprep.subr.bf16.mxu1 %v6073_v32 }
  0xf6   : > { %6076 = vmatpush3.bf16.msra.mxu1 %v6073_v32 }
 0x176   : > { %v5746_v16 = vpop.f32.mrb[0].mxu1 }
 0x177   : > { %v5544_v18 = vpop.f32.mrb[0].mxu0  ;;  %v1476_v33 = vpop.f32.mrb[1].mxu1 }
 0x178   : > { %v5545_v20 = vpop.f32.mrb[1].mxu0 }
 0x179   : > { %v5546_v25 = vadd.f32 %v5545_v20, %v5544_v18 }
 0x17b   : > { %v1332_v38 = vadd.f32 %v5546_v25, %v6906_v22  ;;  %v5547_v30 = vpop.f32.mrb[2].mxu0 }
 0x17c   : > { %v5548_v31 = vpop.f32.mrb[3].mxu0 }
 0x17d   : > { %v1477_v28 = vadd.f32 %v1476_v33, %v1332_v38  ;;  %v5549_v34 = vadd.f32 %v5548_v31, %v5547_v30 }
 0x17e   : > { %v6912_v35 = vpop.f32.mrb[2].mxu1 }
 0x17f   : > { %v1486_v36 = vpop.f32.mrb[3].mxu1  ;;  %v1555_v37 = vmax.f32 %v1477_v28, 0.0  ;;  %v1337_v49 = vadd.f32 %v5549_v34, %v6906_v22  ;;  %v5550_v39 = vpop.f32.mrb[4].mxu0 }
 0x180   : > { %v5551_v41 = vpop.f32.mrb[5].mxu0 }
 0x181   : > { %v1587_v42 = vcombine.high %v1555_v37, %v1555_v37  ;;  %v1594_v44 = vrot.slane %v1555_v37, %v6910_v43  ;;  %v1482_v53 = vadd.f32 %v5746_v16, %v1337_v49  ;;  %v5552_v45 = vadd.f32 %v5551_v41, %v5550_v39 }
 0x183   : > { %v1601_v62 = vrot.slane %v1587_v42, %v6910_v43  ;;  %v1602_v40 = vcombine.high %v1594_v44, %v1594_v44  ;;  %v1924_v63 = vsel %vm1923_vm13, %v1594_v44, -inf  ;;  %v1556_v46 = vmax.f32 %v1482_v53, 0.0  ;;  %v5553_v47 = vpop.f32.mrb[6].mxu0 }
 0x184   : > { %v1925_v2 = vrot.slane %v1924_v63, 4  ;;  %v1342_v48 = vadd.f32 %v5552_v45, %v6906_v22  ;;  %v5554_v50 = vpop.f32.mrb[7].mxu0 }
 0x185   : > { %v1603_v51 = vcombine.high %v1601_v62, %v1601_v62  ;;  %v1931_v52 = vsel %vm1923_vm13, %v1602_v40, -inf  ;;  %v1938_v12 = vsel %vm1923_vm13, %v1601_v62, -inf  ;;  %v1604_v54 = vcombine.high %v1556_v46, %v1556_v46 }
 0x186   : > { %v6921_v55 = vpop.f32.mrb[4].mxu1  ;;  %v1926_v19 = vmax.f32 %v1924_v63, %v1925_v2  ;;  %v1932_v56 = vrot.slane %v1931_v52, 4  ;;  %v1939_v29 = vrot.slane %v1938_v12, 4  ;;  %v1611_v8 = vrot.slane %v1556_v46, %v6910_v43 }
 0x187   : > { %v6924_v57 = vpop.f32.mrb[5].mxu1  ;;  %v1945_v58 = vsel %vm1923_vm13, %v1603_v51, -inf  ;;  %v6928_v59 = vrot.slane %v1604_v54, %v6910_v43  ;;  %v1487_v21 = vadd.f32 %v1486_v36, %v1342_v48  ;;  %v5555_v60 = vadd.f32 %v5554_v50, %v5553_v47  ;;  %v5556_v61 = vpop.f32.mrb[8].mxu0 }
 0x188   : > { %v1927_v0 = vrot.slane %v1926_v19, 2  ;;  %v1933_v1 = vmax.f32 %v1931_v52, %v1932_v56  ;;  %v1940_v26 = vmax.f32 %v1938_v12, %v1939_v29  ;;  %v1946_v3 = vrot.slane %v1945_v58, 4  ;;  %v5557_v4 = vpop.f32.mrb[9].mxu0 }
 0x189   : > { %v1619_v27 = vcombine.high %v1611_v8, %v1611_v8  ;;  %v1952_v7 = vsel %vm1923_vm13, %v1611_v8, -inf  ;;  %v1966_v9 = vsel %vm1923_vm13, %v6928_v59, -inf  ;;  %v1557_v33 = vmax.f32 %v1487_v21, 0.0 }
 0x18a   : > { %v1928_v10 = vmax.f32 %v1926_v19, %v1927_v0  ;;  %v1934_v13 = vrot.slane %v1933_v1, 2  ;;  %v1941_v32 = vrot.slane %v1940_v26, 2  ;;  %v1947_v14 = vmax.f32 %v1945_v58, %v1946_v3 }
 0x18b   : > { %v1953_v15 = vrot.slane %v1952_v7, 4  ;;  %v1959_v16 = vsel %vm1923_vm13, %v1619_v27, -inf  ;;  %v1967_v18 = vrot.slane %v1966_v9, 4  ;;  %v5559_v20 = vpop.f32.mrb[10].mxu0  ;;  %v1621_v37 = vcombine.high %v1557_v33, %v1557_v33 }
 0x18c   : > { %v1929_v24 = vrot.slane %v1928_v10, 1  ;;  %v1935_v25 = vmax.f32 %v1933_v1, %v1934_v13  ;;  %v1942_v38 = vmax.f32 %v1940_v26, %v1941_v32  ;;  %v1948_v30 = vrot.slane %v1947_v14, 2  ;;  %v5560_v31 = vpop.f32.mrb[11].mxu0 }
 0x18d   : > { %v1954_v28 = vmax.f32 %v1952_v7, %v1953_v15  ;;  %v1960_v34 = vrot.slane %v1959_v16, 4  ;;  %v6936_v36 = vmax.f32 %v1966_v9, %v1967_v18  ;;  %v1628_v40 = vrot.slane %v1557_v33, %v6910_v43 }
 0x18e   : > { %v6938_v49 = vpop.f32.mrb[6].mxu1  ;;  %v1930_v39 = vmax.f32 %v1928_v10, %v1929_v24  ;;  %v1936_v41 = vrot.slane %v1935_v25, 1  ;;  %v1943_v42 = vrot.slane %v1942_v38, 1  ;;  %v1949_v44 = vmax.f32 %v1947_v14, %v1948_v30 }
 0x18f   : > { %v6940_v53 = vpop.f32.mrb[7].mxu1  ;;  %v1955_v45 = vrot.slane %v1954_v28, 2  ;;  %v6942_v62 = vmax.f32 %v1959_v16, %v1960_v34  ;;  %v1635_v63 = vrot.slane %v1621_v37, %v6910_v43  ;;  %v5562_v46 = vpop.f32.mrb[12].mxu0  ;;  %v1347_v50 = vadd.f32 %v5555_v60, %v6906_v22 }
 0x190   : > { %v1937_v47 = vmax.f32 %v1935_v25, %v1936_v41  ;;  %v6946_v2 = vmax.f32 %v1942_v38, %v1943_v42  ;;  %v1950_v48 = vrot.slane %v1949_v44, 1  ;;  %v5563_v51 = vpop.f32.mrb[13].mxu0  ;;  %v1636_v54 = vcombine.high %v1628_v40, %v1628_v40 }
 0x191   : > { %v6949_v52 = vmax.f32 %v1954_v28, %v1955_v45  ;;  %v1637_v19 = vcombine.high %v1635_v63, %v1635_v63  ;;  %v1980_v8 = vsel %vm1923_vm13, %v1628_v40, -inf  ;;  %v1994_v58 = vsel %vm1923_vm13, %v1635_v63, -inf }
 0x192   : > { %v6952_v56 = vmax.f32 %v1949_v44, %v1950_v48  ;;  %v6955_v29 = vsel %vm2452_vm14, %v1937_v47, %v1930_v39  ;;  %v1981_v0 = vrot.slane %v1980_v8, 4  ;;  %v1987_v60 = vsel %vm1923_vm13, %v1636_v54, -inf }
 0x193   : > { %v1995_v1 = vrot.slane %v1994_v58, 4  ;;  %v6961_v26 = vpop.f32.mrb[14].mxu0  ;;  %v1988_v3 = vrot.slane %v1987_v60, 4  ;;  %v2001_v27 = vsel %vm1923_vm13, %v1637_v19, -inf  ;;  %v1492_v7 = vadd.f32 %v6912_v35, %v1347_v50 }
 0x194   : > { %v5558_v9 = vadd.f32 %v5557_v4, %v5556_v61  ;;  %v6965_v10 = vpop.f32.mrb[15].mxu0  ;;  %v1982_v13 = vmax.f32 %v1980_v8, %v1981_v0  ;;  %v2002_v14 = vrot.slane %v2001_v27, 4  ;;  %v5561_v15 = vadd.f32 %v5560_v31, %v5559_v20 }
 0x195   : > { %v1996_v32 = vmax.f32 %v1994_v58, %v1995_v1  ;;  %v1989_v18 = vmax.f32 %v1987_v60, %v1988_v3  ;;  %v1558_v33 = vmax.f32 %v1492_v7, 0.0  ;;  %v5564_v25 = vadd.f32 %v5563_v51, %v5562_v46 }
 0x196   : > { %v6967_v16 = vpop.f32.mrb[8].mxu1  ;;  %v1352_v24 = vadd.f32 %v5558_v9, %v6906_v22  ;;  %v1983_v30 = vrot.slane %v1982_v13, 2  ;;  %v2003_v34 = vmax.f32 %v2001_v27, %v2002_v14  ;;  %v1357_v35 = vadd.f32 %v5561_v15, %v6906_v22 }
 0x197   : > { %v6970_v38 = vpop.f32.mrb[9].mxu1  ;;  %v1997_v28 = vrot.slane %v1996_v32, 2  ;;  %v6973_v61 = vpop.f32.mrb[16].mxu0  ;;  %v1990_v4 = vrot.slane %v1989_v18, 2  ;;  %v1638_v37 = vcombine.high %v1558_v33, %v1558_v33  ;;  %v1645_v20 = vrot.slane %v1558_v33, %v6910_v43 }
 0x198   : > { %v1497_v31 = vadd.f32 %v6924_v57, %v1352_v24  ;;  %v6977_v39 = vpop.f32.mrb[17].mxu0  ;;  %v1984_v41 = vmax.f32 %v1982_v13, %v1983_v30  ;;  %v2004_v44 = vrot.slane %v2003_v34, 2  ;;  %v1502_v45 = vadd.f32 %v6921_v55, %v1357_v35 }
 0x199   : > { %v1998_v42 = vmax.f32 %v1996_v32, %v1997_v28  ;;  %v1991_v40 = vmax.f32 %v1989_v18, %v1990_v4  ;;  %v1652_v63 = vrot.slane %v1638_v37, %v6910_v43  ;;  %v1653_v46 = vcombine.high %v1645_v20, %v1645_v20 }
 0x19a   : > { %v2008_v47 = vsel %vm1923_vm13, %v1645_v20, -inf  ;;  %v1985_v48 = vrot.slane %v1984_v41, 1  ;;  %v2005_v51 = vmax.f32 %v2003_v34, %v2004_v44  ;;  %v1559_v30 = vmax.f32 %v1497_v31, 0.0 }
 0x19b   : > { %v1999_v50 = vrot.slane %v1998_v42, 1  ;;  %v2009_v54 = vrot.slane %v2008_v47, 4  ;;  %v6982_v19 = vpop.f32.mrb[18].mxu0  ;;  %v1992_v57 = vrot.slane %v1991_v40, 1  ;;  %v1654_v8 = vcombine.high %v1652_v63, %v1652_v63 }
 0x19c   : > { %v2015_v58 = vsel %vm1923_vm13, %v1653_v46, -inf  ;;  %v2022_v0 = vsel %vm1923_vm13, %v1652_v63, -inf  ;;  %v6986_v60 = vpop.f32.mrb[19].mxu0  ;;  %v1986_v55 = vmax.f32 %v1984_v41, %v1985_v48  ;;  %v2006_v3 = vrot.slane %v2005_v51, 1 }
 0x19d   : > { %v2000_v1 = vmax.f32 %v1998_v42, %v1999_v50  ;;  %v2010_v27 = vmax.f32 %v2008_v47, %v2009_v54  ;;  %v1993_v9 = vmax.f32 %v1991_v40, %v1992_v57  ;;  %v2016_v13 = vrot.slane %v2015_v58, 4 }
 0x19e   : > { %v6988_v7 = vpop.f32.mrb[10].mxu1  ;;  %v2023_v32 = vrot.slane %v2022_v0, 4  ;;  %v2029_v14 = vsel %vm1923_vm13, %v1654_v8, -inf  ;;  %v6993_v18 = vmax.f32 %v2005_v51, %v2006_v3  ;;  %v1560_v37 = vmax.f32 %v1502_v45, 0.0 }
 0x19f   : > { %v6991_v15 = vpop.f32.mrb[11].mxu1  ;;  %v2011_v33 = vrot.slane %v2010_v27, 2  ;;  %v2030_v24 = vrot.slane %v2029_v14, 4  ;;  %v6995_v28 = vpop.f32.mrb[20].mxu0  ;;  %v2466_v34 = vsel %vm2452_vm14, %v1993_v9, %v1986_v55  ;;  %v2017_v35 = vmax.f32 %v2015_v58, %v2016_v13 }
 0x1a0   : > { %v2024_v4 = vmax.f32 %v2022_v0, %v2023_v32  ;;  %v6998_v20 = vpop.f32.mrb[21].mxu0  ;;  %v7001_v41 = vsel %vm2454_vm15, %v2000_v1, %v2466_v34  ;;  %v1655_v40 = vcombine.high %v1559_v30, %v1559_v30  ;;  %v1662_v31 = vrot.slane %v1559_v30, %v6910_v43 }
 0x1a1   : > { %v2012_v42 = vmax.f32 %v2010_v27, %v2011_v33  ;;  %v7003_v44 = vmax.f32 %v2029_v14, %v2030_v24  ;;  %v2018_v63 = vrot.slane %v2017_v35, 2  ;;  %v1672_v47 = vcombine.high %v1560_v37, %v1560_v37 }
 0x1a2   : > { %v2025_v46 = vrot.slane %v2024_v4, 2  ;;  %v1669_v50 = vrot.slane %v1655_v40, %v6910_v43  ;;  %v1679_v51 = vrot.slane %v1560_v37, %v6910_v43  ;;  %v1362_v45 = vadd.f32 %v5564_v25, %v6906_v22 }
 0x1a3   : > { %v2013_v48 = vrot.slane %v2012_v42, 1  ;;  %v7009_v54 = vpop.f32.mrb[22].mxu0  ;;  %v7011_v57 = vmax.f32 %v2017_v35, %v2018_v63  ;;  %v1670_v58 = vcombine.high %v1662_v31, %v1662_v31  ;;  %v2036_v0 = vsel %vm1923_vm13, %v1662_v31, -inf }
 0x1a4   : > { %v7013_v8 = vmax.f32 %v2024_v4, %v2025_v46  ;;  %v7016_v55 = vpop.f32.mrb[23].mxu0  ;;  %v1671_v3 = vcombine.high %v1669_v50, %v1669_v50  ;;  %v2037_v27 = vrot.slane %v2036_v0, 4  ;;  %v2050_v9 = vsel %vm1923_vm13, %v1669_v50, -inf }
 0x1a5   : > { %v7018_v1 = vmax.f32 %v2012_v42, %v2013_v48  ;;  %v2043_v32 = vsel %vm1923_vm13, %v1670_v58, -inf  ;;  %v2051_v14 = vrot.slane %v2050_v9, 4  ;;  %v7026_v33 = vrot.slane %v1672_v47, %v6910_v43 }
 0x1a6   : > { %v7021_v13 = vpop.f32.mrb[12].mxu1  ;;  %v2038_v30 = vmax.f32 %v2036_v0, %v2037_v27  ;;  %v2044_v34 = vrot.slane %v2043_v32, 4  ;;  %v2057_v35 = vsel %vm1923_vm13, %v1671_v3, -inf  ;;  %v1687_v4 = vcombine.high %v1679_v51, %v1679_v51 }
 0x1a7   : > { %8298 = vst [vmem:[#allocation15_spill] sm:$0xff] %v7021_v13  ;;  %v7028_v24 = vpop.f32.mrb[13].mxu1  ;;  %v7031_v37 = vpop.f32.mrb[24].mxu0  ;;  %v2052_v42 = vmax.f32 %v2050_v9, %v2051_v14  ;;  %v2058_v40 = vrot.slane %v2057_v35, 4  ;;  %v2064_v46 = vsel %vm1923_vm13, %v1679_v51, -inf  ;;  %v2078_v25 = vsel %vm1923_vm13, %v7026_v33, -inf }
 0x1a8   : > { %v7036_v31 = vpop.f32.mrb[25].mxu0  ;;  %v2039_v47 = vrot.slane %v2038_v30, 2  ;;  %v2045_v48 = vmax.f32 %v2043_v32, %v2044_v34  ;;  %v2065_v50 = vrot.slane %v2064_v46, 4  ;;  %v2071_v58 = vsel %vm1923_vm13, %v1687_v4, -inf }
 0x1a9   : > { %v2053_v0 = vrot.slane %v2052_v42, 2  ;;  %v2059_v27 = vmax.f32 %v2057_v35, %v2058_v40  ;;  %v2072_v3 = vrot.slane %v2071_v58, 4  ;;  %v2079_v12 = vrot.slane %v2078_v25, 4 }
 0x1aa   : > { %v2040_v9 = vmax.f32 %v2038_v30, %v2039_v47  ;;  %v2046_v14 = vrot.slane %v2045_v48, 2  ;;  %v2066_v6 = vmax.f32 %v2064_v46, %v2065_v50  ;;  %v1507_v32 = vadd.f32 %v6940_v53, %v1362_v45 }
 0x1ab   : > { %v7041_v63 = vpop.f32.mrb[26].mxu0  ;;  %v2054_v51 = vmax.f32 %v2052_v42, %v2053_v0  ;;  %v2060_v21 = vrot.slane %v2059_v27, 2  ;;  %v7043_v11 = vmax.f32 %v2071_v58, %v2072_v3  ;;  %v7048_v23 = vmax.f32 %v2078_v25, %v2079_v12 }
 0x1ac   : > { %v7046_v34 = vpop.f32.mrb[27].mxu0  ;;  %v2041_v4 = vrot.slane %v2040_v9, 1  ;;  %v2047_v35 = vmax.f32 %v2045_v48, %v2046_v14  ;;  %v2067_v40 = vrot.slane %v2066_v6, 2  ;;  %v1561_v50 = vmax.f32 %v1507_v32, 0.0 }
 0x1ad   : > { %8299 = vst [vmem:[#allocation16_spill] sm:$0xff] %v7046_v34  ;;  %v2055_v30 = vrot.slane %v2054_v51, 1  ;;  %v2061_v46 = vmax.f32 %v2059_v27, %v2060_v21  ;;  %v5567_v53 = vadd.f32 %v6965_v10, %v6961_v26  ;;  %v8307_v47 = vrot.slane %v6942_v62, 2 }
 0x1ae   : > { %v7050_v17 = vpop.f32.mrb[14].mxu1  ;;  %v2042_v58 = vmax.f32 %v2040_v9, %v2041_v4  ;;  %v2048_v0 = vrot.slane %v2047_v35, 1  ;;  %v7055_v3 = vmax.f32 %v2066_v6, %v2067_v40  ;;  %v1689_v48 = vcombine.high %v1561_v50, %v1561_v50 }
 0x1af   : > { %8300 = vst [vmem:[#allocation17_spill] sm:$0xff] %v7050_v17  ;;  %v7053_v42 = vpop.f32.mrb[15].mxu1  ;;  %v7059_v45 = vpop.f32.mrb[28].mxu0  ;;  %v7061_v12 = vmax.f32 %v2054_v51, %v2055_v30  ;;  %v2062_v25 = vrot.slane %v2061_v46, 1  ;;  %v1696_v21 = vrot.slane %v1561_v50, %v6910_v43  ;;  %v1367_v9 = vadd.f32 %v5567_v53, %v6906_v22 }
 0x1b0   : > { %8301 = vst [vmem:[#allocation18_spill] sm:$0xff] %v7053_v42  ;;  %8302 = vst [vmem:[#allocation19_spill] sm:$0xff] %v7059_v45  ;;  %v7064_v27 = vpop.f32.mrb[29].mxu0  ;;  %v2049_v14 = vmax.f32 %v2047_v35, %v2048_v0  ;;  %v5570_v6 = vadd.f32 %v6977_v39, %v6973_v61  ;;  %v1703_v26 = vrot.slane %v1689_v48, %v6910_v43 }
 0x1b1   : > { %8303 = vst [vmem:[#allocation20_spill] sm:$0xff] %v7064_v27  ;;  %v7070_v4 = vmax.f32 %v2061_v46, %v2062_v25  ;;  %v1704_v10 = vcombine.high %v1696_v21, %v1696_v21  ;;  %v2092_v51 = vsel %vm1923_vm13, %v1696_v21, -inf  ;;  %v1512_v35 = vadd.f32 %v6938_v49, %v1367_v9 }
 0x1b2   : > { %v7075_v40 = vsel %vm2452_vm14, %v2049_v14, %v2042_v58  ;;  %v2093_v30 = vrot.slane %v2092_v51, 4  ;;  %v1372_v50 = vadd.f32 %v5570_v6, %v6906_v22  ;;  %v1705_v53 = vcombine.high %v1703_v26, %v1703_v26 }
 0x1b3   : > { %v7079_v0 = vpop.f32.mrb[30].mxu0  ;;  %v2099_v61 = vsel %vm1923_vm13, %v1704_v10, -inf  ;;  %v2106_v39 = vsel %vm1923_vm13, %v1703_v26, -inf  ;;  %v8305_v46 = vrot.slane %v6949_v52, 1  ;;  %v1562_v49 = vmax.f32 %v1512_v35, 0.0 }
 0x1b4   : > { %8304 = vst [vmem:[#allocation21_spill] sm:$0xff] %v7079_v0  ;;  %v7088_v48 = vpop.f32.mrb[31].mxu0  ;;  %v2094_v58 = vmax.f32 %v2092_v51, %v2093_v30  ;;  %v2100_v21 = vrot.slane %v2099_v61, 4  ;;  %v2107_v14 = vrot.slane %v2106_v39, 4  ;;  %v2113_v9 = vsel %vm1923_vm13, %v1705_v53, -inf }
 0x1b5   : > { %v7086_v25 = vmax.f32 %v6949_v52, %v8305_v46  ;;  %8306 = vst [vmem:[#allocation22_spill] sm:$0xff] %v7088_v48  ;;  %v1517_v6 = vadd.f32 %v6970_v38, %v1372_v50  ;;  %v1963_v10 = vmax.f32 %v6942_v62, %v8307_v47  ;;  %v1969_v26 = vrot.slane %v6936_v36, 2 }
 0x1b6   : > { %v2095_v32 = vrot.slane %v2094_v58, 2  ;;  %v2101_v5 = vmax.f32 %v2099_v61, %v2100_v21  ;;  %v2108_v52 = vmax.f32 %v2106_v39, %v2107_v14  ;;  %v2114_v46 = vrot.slane %v2113_v9, 4 }
 0x1b7   : > { %v1706_v17 = vcombine.high %v1562_v49, %v1562_v49  ;;  %v1713_v51 = vrot.slane %v1562_v49, %v6910_v43  ;;  %v1563_v30 = vmax.f32 %v1517_v6, 0.0  ;;  %v1964_v48 = vrot.slane %v1963_v10, 1 }
 0x1b8   : > { %v2096_v35 = vmax.f32 %v2094_v58, %v2095_v32  ;;  %v2102_v0 = vrot.slane %v2101_v5, 2  ;;  %v2109_v53 = vrot.slane %v2108_v52, 2  ;;  %v2115_v42 = vmax.f32 %v2113_v9, %v2114_v46 }
 0x1b9   : > { %v7098_v38 = vrot.slane %v1706_v17, %v6910_v43  ;;  %v1721_v50 = vcombine.high %v1713_v51, %v1713_v51  ;;  %v2120_v62 = vsel %vm1923_vm13, %v1713_v51, -inf  ;;  %v1723_v47 = vcombine.high %v1563_v30, %v1563_v30 }
 0x1ba   : > { %v2097_v27 = vrot.slane %v2096_v35, 1  ;;  %v2103_v61 = vmax.f32 %v2101_v5, %v2102_v0  ;;  %v2110_v39 = vmax.f32 %v2108_v52, %v2109_v53  ;;  %v2116_v21 = vrot.slane %v2115_v42, 2 }
 0x1bb   : > { %8308 = vst [vmem:[#allocation23_spill] sm:$0xff] %v7098_v38  ;;  %v2121_v49 = vrot.slane %v2120_v62, 4  ;;  %v2127_v32 = vsel %vm1923_vm13, %v1721_v50, -inf  ;;  %v2134_v58 = vsel %vm1923_vm13, %v7098_v38, -inf  ;;  %v1730_v5 = vrot.slane %v1563_v30, %v6910_v43 }
 0x1bc   : > { %v2098_v17 = vmax.f32 %v2096_v35, %v2097_v27  ;;  %v2104_v9 = vrot.slane %v2103_v61, 1  ;;  %v2111_v6 = vrot.slane %v2110_v39, 1  ;;  %v2117_v46 = vmax.f32 %v2115_v42, %v2116_v21 }
 0x1bd   : > { %v2122_v51 = vmax.f32 %v2120_v62, %v2121_v49  ;;  %v2128_v45 = vrot.slane %v2127_v32, 4  ;;  %v2135_v13 = vrot.slane %v2134_v58, 4  ;;  %v1737_v50 = vrot.slane %v1723_v47, %v6910_v43 }
 0x1be   : > { %v2105_v0 = vmax.f32 %v2103_v61, %v2104_v9  ;;  %v7107_v52 = vmax.f32 %v2110_v39, %v2111_v6  ;;  %v2118_v53 = vrot.slane %v2117_v46, 1  ;;  %v1738_v27 = vcombine.high %v1730_v5, %v1730_v5 }
 0x1bf   : > { %v2123_v14 = vrot.slane %v2122_v51, 2  ;;  %v7110_v34 = vmax.f32 %v2127_v32, %v2128_v45  ;;  %v7112_v38 = vmax.f32 %v2134_v58, %v2135_v13  ;;  %v1739_v30 = vcombine.high %v1737_v50, %v1737_v50 }
 0x1c0   : > { %v7114_v42 = vmax.f32 %v2117_v46, %v2118_v53  ;;  %v7117_v35 = vsel %vm2452_vm14, %v2105_v0, %v2098_v17  ;;  %v2148_v62 = vsel %vm1923_vm13, %v1730_v5, -inf  ;;  %v2155_v45 = vsel %vm1923_vm13, %v1738_v27, -inf }
 0x1c1   : > { %v7120_v61 = vmax.f32 %v2122_v51, %v2123_v14  ;;  %v2130_v39 = vrot.slane %v7110_v34, 2  ;;  %v2149_v47 = vrot.slane %v2148_v62, 4  ;;  %v2156_v13 = vrot.slane %v2155_v45, 4 }
 0x1c2   : > { %v2162_v21 = vsel %vm1923_vm13, %v1737_v50, -inf  ;;  %v2169_v49 = vsel %vm1923_vm13, %v1739_v30, -inf  ;;  %v1965_v32 = vmax.f32 %v1963_v10, %v1964_v48  ;;  %v1970_v14 = vmax.f32 %v6936_v36, %v1969_v26 }
 0x1c3   : > { %v2125_v58 = vrot.slane %v7120_v61, 1  ;;  %v2150_v17 = vmax.f32 %v2148_v62, %v2149_v47  ;;  %v2163_v9 = vrot.slane %v2162_v21, 4  ;;  %v2170_v6 = vrot.slane %v2169_v49, 4 }
 0x1c4   : > { %v2157_v46 = vmax.f32 %v2155_v45, %v2156_v13  ;;  %v8309_v51 = vcombine.high %v6928_v59, %v6928_v59  ;;  %v2455_v0 = vsel %vm2454_vm15, %v6946_v2, %v6955_v29  ;;  %v1971_v30 = vrot.slane %v1970_v14, 1 }
 0x1c5   : > { %v2151_v53 = vrot.slane %v2150_v17, 2  ;;  %v2164_v50 = vmax.f32 %v2162_v21, %v2163_v9  ;;  %v2171_v48 = vmax.f32 %v2169_v49, %v2170_v6  ;;  %v2457_v62 = vsel %vm2456_vm1, %v6952_v56, %v2455_v0 }
 0x1c6   : > { %v1973_v5 = vsel %vm1923_vm13, %v8309_v51, -inf  ;;  %v2158_v27 = vrot.slane %v2157_v46, 2  ;;  %v5573_v36 = vadd.f32 %v6986_v60, %v6982_v19  ;;  %v1972_v51 = vmax.f32 %v1970_v14, %v1971_v30 }
 0x1c7   : > { %v1974_v10 = vrot.slane %v1973_v5, 4  ;;  %v2152_v59 = vmax.f32 %v2150_v17, %v2151_v53  ;;  %v2165_v26 = vrot.slane %v2164_v50, 2  ;;  %v2172_v47 = vrot.slane %v2171_v48, 2 }
 0x1c8   : > { %v2159_v13 = vmax.f32 %v2157_v46, %v2158_v27  ;;  %v2459_v2 = vsel %vm2458_vm3, %v7086_v25, %v2457_v62  ;;  %v1377_v29 = vadd.f32 %v5573_v36, %v6906_v22  ;;  %v5576_v60 = vadd.f32 %v6998_v20, %v6995_v28 }
 0x1c9   : > { %v1975_v45 = vmax.f32 %v1973_v5, %v1974_v10  ;;  %v2153_v21 = vrot.slane %v2152_v59, 1  ;;  %v2166_v49 = vmax.f32 %v2164_v50, %v2165_v26  ;;  %v2173_v9 = vmax.f32 %v2171_v48, %v2172_v47 }
 0x1ca   : > { %v2160_v56 = vrot.slane %v2159_v13, 1  ;;  %v2461_v0 = vsel %vm2460_vm4, %v1965_v32, %v2459_v2  ;;  %v1522_v19 = vadd.f32 %v6967_v16, %v1377_v29  ;;  %v1382_v50 = vadd.f32 %v5576_v60, %v6906_v22 }
 0x1cb   : > { %v1976_v6 = vrot.slane %v1975_v45, 2  ;;  %v2154_v17 = vmax.f32 %v2152_v59, %v2153_v21  ;;  %v2167_v46 = vrot.slane %v2166_v49, 1  ;;  %v2174_v14 = vrot.slane %v2173_v9, 1 }
 0x1cc   : > { %v2161_v53 = vmax.f32 %v2159_v13, %v2160_v56  ;;  %v2463_v25 = vsel %vm8270_vm5, %v1972_v51, %v2461_v0  ;;  %v1564_v10 = vmax.f32 %v1522_v19, 0.0  ;;  %v8310_v16 = vrot.slane %v7011_v57, 1 }
 0x1cd   : > { %v1977_v5 = vmax.f32 %v1975_v45, %v1976_v6  ;;  %v7148_v48 = vmax.f32 %v2166_v49, %v2167_v46  ;;  %v7150_v27 = vmax.f32 %v2173_v9, %v2174_v14  ;;  %v1527_v36 = vadd.f32 %v6991_v15, %v1382_v50 }
 0x1ce   : > { %v2021_v30 = vmax.f32 %v7011_v57, %v8310_v16  ;;  %v7156_v28 = vsel %vm2452_vm14, %v2161_v53, %v2154_v17  ;;  %v1740_v20 = vcombine.high %v1564_v10, %v1564_v10  ;;  %v1747_v62 = vrot.slane %v1564_v10, %v6910_v43 }
 0x1cf   : > { %v1978_v32 = vrot.slane %v1977_v5, 1  ;;  %v2027_v26 = vrot.slane %v7013_v8, 1  ;;  %v2032_v47 = vrot.slane %v7003_v44, 2  ;;  %v2468_v45 = vsel %vm2456_vm1, %v6993_v18, %v7001_v41 }
 0x1d0   : > { %v7166_v13 = vrot.slane %v1740_v20, %v6910_v43  ;;  %v1755_v57 = vcombine.high %v1747_v62, %v1747_v62  ;;  %v2176_v51 = vsel %vm1923_vm13, %v1747_v62, -inf  ;;  %v1565_v2 = vmax.f32 %v1527_v36, 0.0 }
 0x1d1   : > { %v1979_v59 = vmax.f32 %v1977_v5, %v1978_v32  ;;  %v2177_v15 = vrot.slane %v2176_v51, 4  ;;  %v2028_v21 = vmax.f32 %v7013_v8, %v2027_v26  ;;  %v2033_v49 = vmax.f32 %v7003_v44, %v2032_v47 }
 0x1d2   : > { %v1756_v18 = vcombine.high %v7166_v13, %v7166_v13  ;;  %v2183_v41 = vsel %vm1923_vm13, %v1755_v57, -inf  ;;  %v2190_v9 = vsel %vm1923_vm13, %v7166_v13, -inf  ;;  %v1757_v6 = vcombine.high %v1565_v2, %v1565_v2 }
 0x1d3   : > { %v7170_v29 = vsel %vm8269_vm6, %v1979_v59, %v2463_v25  ;;  %v2178_v56 = vmax.f32 %v2176_v51, %v2177_v15  ;;  %v2184_v0 = vrot.slane %v2183_v41, 4  ;;  %v2191_v19 = vrot.slane %v2190_v9, 4 }
 0x1d4   : > { %5800 = vmatprep.mubr.f32.mxu1 %v7170_v29  ;;  %v1764_v60 = vrot.slane %v1565_v2, %v6910_v43  ;;  %v1771_v8 = vrot.slane %v1757_v6, %v6910_v43  ;;  %v2034_v17 = vrot.slane %v2033_v49, 1  ;;  %v2469_v44 = vsel %vm2458_vm3, %v7018_v1, %v2468_v45 }
 0x1d5   : > { %v5579_v46 = vadd.f32 %v7016_v55, %v7009_v54  ;;  %v2179_v14 = vrot.slane %v2178_v56, 2  ;;  %v7186_v5 = vmax.f32 %v2183_v41, %v2184_v0  ;;  %v7188_v53 = vmax.f32 %v2190_v9, %v2191_v19 }
 0x1d6   : > { %v1772_v25 = vcombine.high %v1764_v60, %v1764_v60  ;;  %v1773_v10 = vcombine.high %v1771_v8, %v1771_v8  ;;  %v2204_v50 = vsel %vm1923_vm13, %v1764_v60, -inf  ;;  %v2218_v32 = vsel %vm1923_vm13, %v1771_v8, -inf }
 0x1d7   : > { %v2035_v16 = vmax.f32 %v2033_v49, %v2034_v17  ;;  %v7192_v20 = vmax.f32 %v2178_v56, %v2179_v14  ;;  %v2186_v62 = vrot.slane %v7186_v5, 2  ;;  %v2205_v1 = vrot.slane %v2204_v50, 4 }
 0x1d8   : > { %v2211_v36 = vsel %vm1923_vm13, %v1772_v25, -inf  ;;  %v2219_v55 = vrot.slane %v2218_v32, 4  ;;  %v2225_v59 = vsel %vm1923_vm13, %v1773_v10, -inf  ;;  %v2470_v26 = vsel %vm2460_vm4, %v2021_v30, %v2469_v44 }
 0x1d9   : > { %v2212_v54 = vrot.slane %v2211_v36, 4  ;;  %v2181_v47 = vrot.slane %v7192_v20, 1  ;;  %v2206_v45 = vmax.f32 %v2204_v50, %v2205_v1  ;;  %v2226_v57 = vrot.slane %v2225_v59, 4 }
 0x1da   : > { %v2471_v51 = vsel %vm8270_vm5, %v2028_v21, %v2470_v26  ;;  %v2220_v15 = vmax.f32 %v2218_v32, %v2219_v55  ;;  %v1387_v41 = vadd.f32 %v5579_v46, %v6906_v22  ;;  %v5582_v30 = vadd.f32 %v7036_v31, %v7031_v37 }
 0x1db   : > { %v2213_v2 = vmax.f32 %v2211_v36, %v2212_v54  ;;  %v7201_v49 = vsel %vm8269_vm6, %v2035_v16, %v2471_v51  ;;  %v2207_v9 = vrot.slane %v2206_v45, 2  ;;  %v2227_v6 = vmax.f32 %v2225_v59, %v2226_v57 }
 0x1dc   : > { %5801 = vmatmul.mubr.f32.vlgmr.msra.gmra.mrb[16].mxu1 %v7201_v49  ;;  %v8311_v56 = vrot.slane %v7055_v3, 1  ;;  %v2221_v19 = vrot.slane %v2220_v15, 2  ;;  %v1532_v60 = vadd.f32 %v6988_v7, %v1387_v41  ;;  %v8312_v8 = vrot.slane %v7043_v11, 2 }
 0x1dd   : > { %v2214_v21 = vrot.slane %v2213_v2, 2  ;;  %v2208_v44 = vmax.f32 %v2206_v45, %v2207_v9  ;;  %v2228_v46 = vrot.slane %v2227_v6, 2  ;;  %v1392_v14 = vadd.f32 %v5582_v30, %v6906_v22 }
 0x1de   : > { %v7210_v0 = vmax.f32 %v7055_v3, %v8311_v56  ;;  %v2075_v17 = vmax.f32 %v7043_v11, %v8312_v8  ;;  %v2081_v25 = vrot.slane %v7048_v23, 2  ;;  %v2222_v31 = vmax.f32 %v2220_v15, %v2221_v19 }
 0x1df   : > { %v2215_v37 = vmax.f32 %v2213_v2, %v2214_v21  ;;  %v1566_v10 = vmax.f32 %v1532_v60, 0.0  ;;  %v2209_v3 = vrot.slane %v2208_v44, 1  ;;  %v2229_v32 = vmax.f32 %v2227_v6, %v2228_v46 }
 0x1e0   : > { %v2076_v50 = vrot.slane %v2075_v17, 1  ;;  %v1537_v16 = vadd.f32 %v7028_v24, %v1392_v14  ;;  %v2082_v7 = vmax.f32 %v7048_v23, %v2081_v25  ;;  %v2223_v36 = vrot.slane %v2222_v31, 1 }
 0x1e1   : > { %v2216_v1 = vrot.slane %v2215_v37, 1  ;;  %v1774_v54 = vcombine.high %v1566_v10, %v1566_v10  ;;  %v1781_v11 = vrot.slane %v1566_v10, %v6910_v43  ;;  %v2210_v55 = vmax.f32 %v2208_v44, %v2209_v3 }
 0x1e2   : > { %v2230_v59 = vrot.slane %v2229_v32, 1  ;;  %v1567_v26 = vmax.f32 %v1537_v16, 0.0  ;;  %v2077_v45 = vmax.f32 %v2075_v17, %v2076_v50  ;;  %v7221_v51 = vmax.f32 %v2222_v31, %v2223_v36 }
 0x1e3   : > { %v2217_v57 = vmax.f32 %v2215_v37, %v2216_v1  ;;  %v7224_v2 = vrot.slane %v1774_v54, %v6910_v43  ;;  %v1789_v15 = vcombine.high %v1781_v11, %v1781_v11  ;;  %v2232_v23 = vsel %vm1923_vm13, %v1781_v11, -inf }
 0x1e4   : > { %v7226_v41 = vmax.f32 %v2229_v32, %v2230_v59  ;;  %v1791_v24 = vcombine.high %v1567_v26, %v1567_v26  ;;  %v1798_v9 = vrot.slane %v1567_v26, %v6910_v43  ;;  %v2233_v56 = vrot.slane %v2232_v23, 4 }
 0x1e5   : > { %v7231_v6 = vsel %vm2452_vm14, %v2217_v57, %v2210_v55  ;;  %v1790_v30 = vcombine.high %v7224_v2, %v7224_v2  ;;  %v2239_v21 = vsel %vm1923_vm13, %v1789_v15, -inf  ;;  %v2246_v60 = vsel %vm1923_vm13, %v7224_v2, -inf }
 0x1e6   : > { %v2240_v19 = vrot.slane %v2239_v21, 4  ;;  %v1805_v8 = vrot.slane %v1791_v24, %v6910_v43  ;;  %v1806_v17 = vcombine.high %v1798_v9, %v1798_v9  ;;  %v2234_v44 = vmax.f32 %v2232_v23, %v2233_v56 }
 0x1e7   : > { %v2247_v46 = vrot.slane %v2246_v60, 4  ;;  %v2260_v14 = vsel %vm1923_vm13, %v1798_v9, -inf  ;;  %v2083_v25 = vrot.slane %v2082_v7, 1  ;;  %v8313_v9 = vcombine.high %v7026_v33, %v7026_v33 }
 0x1e8   : > { %v7240_v37 = vmax.f32 %v2239_v21, %v2240_v19  ;;  %v1807_v31 = vcombine.high %v1805_v8, %v1805_v8  ;;  %v2261_v10 = vrot.slane %v2260_v14, 4  ;;  %v2267_v50 = vsel %vm1923_vm13, %v1806_v17, -inf }
 0x1e9   : > { %v2235_v3 = vrot.slane %v2234_v44, 2  ;;  %v7243_v32 = vmax.f32 %v2246_v60, %v2247_v46  ;;  %v2268_v16 = vrot.slane %v2267_v50, 4  ;;  %v2274_v1 = vsel %vm1923_vm13, %v1805_v8, -inf }
 0x1ea   : > { %v2242_v36 = vrot.slane %v7240_v37, 2  ;;  %v2262_v54 = vmax.f32 %v2260_v14, %v2261_v10  ;;  %v2275_v11 = vrot.slane %v2274_v1, 4  ;;  %v2281_v55 = vsel %vm1923_vm13, %v1807_v31, -inf  ;;  %v8314_v14 = vld [vmem:[#allocation16_spill] sm:$0xff] }
 0x1eb   : > { %v7248_v59 = vmax.f32 %v2234_v44, %v2235_v3  ;;  %v2269_v26 = vmax.f32 %v2267_v50, %v2268_v16  ;;  %v2282_v57 = vrot.slane %v2281_v55, 4  ;;  %v2084_v15 = vmax.f32 %v2082_v7, %v2083_v25 }
 0x1ec   : > { %v2263_v23 = vrot.slane %v2262_v54, 2  ;;  %v2276_v24 = vmax.f32 %v2274_v1, %v2275_v11  ;;  %v2085_v56 = vsel %vm1923_vm13, %v8313_v9, -inf  ;;  %v2474_v21 = vsel %vm2454_vm15, %v7061_v12, %v7075_v40  ;;  %v8317_v9 = vld [vmem:[#allocation20_spill] sm:$0xff] }
 0x1ed   : > { %v2237_v19 = vrot.slane %v7248_v59, 1  ;;  %v2270_v60 = vrot.slane %v2269_v26, 2  ;;  %v2283_v8 = vmax.f32 %v2281_v55, %v2282_v57  ;;  %v2086_v17 = vrot.slane %v2085_v56, 4 }
 0x1ee   : > { %v2264_v44 = vmax.f32 %v2262_v54, %v2263_v23  ;;  %v2277_v46 = vrot.slane %v2276_v24, 2  ;;  %v2475_v7 = vsel %vm2456_vm1, %v7070_v4, %v2474_v21  ;;  %v5585_v25 = vadd.f32 %v8314_v14, %v7041_v63  ;;  %v8315_v63 = vld [vmem:[#allocation15_spill] sm:$0xff] }
 0x1ef   : > { %v2271_v33 = vmax.f32 %v2269_v26, %v2270_v60  ;;  %v2284_v31 = vrot.slane %v2283_v8, 2  ;;  %v2087_v10 = vmax.f32 %v2085_v56, %v2086_v17  ;;  %v2476_v50 = vsel %vm2458_vm3, %v7210_v0, %v2475_v7  ;;  %v8316_v23 = vld [vmem:[#allocation19_spill] sm:$0xff] }
 0x1f0   : > { %v2265_v12 = vrot.slane %v2264_v44, 1  ;;  %v2278_v40 = vmax.f32 %v2276_v24, %v2277_v46  ;;  %v2477_v3 = vsel %vm2460_vm4, %v2077_v45, %v2476_v50  ;;  %v1397_v16 = vadd.f32 %v5585_v25, %v6906_v22  ;;  %v8318_v25 = vld [vmem:[#allocation18_spill] sm:$0xff] }
 0x1f1   : > { %v2272_v1 = vrot.slane %v2271_v33, 1  ;;  %v2285_v54 = vmax.f32 %v2283_v8, %v2284_v31  ;;  %v2088_v11 = vrot.slane %v2087_v10, 2  ;;  %v2478_v4 = vsel %vm8270_vm5, %v2084_v15, %v2477_v3  ;;  %v7278_v15 = vld [vmem:[%s8297_s18] ss:$0 sm:$0xff] }
 0x1f2   : > { %v2266_v55 = vmax.f32 %v2264_v44, %v2265_v12  ;;  %v2279_v57 = vrot.slane %v2278_v40, 1  ;;  %v1542_v26 = vadd.f32 %v8315_v63, %v1397_v16  ;;  %v5588_v56 = vadd.f32 %v8317_v9, %v8316_v23  ;;  %v8319_v12 = vld [vmem:[#allocation23_spill] sm:$0xff] }
 0x1f3   : > { %v2273_v21 = vmax.f32 %v2271_v33, %v2272_v1  ;;  %v2286_v0 = vrot.slane %v2285_v54, 1  ;;  %v2089_v60 = vmax.f32 %v2087_v10, %v2088_v11  ;;  %v2126_v45 = vmax.f32 %v7120_v61, %v2125_v58 }
 0x1f4   : > { %v7273_v22 = vmax.f32 %v2278_v40, %v2279_v57  ;;  %v1568_v24 = vmax.f32 %v1542_v26, 0.0  ;;  %v1402_v8 = vadd.f32 %v7278_v15, %v5588_v56  ;;  %v2131_v17 = vmax.f32 %v7110_v34, %v2130_v39 }
 0x1f5   : > { %v7284_v44 = vmax.f32 %v2285_v54, %v2286_v0  ;;  %v7287_v46 = vsel %vm2452_vm14, %v2273_v21, %v2266_v55  ;;  %v2090_v61 = vrot.slane %v2089_v60, 1  ;;  %v2137_v58 = vrot.slane %v7112_v38, 2 }
 0x1f6   : > { %v1808_v7 = vcombine.high %v1568_v24, %v1568_v24  ;;  %v1815_v14 = vrot.slane %v1568_v24, %v6910_v43  ;;  %v1547_v33 = vadd.f32 %v8318_v25, %v1402_v8  ;;  %v2132_v31 = vrot.slane %v2131_v17, 1 }
 0x1f7   : > { %v2091_v10 = vmax.f32 %v2089_v60, %v2090_v61  ;;  %v2138_v50 = vmax.f32 %v7112_v38, %v2137_v58  ;;  %v8320_v34 = vcombine.high %v8319_v12, %v8319_v12  ;;  %v2481_v40 = vsel %vm2454_vm15, %v7107_v52, %v7117_v35 }
 0x1f8   : > { %v7301_v3 = vrot.slane %v1808_v7, %v6910_v43  ;;  %v1823_v16 = vcombine.high %v1815_v14, %v1815_v14  ;;  %v2288_v1 = vsel %vm1923_vm13, %v1815_v14, -inf  ;;  %v1569_v54 = vmax.f32 %v1547_v33, 0.0 }
 0x1f9   : > { %v2141_v39 = vsel %vm1923_vm13, %v8320_v34, -inf  ;;  %v7305_v11 = vsel %vm8269_vm6, %v2091_v10, %v2478_v4  ;;  %v2289_v38 = vrot.slane %v2288_v1, 4  ;;  %v2133_v55 = vmax.f32 %v2131_v17, %v2132_v31 }
 0x1fa   : > { %v2139_v57 = vrot.slane %v2138_v50, 1  ;;  %5803 = vmatprep.mubr.f32.mxu1 %v7305_v11  ;;  %v2295_v52 = vsel %vm1923_vm13, %v1823_v16, -inf  ;;  %v2302_v35 = vsel %vm1923_vm13, %v7301_v3, -inf  ;;  %v1825_v26 = vcombine.high %v1569_v54, %v1569_v54 }
 0x1fb   : > { %v2290_v23 = vmax.f32 %v2288_v1, %v2289_v38  ;;  %v2296_v9 = vrot.slane %v2295_v52, 4  ;;  %v2303_v56 = vrot.slane %v2302_v35, 4  ;;  %v1832_v4 = vrot.slane %v1569_v54, %v6910_v43 }
 0x1fc   : > { %v1839_v21 = vrot.slane %v1825_v26, %v6910_v43  ;;  %v2140_v0 = vmax.f32 %v2138_v50, %v2139_v57  ;;  %v2142_v60 = vrot.slane %v2141_v39, 4  ;;  %v2482_v24 = vsel %vm2456_vm1, %v7114_v42, %v2481_v40 }
 0x1fd   : > { %v2291_v8 = vrot.slane %v2290_v23, 2  ;;  %v7317_v17 = vmax.f32 %v2295_v52, %v2296_v9  ;;  %v7319_v61 = vmax.f32 %v2302_v35, %v2303_v56  ;;  %v1840_v58 = vcombine.high %v1832_v4, %v1832_v4  ;;  %v5440_v52 = vld [vmem:[%s8295_s3 + $0x88] sm:$0xff] }
 0x1fe   : > { %v1841_v7 = vcombine.high %v1839_v21, %v1839_v21  ;;  %v2316_v14 = vsel %vm1923_vm13, %v1832_v4, -inf  ;;  %v2330_v25 = vsel %vm1923_vm13, %v1839_v21, -inf  ;;  %v2143_v33 = vmax.f32 %v2141_v39, %v2142_v60  ;;  %v5439_v39 = vld [vmem:[%s8295_s3 + $0x80] sm:$0xff]  ;;  %v8321_v60 = vld [vmem:[#allocation21_spill] sm:$0xff] }
 0x1ff   : > { %v7323_v31 = vmax.f32 %v2290_v23, %v2291_v8  ;;  %v2317_v50 = vrot.slane %v2316_v14, 4  ;;  %v2323_v12 = vsel %vm1923_vm13, %v1840_v58, -inf  ;;  %v2331_v34 = vrot.slane %v2330_v25, 4  ;;  %v8322_v8 = vld [vmem:[#allocation22_spill] sm:$0xff] }
 0x200   : > { %v2324_v42 = vrot.slane %v2323_v12, 4  ;;  %v2337_v40 = vsel %vm1923_vm13, %v1841_v7, -inf  ;;  %v2144_v16 = vrot.slane %v2143_v33, 2  ;;  %v2483_v57 = vsel %vm2458_vm3, %v2126_v45, %v2482_v24 }
 0x201   : > { %v2293_v1 = vrot.slane %v7323_v31, 1  ;;  %v2318_v54 = vmax.f32 %v2316_v14, %v2317_v50  ;;  %v2338_v38 = vrot.slane %v2337_v40, 4  ;;  %v2332_v26 = vmax.f32 %v2330_v25, %v2331_v34 }
 0x202   : > { %v2325_v35 = vmax.f32 %v2323_v12, %v2324_v42  ;;  %v2145_v23 = vmax.f32 %v2143_v33, %v2144_v16  ;;  %v2484_v9 = vsel %vm2460_vm4, %v2133_v55, %v2483_v57  ;;  %v5591_v45 = vadd.f32 %v8322_v8, %v8321_v60  ;;  %v5444_v60 = vld [vmem:[%s8295_s3 + $0xa8] sm:$0xff] }
 0x203   : > { %v2319_v56 = vrot.slane %v2318_v54, 2  ;;  %v2339_v4 = vmax.f32 %v2337_v40, %v2338_v38  ;;  %v2485_v21 = vsel %vm8270_vm5, %v2140_v0, %v2484_v9  ;;  %v2333_v58 = vrot.slane %v2332_v26, 2  ;;  %v8323_v40 = vld [vmem:[#allocation17_spill] sm:$0xff] }
 0x204   : > { %v2326_v24 = vrot.slane %v2325_v35, 2  ;;  %v2146_v7 = vrot.slane %v2145_v23, 1  ;;  %v6077_v14 = vpack.c.bf16 %v5440_v52, %v5439_v39  ;;  %v1407_v10 = vadd.f32 %v7278_v15, %v5591_v45 }
 0x205   : > { %v2320_v50 = vmax.f32 %v2318_v54, %v2319_v56  ;;  %v2340_v63 = vrot.slane %v2339_v4, 2  ;;  %v2182_v25 = vmax.f32 %v7192_v20, %v2181_v47  ;;  %v2334_v33 = vmax.f32 %v2332_v26, %v2333_v58 }
 0x206   : > { %v2327_v55 = vmax.f32 %v2325_v35, %v2326_v24  ;;  %v2147_v12 = vmax.f32 %v2145_v23, %v2146_v7  ;;  %6078 = vmatprep.subr.bf16.mxu1 %v6077_v14  ;;  %v2187_v0 = vmax.f32 %v7186_v5, %v2186_v62  ;;  %v1552_v16 = vadd.f32 %v8323_v40, %v1407_v10  ;;  %v5441_v62 = vld [vmem:[%s8295_s3 + $0x90] sm:$0xff] }
 0x207   : > { %v2321_v42 = vrot.slane %v2320_v50, 1  ;;  %v2341_v34 = vmax.f32 %v2339_v4, %v2340_v63  ;;  %6080 = vmatpush3.bf16.msra.mxu1 %v6077_v14  ;;  %v2193_v54 = vrot.slane %v7188_v53, 2  ;;  %v2335_v38 = vrot.slane %v2334_v33, 1  ;;  %v5442_v63 = vld [vmem:[%s8295_s3 + $0x98] sm:$0xff] }
 0x208   : > { %v2328_v15 = vrot.slane %v2327_v55, 1  ;;  %v7350_v57 = vsel %vm8269_vm6, %v2147_v12, %v2485_v21  ;;  %v2188_v20 = vrot.slane %v2187_v0, 1  ;;  %v1570_v52 = vmax.f32 %v1552_v16, 0.0  ;;  %v5443_v21 = vld [vmem:[%s8295_s3 + $0xa0] sm:$0xff] }
 0x209   : > { %v2322_v47 = vmax.f32 %v2320_v50, %v2321_v42  ;;  %v2342_v39 = vrot.slane %v2341_v34, 1  ;;  %5804 = vmatmul.mubr.f32.gmra.mrb[18].mxu1 %v7350_v57  ;;  %v2194_v5 = vmax.f32 %v7188_v53, %v2193_v54  ;;  %v7360_v35 = vmax.f32 %v2334_v33, %v2335_v38 }
 0x20a   : > { %v2329_v10 = vmax.f32 %v2327_v55, %v2328_v15  ;;  %v2189_v26 = vmax.f32 %v2187_v0, %v2188_v20  ;;  %v2197_v23 = vsel %vm1923_vm13, %v1756_v18, -inf  ;;  %v1842_v53 = vcombine.high %v1570_v52, %v1570_v52 }
 0x20b   : > { %v7366_v9 = vmax.f32 %v2341_v34, %v2342_v39  ;;  %v1849_v56 = vrot.slane %v1570_v52, %v6910_v43  ;;  %v2195_v4 = vrot.slane %v2194_v5, 1  ;;  %v2198_v13 = vrot.slane %v2197_v23, 4 }
 0x20c   : > { %v7376_v8 = vsel %vm2452_vm14, %v2329_v10, %v2322_v47  ;;  %v2488_v18 = vsel %vm2454_vm15, %v7148_v48, %v7156_v28  ;;  %v6081_v45 = vpack.c.bf16 %v5442_v63, %v5441_v62  ;;  %v7382_v24 = vrot.slane %v1842_v53, %v6910_v43  ;;  %v5446_v62 = vld [vmem:[%s8295_s3 + $0xb8] sm:$0xff]  ;;  %v5447_v53 = vld [vmem:[%s8295_s3 + $0xc0] sm:$0xff] }
 0x20d   : > { %v1857_v58 = vcombine.high %v1849_v56, %v1849_v56  ;;  %v2344_v7 = vsel %vm1923_vm13, %v1849_v56, -inf  ;;  %v2196_v14 = vmax.f32 %v2194_v5, %v2195_v4  ;;  %v2199_v55 = vmax.f32 %v2197_v23, %v2198_v13  ;;  %v5445_v5 = vld [vmem:[%s8295_s3 + $0xb0] sm:$0xff]  ;;  %v5448_v56 = vld [vmem:[%s8295_s3 + $0xc8] sm:$0xff] }
 0x20e   : > { %v2345_v50 = vrot.slane %v2344_v7, 4  ;;  %v2489_v33 = vsel %vm2456_vm1, %v7150_v27, %v2488_v18  ;;  %6082 = vmatprep.subr.bf16.mxu1 %v6081_v45  ;;  %v6085_v12 = vpack.c.bf16 %v5444_v60, %v5443_v21  ;;  %v1858_v0 = vcombine.high %v7382_v24, %v7382_v24 }
 0x20f   : > { %v2351_v48 = vsel %vm1923_vm13, %v1857_v58, -inf  ;;  %v2358_v28 = vsel %vm1923_vm13, %v7382_v24, -inf  ;;  %v2490_v42 = vsel %vm2458_vm3, %v2182_v25, %v2489_v33  ;;  %6084 = vmatpush3.bf16.msra.mxu1 %v6081_v45  ;;  %v2200_v54 = vrot.slane %v2199_v55, 2  ;;  %v5454_v24 = vld [vmem:[%s8295_s3 + $0xf8] sm:$0xff] }
 0x210   : > { %v2346_v34 = vmax.f32 %v2344_v7, %v2345_v50  ;;  %v2352_v40 = vrot.slane %v2351_v48, 4  ;;  %v2359_v16 = vrot.slane %v2358_v28, 4  ;;  %6086 = vmatprep.subr.bf16.mxu1 %v6085_v12  ;;  %v2491_v27 = vsel %vm2460_vm4, %v2189_v26, %v2490_v42 }
 0x211   : > { %v2238_v15 = vmax.f32 %v7248_v59, %v2237_v19  ;;  %v2243_v38 = vmax.f32 %v7240_v37, %v2242_v36  ;;  %v2249_v20 = vrot.slane %v7243_v32, 2  ;;  %v2201_v52 = vmax.f32 %v2199_v55, %v2200_v54 }
 0x212   : > { %v2347_v47 = vrot.slane %v2346_v34, 2  ;;  %v2353_v25 = vmax.f32 %v2351_v48, %v2352_v40  ;;  %v7401_v39 = vmax.f32 %v2358_v28, %v2359_v16  ;;  %v2492_v59 = vsel %vm8270_vm5, %v2196_v14, %v2491_v27 }
 0x213   : > { %6088 = vmatpush3.bf16.msra.mxu1 %v6085_v12  ;;  %v2244_v19 = vrot.slane %v2243_v38, 1  ;;  %v2250_v37 = vmax.f32 %v7243_v32, %v2249_v20  ;;  %v2253_v36 = vsel %vm1923_vm13, %v1790_v30, -inf  ;;  %v2202_v26 = vrot.slane %v2201_v52, 1  ;;  %v5450_v12 = vld [vmem:[%s8295_s3 + $0xd8] sm:$0xff] }
 0x214   : > { %v2348_v63 = vmax.f32 %v2346_v34, %v2347_v47  ;;  %v2354_v10 = vrot.slane %v2353_v25, 2  ;;  %v2254_v23 = vrot.slane %v2253_v36, 4  ;;  %v2495_v2 = vsel %vm2454_vm15, %v7221_v51, %v7231_v6  ;;  %v5449_v51 = vld [vmem:[%s8295_s3 + $0xd0] sm:$0xff] }
 0x215   : > { %v2245_v4 = vmax.f32 %v2243_v38, %v2244_v19  ;;  %v2251_v21 = vrot.slane %v2250_v37, 1  ;;  %v6089_v32 = vpack.c.bf16 %v5446_v62, %v5445_v5  ;;  %v2203_v60 = vmax.f32 %v2201_v52, %v2202_v26 }
 0x216   : > { %v2349_v30 = vrot.slane %v2348_v63, 1  ;;  %v2255_v13 = vmax.f32 %v2253_v36, %v2254_v23  ;;  %v2496_v18 = vsel %vm2456_vm1, %v7226_v41, %v2495_v2  ;;  %v6093_v7 = vpack.c.bf16 %v5448_v56, %v5447_v53 }
 0x217   : > { %v2252_v45 = vmax.f32 %v2250_v37, %v2251_v21  ;;  %v2497_v58 = vsel %vm2458_vm3, %v2238_v15, %v2496_v18  ;;  %6090 = vmatprep.subr.bf16.mxu1 %v6089_v32  ;;  %v2294_v14 = vmax.f32 %v7323_v31, %v2293_v1  ;;  %v7434_v6 = vsel %vm8269_vm6, %v2203_v60, %v2492_v59  ;;  %v5451_v31 = vld [vmem:[%s8295_s3 + $0xe0] sm:$0xff]  ;;  %v5452_v1 = vld [vmem:[%s8295_s3 + $0xe8] sm:$0xff] }
 0x218   : > { %v2256_v50 = vrot.slane %v2255_v13, 2  ;;  %v2498_v55 = vsel %vm2460_vm4, %v2245_v4, %v2497_v58  ;;  %6092 = vmatpush3.bf16.msra.mxu1 %v6089_v32  ;;  %v8324_v41 = vrot.slane %v7317_v17, 2  ;;  %5806 = vmatprep.mubr.f32.mxu1 %v7434_v6  ;;  %v2305_v28 = vrot.slane %v7319_v61, 2 }
 0x219   : > { %v2499_v48 = vsel %vm8270_vm5, %v2252_v45, %v2498_v55  ;;  %6094 = vmatprep.subr.bf16.mxu1 %v6093_v7  ;;  %v2502_v34 = vsel %vm2454_vm15, %v7273_v22, %v7287_v46  ;;  %v6097_v20 = vpack.c.bf16 %v5450_v12, %v5449_v51  ;;  %v6101_v47 = vpack.c.bf16 %v5452_v1, %v5451_v31  ;;  %v3007_v55 = vld [vmem:[%s8326_s4 + $0x8] sm:$0xff]  ;;  %v3012_v31 = vld [vmem:[%s8326_s4 + $0x30] sm:$0xff]  ;;  %v3013_v1 = vld [vmem:[%s8326_s4 + $0x38] sm:$0xff] }
 0x21a   : > { %v2299_v33 = vmax.f32 %v7317_v17, %v8324_v41  ;;  %v8325_v17 = vcombine.high %v7301_v3, %v7301_v3  ;;  %v2257_v40 = vmax.f32 %v2255_v13, %v2256_v50  ;;  %v2503_v27 = vsel %vm2456_vm1, %v7284_v44, %v2502_v34  ;;  %v3006_v50 = vld [vmem:[%s8326_s4] sm:$0xff]  ;;  %v3016_v34 = vld [vmem:[%s8326_s4 + $0x50] sm:$0xff] }
 0x21b   : > { %v2306_v15 = vmax.f32 %v7319_v61, %v2305_v28  ;;  %v2504_v38 = vsel %vm2458_vm3, %v2294_v14, %v2503_v27  ;;  %v2350_v62 = vmax.f32 %v2348_v63, %v2349_v30  ;;  %v2355_v22 = vmax.f32 %v2353_v25, %v2354_v10  ;;  %v5453_v63 = vld [vmem:[%s8295_s3 + $0xf0] sm:$0xff]  ;;  %v3010_v41 = vld [vmem:[%s8326_s4 + $0x20] sm:$0xff]  ;;  %v3019_v27 = vld [vmem:[%s8326_s4 + $0x68] sm:$0xff] }
 0x21c   : > { %v2309_v42 = vsel %vm1923_vm13, %v8325_v17, -inf  ;;  %v2300_v16 = vrot.slane %v2299_v33, 1  ;;  %v2258_v52 = vrot.slane %v2257_v40, 1  ;;  %6096 = vmatpush3.bf16.msra.mxu1 %v6093_v7  ;;  %v2361_v46 = vrot.slane %v7401_v39, 2  ;;  %v3014_v28 = vld [vmem:[%s8326_s4 + $0x40] sm:$0xff]  ;;  %v3015_v17 = vld [vmem:[%s8326_s4 + $0x48] sm:$0xff] }
 0x21d   : > { %v2310_v54 = vrot.slane %v2309_v42, 4  ;;  %v2307_v59 = vrot.slane %v2306_v15, 1  ;;  %6098 = vmatprep.subr.bf16.mxu1 %v6097_v20  ;;  %v2365_v44 = vsel %vm1923_vm13, %v1858_v0, -inf  ;;  %v2356_v23 = vrot.slane %v2355_v22, 1 }
 0x21e   : > { %v2301_v3 = vmax.f32 %v2299_v33, %v2300_v16  ;;  %v2259_v61 = vmax.f32 %v2257_v40, %v2258_v52  ;;  %v2366_v36 = vrot.slane %v2365_v44, 4  ;;  %v2362_v53 = vmax.f32 %v7401_v39, %v2361_v46  ;;  %v3011_v33 = vld [vmem:[%s8326_s4 + $0x28] sm:$0xff]  ;;  %v3017_v40 = vld [vmem:[%s8326_s4 + $0x58] sm:$0xff]  ;;  %v3022_v52 = vld [vmem:[%s8326_s4 + $0x80] sm:$0xff] }
 0x21f   : > { %v2311_v5 = vmax.f32 %v2309_v42, %v2310_v54  ;;  %v2308_v26 = vmax.f32 %v2306_v15, %v2307_v59  ;;  %v2509_v25 = vsel %vm2454_vm15, %v7360_v35, %v7376_v8  ;;  %v2357_v35 = vmax.f32 %v2355_v22, %v2356_v23  ;;  %v3018_v54 = vld [vmem:[%s8326_s4 + $0x60] sm:$0xff]  ;;  %v3024_v22 = vld [vmem:[%s8326_s4 + $0x90] sm:$0xff]  ;;  %v3025_v46 = vld [vmem:[%s8326_s4 + $0x98] sm:$0xff] }
 0x220   : > { %v2505_v37 = vsel %vm2460_vm4, %v2301_v3, %v2504_v38  ;;  %v2500_v0 = vsel %vm8269_vm6, %v2259_v61, %v2499_v48  ;;  %6100 = vmatpush3.bf16.msra.mxu1 %v6097_v20  ;;  %v2367_v56 = vmax.f32 %v2365_v44, %v2366_v36  ;;  %v2510_v39 = vsel %vm2456_vm1, %v7366_v9, %v2509_v25  ;;  %v3020_v38 = vld [vmem:[%s8326_s4 + $0x70] sm:$0xff]  ;;  %v3021_v20 = vld [vmem:[%s8326_s4 + $0x78] sm:$0xff]  ;;  %v3023_v3 = vld [vmem:[%s8326_s4 + $0x88] sm:$0xff] }
 0x221   : > { %v2312_v19 = vrot.slane %v2311_v5, 2  ;;  %5807 = vmatmul.mubr.f32.gmra.mrb[20].mxu1 %v2500_v0  ;;  %v2506_v4 = vsel %vm8270_vm5, %v2308_v26, %v2505_v37  ;;  %6102 = vmatprep.subr.bf16.mxu1 %v6101_v47  ;;  %v2363_v8 = vrot.slane %v2362_v53, 1  ;;  %v2511_v21 = vsel %vm2458_vm3, %v2350_v62, %v2510_v39  ;;  %v3026_v61 = vld [vmem:[%s8326_s4 + $0xa0] sm:$0xff]  ;;  %v3028_v36 = vld [vmem:[%s8326_s4 + $0xb0] sm:$0xff]  ;;  %v3029_v26 = vld [vmem:[%s8326_s4 + $0xb8] sm:$0xff] }
 0x222   : > { %v2368_v32 = vrot.slane %v2367_v56, 2  ;;  %v6105_v30 = vpack.c.bf16 %v5454_v24, %v5453_v63  ;;  %v2512_v13 = vsel %vm2460_vm4, %v2357_v35, %v2511_v21  ;;  %v6116_v12 = vpack.c.bf16 %v3011_v33, %v3010_v41 }
 0x223   : > { %v2313_v10 = vmax.f32 %v2311_v5, %v2312_v19  ;;  %v2364_v60 = vmax.f32 %v2362_v53, %v2363_v8  ;;  %v6119_v48 = vpack.c.bf16 %v3013_v1, %v3012_v31  ;;  %v6122_v42 = vpack.c.bf16 %v3015_v17, %v3014_v28  ;;  %v3027_v19 = vld [vmem:[%s8326_s4 + $0xa8] sm:$0xff] }
 0x224   : > { %6104 = vmatpush3.bf16.msra.mxu1 %v6101_v47  ;;  %v2369_v45 = vmax.f32 %v2367_v56, %v2368_v32  ;;  %v6125_v16 = vpack.c.bf16 %v3017_v40, %v3016_v34  ;;  %v6128_v15 = vpack.c.bf16 %v3019_v27, %v3018_v54  ;;  %v6131_v47 = vpack.c.bf16 %v3021_v20, %v3020_v38 }
 0x225   : > { %v2314_v2 = vrot.slane %v2313_v10, 1  ;;  %v2513_v58 = vsel %vm8270_vm5, %v2364_v60, %v2512_v13  ;;  %6106 = vmatprep.subr.bf16.mxu1 %v6105_v30  ;;  %v6134_v59 = vpack.c.bf16 %v3023_v3, %v3022_v52  ;;  %v6137_v44 = vpack.c.bf16 %v3025_v46, %v3024_v22 }
 0x226   : > { %v2370_v7 = vrot.slane %v2369_v45, 1  ;;  %v6140_v37 = vpack.c.bf16 %v3027_v19, %v3026_v61  ;;  %v6143_v23 = vpack.c.bf16 %v3029_v26, %v3028_v36 }
 0x227   : > { %v2315_v18 = vmax.f32 %v2313_v10, %v2314_v2 }
 0x228   : > { %v2371_v14 = vmax.f32 %v2369_v45, %v2370_v7  ;;  %6108 = vmatpush3.bf16.msra.mxu1 %v6105_v30 }
 0x229   : > { %v2507_v9 = vsel %vm8269_vm6, %v2315_v18, %v2506_v4 }
 0x22a   : > { %5809 = vmatprep.mubr.f32.mxu1 %v2507_v9  ;;  %v2514_v51 = vsel %vm8269_vm6, %v2371_v14, %v2513_v58 }
 0x22b   : > { %5810 = vmatmul.mubr.f32.gmra.mrb[22].mxu1 %v2514_v51 }
 0x22c   : > { %5844 = vmatprep.mubr.f32.mxu1 %v7170_v29  ;;  %v3008_v29 = vld [vmem:[%s8326_s4 + $0x10] sm:$0xff] }
 0x22f   : > { %5845 = vmatmul.mubr.f32.vlgmr.msra.gmra.mrb[24].mxu1 %v7201_v49  ;;  %v6354_v49 = vmov 0.0|0.0  }
 0x230   : > { %5847 = vmatprep.mubr.f32.mxu1 %v7305_v11  ;;  %6109 = vmatprep.subr.bf16.mxu0 %v6354_v49  ;;  %v6110_v11 = vpack.c.bf16 %v3007_v55, %v3006_v50 }
 0x232   : > { %6111 = vmatpush1.bf16.msra.mxu0 %v6110_v11 }
 0x233   : > { %5848 = vmatmul.mubr.f32.gmra.mrb[26].mxu1 %v7350_v57  ;;  %v3009_v57 = vld [vmem:[%s8326_s4 + $0x18] sm:$0xff]  ;;  %6112 = vmatprep.subr.bf16.mxu0 %v6354_v49 }
 0x234   : > { %5850 = vmatprep.mubr.f32.mxu1 %v7434_v6  ;;  %v6113_v6 = vpack.c.bf16 %v3009_v57, %v3008_v29 }
 0x236   : > { %6114 = vmatpush1.bf16.msra.mxu0 %v6113_v6 }
 0x237   : > { %5851 = vmatmul.mubr.f32.gmra.mrb[28].mxu1 %v2500_v0  ;;  %6115 = vmatprep.subr.bf16.mxu0 %v6354_v49 }
 0x238   : > { %5853 = vmatprep.mubr.f32.mxu1 %v2507_v9 }
 0x23a   : > { %6117 = vmatpush1.bf16.msra.mxu0 %v6116_v12 }
 0x23b   : > { %5854 = vmatmul.mubr.f32.gmra.mrb[30].mxu1 %v2514_v51  ;;  %6118 = vmatprep.subr.bf16.mxu0 %v6354_v49 }
 0x23e   : > { %6120 = vmatpush1.bf16.msra.mxu0 %v6119_v48 }
 0x23f   : > { %6121 = vmatprep.subr.bf16.mxu0 %v6354_v49 }
 0x242   : > { %6123 = vmatpush1.bf16.msra.mxu0 %v6122_v42 }
 0x243   : > { %6124 = vmatprep.subr.bf16.mxu0 %v6354_v49 }
 0x246   : > { %6126 = vmatpush1.bf16.msra.mxu0 %v6125_v16 }
 0x247   : > { %6127 = vmatprep.subr.bf16.mxu0 %v6354_v49 }
 0x24a   : > { %6129 = vmatpush1.bf16.msra.mxu0 %v6128_v15 }
 0x24b   : > { %6130 = vmatprep.subr.bf16.mxu0 %v6354_v49 }
 0x24e   : > { %6132 = vmatpush1.bf16.msra.mxu0 %v6131_v47 }
 0x24f   : > { %6133 = vmatprep.subr.bf16.mxu0 %v6354_v49 }
 0x252   : > { %6135 = vmatpush1.bf16.msra.mxu0 %v6134_v59  ;;  %v8327_v59 = vld [vmem:[#allocation11_spill] sm:$0xff] }
 0x253   : > { %6136 = vmatprep.subr.bf16.mxu0 %v6354_v49  ;;  %v7606_v22 = vadd.s32 8, %v8327_v59  ;;  %v2762_v46 = vand.u32 15, %v8327_v59  ;;  %v7612_v19 = vadd.s32 16, %v8327_v59 }
 0x255   : > { %vm2910_vm10 = vcmp.eq.s32.totalorder %v2762_v46, 0 }
 0x256   : > { %6138 = vmatpush1.bf16.msra.mxu0 %v6137_v44  ;;  %v2769_v44 = vand.u32 15, %v7606_v22 }
 0x257   : > { %6139 = vmatprep.subr.bf16.mxu0 %v6354_v49 }
 0x258   : > { %vm2943_vm11 = vcmp.eq.s32.totalorder %v2769_v44, 15 }
 0x25a   : > { %6141 = vmatpush1.bf16.msra.mxu0 %v6140_v37 }
 0x25b   : > { %6142 = vmatprep.subr.bf16.mxu0 %v6354_v49 }
 0x25e   : > { %6144 = vmatpush1.bf16.msra.mxu0 %v6143_v23  ;;  %v2776_v23 = vand.u32 15, %v7612_v19 }
 0x260   : > { %vm2912_vm12 = vcmp.eq.s32.totalorder %v2776_v23, 0 }
 0x2af   : > { %v5802_v5 = vpop.f32.mrb[16].mxu1 }
 0x2b0   : > { %v2589_v62 = vpop.f32.mrb[17].mxu1 }
 0x2dc   : > { %v5805_v53 = vpop.f32.mrb[18].mxu1 }
 0x2dd   : > { %v2599_v25 = vpop.f32.mrb[19].mxu1 }
 0x2f4   : > { %v5808_v63 = vpop.f32.mrb[20].mxu1 }
 0x2f5   : > { %v2609_v24 = vpop.f32.mrb[21].mxu1 }
 0x2fe   : > { %v5811_v0 = vpop.f32.mrb[22].mxu1 }
 0x2ff   : > { %v2619_v10 = vpop.f32.mrb[23].mxu1 }
 0x302   : > { %v5846_v56 = vpop.f32.mrb[24].mxu1 }
 0x303   : > { %v2751_v39 = vmax.f32 %v5802_v5, %v5846_v56  ;;  %v2711_v4 = vpop.f32.mrb[25].mxu1  ;;  %v598_v56 = vadd.s32 40, %v8327_v59 }
 0x304   : > { %v2750_v35 = vmax.f32 %v2589_v62, %v2711_v4 }
 0x305   : > { %v2863_v8 = vrot.slane %v2751_v39, 7  ;;  %v2887_v21 = vrot.slane %v2751_v39, 1  ;;  %2976 = vrot.lane.b32.xlu1 %v2751_v39, %s8292_s29 }
 0x306   : > { %v2862_v2 = vrot.slane %v2750_v35, 7  ;;  %v2886_v32 = vrot.slane %v2750_v35, 1  ;;  %2974 = vrot.lane.b32.xlu0 %v2750_v35, %s8292_s29  ;;  %v5849_v30 = vpop.f32.mrb[26].mxu1  ;;  %v8329_v35 = vld [vmem:[#allocation14_spill] sm:$0xff] }
 0x307   : > { %v2753_v60 = vmax.f32 %v5805_v53, %v5849_v30  ;;  %v2721_v13 = vpop.f32.mrb[27].mxu1 }
 0x308   : > { %v2752_v18 = vmax.f32 %v2599_v25, %v2721_v13  ;;  %v2888_v45 = vsel %vm866_vm0, %v2886_v32, %v2887_v21  ;;  %v2864_v58 = vsel %vm817_vm2, %v2862_v2, %v2863_v8  ;;  %v2885_v61 = vsel %vm817_vm2, 0.0, %v2862_v2 }
 0x309   : > { %v2891_v9 = vrot.slane %v2753_v60, 1  ;;  %5456 = vmatprep.mubr.msk.f32.mxu0 %vm1172_vm8, %v2888_v45  ;;  %2980 = vrot.lane.b32.xlu1 %v2753_v60, %s8292_s29  ;;  %v2867_v7 = vrot.slane %v2753_v60, 7  ;;  %v2934_v36 = vsel %vm2910_vm10, 0.0, %v2885_v61  ;;  %v2797_v32 = vand.u32 15, %v598_v56  ;;  %v5471_v56 = vld [vmem:[%s8235_s6 + $0x58] sm:$0xff] }
 0x30a   : > { %v2865_v14 = vrot.slane %v2752_v18, 7  ;;  %v2889_v51 = vrot.slane %v2752_v18, 1  ;;  %2978 = vrot.lane.b32.xlu0 %v2752_v18, %s8292_s29  ;;  %v5852_v50 = vpop.f32.mrb[28].mxu1  ;;  %v599_v60 = vadd.s32 48, %v8327_v59 }
 0x30b   : > { %v2755_v55 = vmax.f32 %v5808_v63, %v5852_v50  ;;  %v2731_v29 = vpop.f32.mrb[29].mxu1  ;;  %v8328_v63 = vld [vmem:[#allocation12_spill] sm:$0xff] }
 0x30c   : > { %v2754_v11 = vmax.f32 %v2609_v24, %v2731_v29  ;;  %v2890_v57 = vsel %vm866_vm0, %v2887_v21, %v2889_v51  ;;  %v2892_v6 = vsel %vm866_vm0, %v2889_v51, %v2891_v9  ;;  %v2866_v41 = vsel %vm817_vm2, %v2863_v8, %v2865_v14 }
 0x30d   : > { %v2895_v33 = vrot.slane %v2755_v55, 1  ;;  %2984 = vrot.lane.b32.xlu1 %v2755_v55, %s8292_s29  ;;  %v2871_v12 = vrot.slane %v2755_v55, 7  ;;  %v2868_v28 = vsel %vm817_vm2, %v2865_v14, %v2867_v7  ;;  %v2967_v25 = vsel %vm2943_vm11, 0.0, %v2890_v57  ;;  %v8330_v14 = vld [vmem:[#allocation13_spill] sm:$0xff] }
 0x30e   : > { %v2869_v31 = vrot.slane %v2754_v11, 7  ;;  %v2893_v1 = vrot.slane %v2754_v11, 1  ;;  %2982 = vrot.lane.b32.xlu0 %v2754_v11, %s8292_s29  ;;  %v5855_v48 = vpop.f32.mrb[30].mxu1  ;;  %v2783_v24 = vand.u32 15, %v8328_v63  ;;  %v2936_v39 = vsel %vm2912_vm12, 0.0, %v2866_v41 }
 0x30f   : > { %v7590_v17 = vmax.f32 %v5811_v0, %v5855_v48  ;;  %v2741_v42 = vpop.f32.mrb[31].mxu1  ;;  %v2790_v8 = vand.u32 15, %v8329_v35  ;;  %vm2947_vm11 = vcmp.eq.s32.totalorder %v2797_v32, 15  ;;  %v2811_v51 = vand.u32 15, %v8330_v14  ;;  %v3577_v48 = vld [vmem:[%s8235_s6 + $0x10] sm:$0xff] }
 0x310   : > { %v2756_v34 = vmax.f32 %v2619_v10, %v2741_v42  ;;  %v2894_v40 = vsel %vm866_vm0, %v2891_v9, %v2893_v1  ;;  %v2896_v16 = vsel %vm866_vm0, %v2893_v1, %v2895_v33  ;;  %v2870_v54 = vsel %vm817_vm2, %v2867_v7, %v2869_v31  ;;  %v3579_v42 = vld [vmem:[%s8235_s6 + $0x20] sm:$0xff] }
 0x311   : > { %v2875_v27 = vrot.slane %v7590_v17, 7  ;;  %v2899_v15 = vrot.slane %v7590_v17, 1  ;;  %2988 = vrot.lane.b32.xlu1 %v7590_v17, %s8292_s29  ;;  %v2872_v47 = vsel %vm817_vm2, %v2869_v31, %v2871_v12  ;;  %vm2945_vm13 = vcmp.eq.s32.totalorder %v2783_v24, 15  ;;  %v3576_v31 = vld [vmem:[%s8235_s6 + $0x8] sm:$0xff] }
 0x312   : > { %v2873_v38 = vrot.slane %v2756_v34, 7  ;;  %v2897_v20 = vrot.slane %v2756_v34, 1  ;;  %2986 = vrot.lane.b32.xlu0 %v2756_v34, %s8292_s29  ;;  %v2969_v2 = vsel %vm2945_vm13, 0.0, %v2894_v40  ;;  %vm2914_vm10 = vcmp.eq.s32.totalorder %v2790_v8, 0  ;;  %v3580_v34 = vld [vmem:[%s8235_s6 + $0x28] sm:$0xff] }
 0x313   : > { %v2938_v18 = vsel %vm2914_vm10, 0.0, %v2870_v54  ;;  %v2909_v29 = vsel %vm866_vm0, %v2899_v15, 0.0  ;;  %vm2949_vm13 = vcmp.eq.s32.totalorder %v2811_v51, 15  ;;  %v6153_v40 = vpack.c.bf16 %v3580_v34, %v3579_v42  ;;  %v3582_v54 = vld [vmem:[%s8235_s6 + $0x38] sm:$0xff] }
 0x314   : > { %v2898_v52 = vsel %vm866_vm0, %v2895_v33, %v2897_v20  ;;  %v2900_v3 = vsel %vm866_vm0, %v2897_v20, %v2899_v15  ;;  %v2874_v5 = vsel %vm817_vm2, %v2871_v12, %v2873_v38  ;;  %v2876_v62 = vsel %vm817_vm2, %v2873_v38, %v2875_v27  ;;  %v3575_v12 = vld [vmem:[%s8235_s6] sm:$0xff]  ;;  %v5469_v38 = vld [vmem:[%s8235_s6 + $0x48] sm:$0xff] }
 0x315   : > { %v2971_v7 = vsel %vm2947_vm11, 0.0, %v2898_v52  ;;  %v2973_v41 = vsel %vm2949_vm13, 0.0, %v2909_v29  ;;  %v6145_v1 = vpack.c.bf16 %v3576_v31, %v3575_v12  ;;  %v5468_v15 = vld [vmem:[%s8235_s6 + $0x40] sm:$0xff]  ;;  %vm3350_vm10 = vcmask 517120  }
 0x316   : > { %v7666_v20 = vpack.c.bf16 %v5469_v38, %v5468_v15 }
 0x317   : > { %6146 = vmatprep.subr.bf16.mxu1 %v6145_v1 }
 0x318   : > { %6148 = vmatpush3.bf16.msra.mxu1 %v6145_v1 }
 0x377   : > { %v2977_v53 = vpop.permute.xlu1 %2976 }
 0x378   : > { %v2975_v37 = vpop.permute.xlu0 %2974  ;;  %v2999_v0 = vsel %vm1172_vm8, %v2864_v58, %v2977_v53  ;;  %v2804_v58 = vand.u32 15, %v599_v60 }
 0x379   : > { %v2998_v26 = vsel %vm1172_vm8, %v2934_v36, %v2975_v37 }
 0x37a   : > { %3126 = vmatmul.mubr.f32.vlgmr.msra.gmra.mrb[32].mxu0 %v2998_v26  ;;  %vm2916_vm12 = vcmp.eq.s32.totalorder %v2804_v58, 0 }
 0x37b   : > { %5457 = vmatprep.mubr.msk.f32.mxu0 %vm1172_vm8, %v2967_v25  ;;  %v2981_v21 = vpop.permute.xlu1 %2980  ;;  %v2940_v11 = vsel %vm2916_vm12, 0.0, %v2874_v5 }
 0x37c   : > { %v2979_v10 = vpop.permute.xlu0 %2978  ;;  %v3001_v30 = vsel %vm1172_vm8, %v2868_v28, %v2981_v21  ;;  %v3578_v28 = vld [vmem:[%s8235_s6 + $0x18] sm:$0xff] }
 0x37d   : > { %v3000_v4 = vsel %vm1172_vm8, %v2936_v39, %v2979_v10  ;;  %v6149_v17 = vpack.c.bf16 %v3578_v28, %v3577_v48  ;;  %v5470_v10 = vld [vmem:[%s8235_s6 + $0x50] sm:$0xff] }
 0x37e   : > { %3131 = vmatmul.mubr.f32.gmra.mrb[34].mxu0 %v2999_v0  ;;  %v7691_v58 = vpack.c.bf16 %v5471_v56, %v5470_v10 }
 0x37f   : > { %5458 = vmatprep.mubr.msk.f32.mxu0 %vm1172_vm8, %v2892_v6  ;;  %v2985_v9 = vpop.permute.xlu1 %2984  ;;  %6150 = vmatprep.subr.bf16.mxu1 %v6149_v17 }
 0x380   : > { %v2983_v13 = vpop.permute.xlu0 %2982  ;;  %v3003_v50 = vsel %vm1172_vm8, %v2872_v47, %v2985_v9  ;;  %6152 = vmatpush3.bf16.msra.mxu1 %v6149_v17  ;;  %v7672_v47 = vld [vmem:[%s8234_s5] ss:$0 sm:$0xff] }
 0x381   : > { %v3002_v45 = vsel %vm1172_vm8, %v2938_v18, %v2983_v13  ;;  %6154 = vmatprep.subr.bf16.mxu1 %v6153_v40 }
 0x382   : > { %3136 = vmatmul.mubr.f32.gmra.mrb[36].mxu0 %v3000_v4 }
 0x383   : > { %5459 = vmatprep.mubr.msk.f32.mxu0 %vm1172_vm8, %v2969_v2  ;;  %v2989_v6 = vpop.permute.xlu1 %2988 }
 0x384   : > { %v2987_v55 = vpop.permute.xlu0 %2986  ;;  %v3005_v33 = vsel %vm1172_vm8, %v2876_v62, %v2989_v6  ;;  %6156 = vmatpush3.bf16.msra.mxu1 %v6153_v40 }
 0x385   : > { %v3004_v57 = vsel %vm1172_vm8, %v2940_v11, %v2987_v55 }
 0x386   : > { %3141 = vmatmul.mubr.f32.gmra.mrb[38].mxu0 %v3001_v30 }
 0x387   : > { %5460 = vmatprep.mubr.msk.f32.mxu0 %vm1172_vm8, %v2896_v16  ;;  %v3581_v16 = vld [vmem:[%s8235_s6 + $0x30] sm:$0xff] }
 0x388   : > { %v6157_v27 = vpack.c.bf16 %v3582_v54, %v3581_v16 }
 0x38a   : > { %3146 = vmatmul.mubr.f32.gmra.mrb[40].mxu0 %v3002_v45  ;;  %6158 = vmatprep.subr.bf16.mxu1 %v6157_v27 }
 0x38b   : > { %5461 = vmatprep.mubr.msk.f32.mxu0 %vm1172_vm8, %v2971_v7  ;;  %6160 = vmatpush3.bf16.msra.mxu1 %v6157_v27 }
 0x38c   : > { %6162 = vmatprep.subr.bf16.mxu1 %v7666_v20 }
 0x38e   : > { %3151 = vmatmul.mubr.f32.gmra.mrb[42].mxu0 %v3003_v50 }
 0x38f   : > { %5462 = vmatprep.mubr.msk.f32.mxu0 %vm1172_vm8, %v2900_v3 }
 0x392   : > { %3156 = vmatmul.mubr.f32.gmra.mrb[44].mxu0 %v3004_v57 }
 0x393   : > { %5463 = vmatprep.mubr.msk.f32.mxu0 %vm1172_vm8, %v2973_v41 }
 0x396   : > { %3161 = vmatmul.mubr.f32.gmra.mrb[46].mxu0 %v3005_v33 }
 0x44d   : > { %v3127_v52 = vpop.f32.mrb[32].mxu0 }
 0x44e   : > { %v3128_v3 = vadd.f32 %v7672_v47, %v3127_v52  ;;  %v3129_v5 = vpop.f32.mrb[33].mxu0 }
 0x450   : > { %v3166_v62 = vmax.f32 %v3128_v3, 0.0 }
 0x451   : > { %v3132_v46 = vpop.f32.mrb[34].mxu0 }
 0x452   : > { %v3182_v44 = vcombine.high %v3166_v62, %v3166_v62  ;;  %v3189_v61 = vrot.slane %v3166_v62, %v6910_v43  ;;  %v3133_v37 = vadd.f32 %v7672_v47, %v3132_v46  ;;  %v3134_v36 = vpop.f32.mrb[35].mxu0 }
 0x454   : > { %v3196_v26 = vrot.slane %v3182_v44, %v6910_v43  ;;  %v3197_v23 = vcombine.high %v3189_v61, %v3189_v61  ;;  %v3351_v53 = vsel %vm3350_vm10, %v3189_v61, -inf  ;;  %v3167_v25 = vmax.f32 %v3133_v37, 0.0 }
 0x455   : > { %v3352_v24 = vrot.slane %v3351_v53, 4  ;;  %v3137_v0 = vpop.f32.mrb[36].mxu0 }
 0x456   : > { %v3198_v39 = vcombine.high %v3196_v26, %v3196_v26  ;;  %v3358_v4 = vsel %vm3350_vm10, %v3197_v23, -inf  ;;  %v3365_v35 = vsel %vm3350_vm10, %v3196_v26, -inf  ;;  %v3199_v8 = vcombine.high %v3167_v25, %v3167_v25  ;;  %v3139_v21 = vpop.f32.mrb[37].mxu0 }
 0x457   : > { %v3353_v2 = vmax.f32 %v3351_v53, %v3352_v24  ;;  %v3359_v32 = vrot.slane %v3358_v4, 4  ;;  %v3366_v30 = vrot.slane %v3365_v35, 4  ;;  %v3206_v60 = vrot.slane %v3167_v25, %v6910_v43 }
 0x458   : > { %v3372_v13 = vsel %vm3350_vm10, %v3198_v39, -inf  ;;  %v3213_v18 = vrot.slane %v3199_v8, %v6910_v43  ;;  %v3138_v45 = vadd.f32 %v7672_v47, %v3137_v0 }
 0x459   : > { %v3354_v9 = vrot.slane %v3353_v2, 2  ;;  %v3360_v7 = vmax.f32 %v3358_v4, %v3359_v32  ;;  %v3367_v14 = vmax.f32 %v3365_v35, %v3366_v30  ;;  %v3373_v51 = vrot.slane %v3372_v13, 4  ;;  %v3142_v50 = vpop.f32.mrb[38].mxu0 }
 0x45a   : > { %v3214_v55 = vcombine.high %v3206_v60, %v3206_v60  ;;  %v3215_v29 = vcombine.high %v3213_v18, %v3213_v18  ;;  %v3379_v11 = vsel %vm3350_vm10, %v3206_v60, -inf  ;;  %v3393_v57 = vsel %vm3350_vm10, %v3213_v18, -inf  ;;  %v3144_v6 = vpop.f32.mrb[39].mxu0 }
 0x45b   : > { %v3355_v41 = vmax.f32 %v3353_v2, %v3354_v9  ;;  %v3361_v33 = vrot.slane %v3360_v7, 2  ;;  %v3368_v12 = vrot.slane %v3367_v14, 2  ;;  %v3374_v31 = vmax.f32 %v3372_v13, %v3373_v51 }
 0x45c   : > { %v3380_v1 = vrot.slane %v3379_v11, 4  ;;  %v3386_v48 = vsel %vm3350_vm10, %v3214_v55, -inf  ;;  %v3394_v28 = vrot.slane %v3393_v57, 4  ;;  %v3400_v17 = vsel %vm3350_vm10, %v3215_v29, -inf }
 0x45d   : > { %v3356_v42 = vrot.slane %v3355_v41, 1  ;;  %v3362_v34 = vmax.f32 %v3360_v7, %v3361_v33  ;;  %v3369_v40 = vmax.f32 %v3367_v14, %v3368_v12  ;;  %v3375_v16 = vrot.slane %v3374_v31, 2  ;;  %v3147_v54 = vpop.f32.mrb[40].mxu0 }
 0x45e   : > { %v3381_v27 = vmax.f32 %v3379_v11, %v3380_v1  ;;  %v3387_v15 = vrot.slane %v3386_v48, 4  ;;  %v3395_v38 = vmax.f32 %v3393_v57, %v3394_v28  ;;  %v3401_v52 = vrot.slane %v3400_v17, 4  ;;  %v3149_v3 = vpop.f32.mrb[41].mxu0 }
 0x45f   : > { %v3357_v5 = vmax.f32 %v3355_v41, %v3356_v42  ;;  %v3363_v62 = vrot.slane %v3362_v34, 1  ;;  %v3370_v46 = vrot.slane %v3369_v40, 1  ;;  %v3376_v44 = vmax.f32 %v3374_v31, %v3375_v16 }
 0x460   : > { %v3382_v61 = vrot.slane %v3381_v27, 2  ;;  %v3388_v37 = vmax.f32 %v3386_v48, %v3387_v15  ;;  %v3396_v36 = vrot.slane %v3395_v38, 2  ;;  %v7697_v26 = vmax.f32 %v3400_v17, %v3401_v52 }
 0x461   : > { %v3364_v23 = vmax.f32 %v3362_v34, %v3363_v62  ;;  %v7699_v53 = vmax.f32 %v3369_v40, %v3370_v46  ;;  %v3377_v25 = vrot.slane %v3376_v44, 1  ;;  %v3168_v24 = vmax.f32 %v3138_v45, 0.0  ;;  %v7701_v0 = vpop.f32.mrb[42].mxu0 }
 0x462   : > { %v3383_v10 = vmax.f32 %v3381_v27, %v3382_v61  ;;  %v3389_v56 = vrot.slane %v3388_v37, 2  ;;  %v7703_v39 = vmax.f32 %v3395_v38, %v3396_v36  ;;  %v3143_v4 = vadd.f32 %v7672_v47, %v3142_v50  ;;  %v3154_v35 = vpop.f32.mrb[43].mxu0 }
 0x463   : > { %v7706_v8 = vmax.f32 %v3376_v44, %v3377_v25  ;;  %v7709_v21 = vsel %vm2452_vm14, %v3364_v23, %v3357_v5  ;;  %v3216_v2 = vcombine.high %v3168_v24, %v3168_v24  ;;  %v3223_v32 = vrot.slane %v3168_v24, %v6910_v43 }
 0x464   : > { %v3384_v30 = vrot.slane %v3383_v10, 1  ;;  %v3390_v60 = vmax.f32 %v3388_v37, %v3389_v56  ;;  %v3398_v13 = vrot.slane %v7703_v39, 1  ;;  %v3169_v18 = vmax.f32 %v3143_v4, 0.0 }
 0x465   : > { %v3230_v45 = vrot.slane %v3216_v2, %v6910_v43  ;;  %v3231_v9 = vcombine.high %v3223_v32, %v3223_v32  ;;  %v3407_v7 = vsel %vm3350_vm10, %v3223_v32, -inf  ;;  %v3148_v14 = vadd.f32 %v7672_v47, %v3147_v54  ;;  %v7716_v51 = vpop.f32.mrb[44].mxu0 }
 0x466   : > { %v7718_v50 = vmax.f32 %v3383_v10, %v3384_v30  ;;  %v3391_v55 = vrot.slane %v3390_v60, 1  ;;  %v3408_v29 = vrot.slane %v3407_v7, 4  ;;  %v3233_v11 = vcombine.high %v3169_v18, %v3169_v18  ;;  %v3159_v57 = vpop.f32.mrb[45].mxu0 }
 0x467   : > { %v3232_v6 = vcombine.high %v3230_v45, %v3230_v45  ;;  %v3414_v41 = vsel %vm3350_vm10, %v3231_v9, -inf  ;;  %v3421_v33 = vsel %vm3350_vm10, %v3230_v45, -inf  ;;  %v3240_v12 = vrot.slane %v3169_v18, %v6910_v43 }
 0x468   : > { %v7723_v31 = vmax.f32 %v3390_v60, %v3391_v55  ;;  %v3409_v1 = vmax.f32 %v3407_v7, %v3408_v29  ;;  %v3415_v48 = vrot.slane %v3414_v41, 4  ;;  %v3422_v28 = vrot.slane %v3421_v33, 4 }
 0x469   : > { %v3428_v17 = vsel %vm3350_vm10, %v3232_v6, -inf  ;;  %v3247_v42 = vrot.slane %v3233_v11, %v6910_v43  ;;  %v3248_v34 = vcombine.high %v3240_v12, %v3240_v12  ;;  %v3435_v40 = vsel %vm3350_vm10, %v3240_v12, -inf  ;;  %v7728_v16 = vpop.f32.mrb[46].mxu0 }
 0x46a   : > { %v3410_v54 = vrot.slane %v3409_v1, 2  ;;  %v3416_v27 = vmax.f32 %v3414_v41, %v3415_v48  ;;  %v3423_v15 = vmax.f32 %v3421_v33, %v3422_v28  ;;  %v3429_v38 = vrot.slane %v3428_v17, 4  ;;  %v3164_v52 = vpop.f32.mrb[47].mxu0 }
 0x46b   : > { %v3249_v3 = vcombine.high %v3247_v42, %v3247_v42  ;;  %v3436_v5 = vrot.slane %v3435_v40, 4  ;;  %v3442_v62 = vsel %vm3350_vm10, %v3248_v34, -inf  ;;  %v3449_v46 = vsel %vm3350_vm10, %v3247_v42, -inf }
 0x46c   : > { %v3411_v44 = vmax.f32 %v3409_v1, %v3410_v54  ;;  %v3417_v61 = vrot.slane %v3416_v27, 2  ;;  %v3424_v37 = vrot.slane %v3423_v15, 2  ;;  %v3430_v36 = vmax.f32 %v3428_v17, %v3429_v38 }
 0x46d   : > { %v3437_v23 = vmax.f32 %v3435_v40, %v3436_v5  ;;  %v3443_v25 = vrot.slane %v3442_v62, 4  ;;  %v3450_v24 = vrot.slane %v3449_v46, 4  ;;  %v3456_v10 = vsel %vm3350_vm10, %v3249_v3, -inf }
 0x46e   : > { %v3412_v56 = vrot.slane %v3411_v44, 1  ;;  %v3418_v4 = vmax.f32 %v3416_v27, %v3417_v61  ;;  %v3425_v35 = vmax.f32 %v3423_v15, %v3424_v37  ;;  %v3431_v2 = vrot.slane %v3430_v36, 2 }
 0x46f   : > { %v3438_v32 = vrot.slane %v3437_v23, 2  ;;  %v3444_v30 = vmax.f32 %v3442_v62, %v3443_v25  ;;  %v3451_v60 = vmax.f32 %v3449_v46, %v3450_v24  ;;  %v3457_v18 = vrot.slane %v3456_v10, 4 }
 0x470   : > { %v3413_v45 = vmax.f32 %v3411_v44, %v3412_v56  ;;  %v3419_v9 = vrot.slane %v3418_v4, 1  ;;  %v3426_v7 = vrot.slane %v3425_v35, 1  ;;  %v3432_v55 = vmax.f32 %v3430_v36, %v3431_v2 }
 0x471   : > { %v3439_v29 = vmax.f32 %v3437_v23, %v3438_v32  ;;  %v3445_v11 = vrot.slane %v3444_v30, 2  ;;  %v3452_v57 = vrot.slane %v3451_v60, 2  ;;  %v3458_v6 = vmax.f32 %v3456_v10, %v3457_v18 }
 0x472   : > { %v3420_v41 = vmax.f32 %v3418_v4, %v3419_v9  ;;  %v3427_v33 = vmax.f32 %v3425_v35, %v3426_v7  ;;  %v3433_v12 = vrot.slane %v3432_v55, 1  ;;  %v3170_v1 = vmax.f32 %v3148_v14, 0.0 }
 0x473   : > { %v3440_v48 = vrot.slane %v3439_v29, 1  ;;  %v3446_v28 = vmax.f32 %v3444_v30, %v3445_v11  ;;  %v3453_v17 = vmax.f32 %v3451_v60, %v3452_v57  ;;  %v3459_v42 = vrot.slane %v3458_v6, 2 }
 0x474   : > { %v3434_v34 = vmax.f32 %v3432_v55, %v3433_v12  ;;  %v3622_v40 = vsel %vm2452_vm14, %v3420_v41, %v3413_v45  ;;  %v3250_v54 = vcombine.high %v3170_v1, %v3170_v1  ;;  %v3257_v27 = vrot.slane %v3170_v1, %v6910_v43 }
 0x475   : > { %v3623_v15 = vsel %vm2454_vm15, %v3427_v33, %v3622_v40  ;;  %v3441_v38 = vmax.f32 %v3439_v29, %v3440_v48  ;;  %v3447_v52 = vrot.slane %v3446_v28, 1  ;;  %v3454_v3 = vrot.slane %v3453_v17, 1 }
 0x476   : > { %v7736_v5 = vmax.f32 %v3458_v6, %v3459_v42  ;;  %v3624_v62 = vsel %vm2456_vm1, %v3434_v34, %v3623_v15  ;;  %v3264_v14 = vrot.slane %v3250_v54, %v6910_v43  ;;  %v3265_v46 = vcombine.high %v3257_v27, %v3257_v27 }
 0x477   : > { %v7740_v44 = vmax.f32 %v3446_v28, %v3447_v52  ;;  %v7742_v61 = vmax.f32 %v3453_v17, %v3454_v3  ;;  %v7745_v37 = vsel %vm2458_vm3, %v3441_v38, %v3624_v62  ;;  %v3463_v36 = vsel %vm3350_vm10, %v3257_v27, -inf }
 0x478   : > { %v3461_v23 = vrot.slane %v7736_v5, 1  ;;  %v3266_v25 = vcombine.high %v3264_v14, %v3264_v14  ;;  %v3464_v24 = vrot.slane %v3463_v36, 4  ;;  %v3470_v10 = vsel %vm3350_vm10, %v3265_v46, -inf }
 0x479   : > { %v3471_v56 = vrot.slane %v3470_v10, 4  ;;  %v3477_v4 = vsel %vm3350_vm10, %v3264_v14, -inf  ;;  %v3153_v35 = vadd.f32 %v7672_v47, %v7701_v0  ;;  %v3158_v2 = vadd.f32 %v7672_v47, %v7716_v51 }
 0x47a   : > { %v3465_v32 = vmax.f32 %v3463_v36, %v3464_v24  ;;  %v3478_v30 = vrot.slane %v3477_v4, 4  ;;  %v3484_v60 = vsel %vm3350_vm10, %v3266_v25, -inf  ;;  %v3163_v18 = vadd.f32 %v7672_v47, %v7728_v16 }
 0x47b   : > { %v3472_v45 = vmax.f32 %v3470_v10, %v3471_v56  ;;  %v3485_v9 = vrot.slane %v3484_v60, 4  ;;  %v3171_v7 = vmax.f32 %v3153_v35, 0.0  ;;  %v3172_v55 = vmax.f32 %v3158_v2, 0.0 }
 0x47c   : > { %v3466_v29 = vrot.slane %v3465_v32, 2  ;;  %v3479_v11 = vmax.f32 %v3477_v4, %v3478_v30  ;;  %v7758_v57 = vmax.f32 %v3163_v18, 0.0  ;;  %v7763_v0 = vmax.f32 %v7703_v39, %v3398_v13 }
 0x47d   : > { %v3473_v51 = vrot.slane %v3472_v45, 2  ;;  %v3486_v6 = vmax.f32 %v3484_v60, %v3485_v9  ;;  %v3267_v41 = vcombine.high %v3171_v7, %v3171_v7  ;;  %v3274_v33 = vrot.slane %v3171_v7, %v6910_v43 }
 0x47e   : > { %v3467_v12 = vmax.f32 %v3465_v32, %v3466_v29  ;;  %v3480_v47 = vrot.slane %v3479_v11, 2  ;;  %v3284_v16 = vcombine.high %v3172_v55, %v3172_v55  ;;  %v3291_v1 = vrot.slane %v3172_v55, %v6910_v43 }
 0x47f   : > { %v3474_v48 = vmax.f32 %v3472_v45, %v3473_v51  ;;  %v3487_v28 = vrot.slane %v3486_v6, 2  ;;  %v3281_v17 = vrot.slane %v3267_v41, %v6910_v43  ;;  %v3282_v42 = vcombine.high %v3274_v33, %v3274_v33 }
 0x480   : > { %v3468_v34 = vrot.slane %v3467_v12, 1  ;;  %v3481_v40 = vmax.f32 %v3479_v11, %v3480_v47  ;;  %v3491_v39 = vsel %vm3350_vm10, %v3274_v33, -inf  ;;  %v3298_v13 = vrot.slane %v3284_v16, %v6910_v43 }
 0x481   : > { %v3475_v54 = vrot.slane %v3474_v48, 1  ;;  %v3488_v27 = vmax.f32 %v3486_v6, %v3487_v28  ;;  %v3283_v15 = vcombine.high %v3281_v17, %v3281_v17  ;;  %v3492_v38 = vrot.slane %v3491_v39, 4 }
 0x482   : > { %v3469_v52 = vmax.f32 %v3467_v12, %v3468_v34  ;;  %v3482_v3 = vrot.slane %v3481_v40, 1  ;;  %v3498_v62 = vsel %vm3350_vm10, %v3282_v42, -inf  ;;  %v3505_v14 = vsel %vm3350_vm10, %v3281_v17, -inf }
 0x483   : > { %v3476_v46 = vmax.f32 %v3474_v48, %v3475_v54  ;;  %v3489_v36 = vrot.slane %v3488_v27, 1  ;;  %v3493_v25 = vmax.f32 %v3491_v39, %v3492_v38  ;;  %v3499_v24 = vrot.slane %v3498_v62, 4 }
 0x484   : > { %v7772_v10 = vmax.f32 %v3481_v40, %v3482_v3  ;;  %v3506_v56 = vrot.slane %v3505_v14, 4  ;;  %v3512_v4 = vsel %vm3350_vm10, %v3283_v15, -inf  ;;  %v3299_v35 = vcombine.high %v3291_v1, %v3291_v1 }
 0x485   : > { %v7775_v2 = vmax.f32 %v3488_v27, %v3489_v36  ;;  %v7778_v32 = vsel %vm2452_vm14, %v3476_v46, %v3469_v52  ;;  %v3494_v30 = vrot.slane %v3493_v25, 2  ;;  %v3500_v60 = vmax.f32 %v3498_v62, %v3499_v24 }
 0x486   : > { %v3507_v18 = vmax.f32 %v3505_v14, %v3506_v56  ;;  %v3513_v45 = vrot.slane %v3512_v4, 4  ;;  %v3300_v9 = vcombine.high %v3298_v13, %v3298_v13  ;;  %v3519_v7 = vsel %vm3350_vm10, %v3291_v1, -inf }
 0x487   : > { %v3495_v55 = vmax.f32 %v3493_v25, %v3494_v30  ;;  %v3501_v29 = vrot.slane %v3500_v60, 2  ;;  %v3520_v11 = vrot.slane %v3519_v7, 4  ;;  %v3526_v51 = vsel %vm3350_vm10, %v3299_v35, -inf }
 0x488   : > { %v3508_v6 = vrot.slane %v3507_v18, 2  ;;  %v7782_v41 = vmax.f32 %v3512_v4, %v3513_v45  ;;  %v3527_v33 = vrot.slane %v3526_v51, 4  ;;  %v3533_v12 = vsel %vm3350_vm10, %v3298_v13, -inf }
 0x489   : > { %v3496_v47 = vrot.slane %v3495_v55, 1  ;;  %v3502_v16 = vmax.f32 %v3500_v60, %v3501_v29  ;;  %v3521_v48 = vmax.f32 %v3519_v7, %v3520_v11  ;;  %v3534_v28 = vrot.slane %v3533_v12, 4 }
 0x48a   : > { %v7785_v17 = vmax.f32 %v3507_v18, %v3508_v6  ;;  %v3528_v42 = vmax.f32 %v3526_v51, %v3527_v33  ;;  %v3540_v1 = vsel %vm3350_vm10, %v3300_v9, -inf  ;;  %v3301_v34 = vcombine.high %v7758_v57, %v7758_v57 }
 0x48b   : > { %v7790_v40 = vmax.f32 %v3495_v55, %v3496_v47  ;;  %v3503_v39 = vrot.slane %v3502_v16, 1  ;;  %v3522_v54 = vrot.slane %v3521_v48, 2  ;;  %v3535_v27 = vmax.f32 %v3533_v12, %v3534_v28 }
 0x48c   : > { %v3510_v15 = vrot.slane %v7785_v17, 1  ;;  %v3529_v13 = vrot.slane %v3528_v42, 2  ;;  %v3541_v38 = vrot.slane %v3540_v1, 4  ;;  %v3308_v52 = vrot.slane %v7758_v57, %v6910_v43 }
 0x48d   : > { %v7795_v3 = vmax.f32 %v3502_v16, %v3503_v39  ;;  %v3523_v62 = vmax.f32 %v3521_v48, %v3522_v54  ;;  %v3536_v14 = vrot.slane %v3535_v27, 2  ;;  %v3315_v46 = vrot.slane %v3301_v34, %v6910_v43 }
 0x48e   : > { %v3530_v36 = vmax.f32 %v3528_v42, %v3529_v13  ;;  %v3542_v25 = vmax.f32 %v3540_v1, %v3541_v38  ;;  %v3316_v24 = vcombine.high %v3308_v52, %v3308_v52  ;;  %v3547_v56 = vsel %vm3350_vm10, %v3308_v52, -inf }
 0x48f   : > { %v3524_v4 = vrot.slane %v3523_v62, 1  ;;  %v3537_v35 = vmax.f32 %v3535_v27, %v3536_v14  ;;  %v3317_v30 = vcombine.high %v3315_v46, %v3315_v46  ;;  %v3548_v60 = vrot.slane %v3547_v56, 4 }
 0x490   : > { %v3531_v18 = vrot.slane %v3530_v36, 1  ;;  %v3543_v45 = vrot.slane %v3542_v25, 2  ;;  %v3554_v9 = vsel %vm3350_vm10, %v3316_v24, -inf  ;;  %v3561_v57 = vsel %vm3350_vm10, %v3315_v46, -inf }
 0x491   : > { %v3525_v7 = vmax.f32 %v3523_v62, %v3524_v4  ;;  %v3538_v55 = vrot.slane %v3537_v35, 1  ;;  %v3549_v29 = vmax.f32 %v3547_v56, %v3548_v60  ;;  %v3555_v11 = vrot.slane %v3554_v9, 4 }
 0x492   : > { %v3532_v51 = vmax.f32 %v3530_v36, %v3531_v18  ;;  %v3544_v6 = vmax.f32 %v3542_v25, %v3543_v45  ;;  %v3562_v33 = vrot.slane %v3561_v57, 4  ;;  %v3568_v12 = vsel %vm3350_vm10, %v3317_v30, -inf }
 0x493   : > { %v3539_v47 = vmax.f32 %v3537_v35, %v3538_v55  ;;  %v3550_v16 = vrot.slane %v3549_v29, 2  ;;  %v3556_v48 = vmax.f32 %v3554_v9, %v3555_v11  ;;  %v3569_v28 = vrot.slane %v3568_v12, 4 }
 0x494   : > { %v3545_v42 = vrot.slane %v3544_v6, 1  ;;  %v3636_v1 = vsel %vm2452_vm14, %v3532_v51, %v3525_v7  ;;  %v3563_v34 = vmax.f32 %v3561_v57, %v3562_v33  ;;  %v3403_v39 = vrot.slane %v7697_v26, 2 }
 0x495   : > { %v3551_v54 = vmax.f32 %v3549_v29, %v3550_v16  ;;  %v3557_v27 = vrot.slane %v3556_v48, 2  ;;  %v3570_v13 = vmax.f32 %v3568_v12, %v3569_v28  ;;  %v3616_v38 = vsel %vm2454_vm15, %v7699_v53, %v7709_v21 }
 0x496   : > { %v3546_v52 = vmax.f32 %v3544_v6, %v3545_v42  ;;  %v3564_v62 = vrot.slane %v3563_v34, 2  ;;  %v3404_v14 = vmax.f32 %v7697_v26, %v3403_v39  ;;  %v3617_v46 = vsel %vm2456_vm1, %v7706_v8, %v3616_v38  ;;  %v3979_v42 = vld [vmem:[%s8236_s7 + $0x8] sm:$0xff]  ;;  %v3981_v39 = vld [vmem:[%s8236_s7 + $0x18] sm:$0xff] }
 0x497   : > { %v3552_v36 = vrot.slane %v3551_v54, 1  ;;  %v3558_v25 = vmax.f32 %v3556_v48, %v3557_v27  ;;  %v3618_v24 = vsel %vm2458_vm3, %v7718_v50, %v3617_v46  ;;  %v3462_v56 = vmax.f32 %v7736_v5, %v3461_v23  ;;  %v3982_v27 = vld [vmem:[%s8236_s7 + $0x20] sm:$0xff] }
 0x498   : > { %v3565_v4 = vmax.f32 %v3563_v34, %v3564_v62  ;;  %v3405_v35 = vrot.slane %v3404_v14, 1  ;;  %v3619_v53 = vsel %vm2460_vm4, %v7723_v31, %v3618_v24  ;;  %v3626_v26 = vsel %vm2460_vm4, %v7740_v44, %v7745_v37  ;;  %v3985_v62 = vld [vmem:[%s8236_s7 + $0x38] sm:$0xff]  ;;  %v3987_v24 = vld [vmem:[%s8236_s7 + $0x48] sm:$0xff] }
 0x499   : > { %v3553_v21 = vmax.f32 %v3551_v54, %v3552_v36  ;;  %v3559_v8 = vrot.slane %v3558_v25, 1  ;;  %v3620_v30 = vsel %vm8270_vm5, %v7763_v0, %v3619_v53  ;;  %v3627_v50 = vsel %vm8270_vm5, %v7742_v61, %v3626_v26  ;;  %v3988_v53 = vld [vmem:[%s8236_s7 + $0x50] sm:$0xff]  ;;  %v3989_v26 = vld [vmem:[%s8236_s7 + $0x58] sm:$0xff] }
 0x49a   : > { %v3566_v60 = vrot.slane %v3565_v4, 1  ;;  %v3406_v18 = vmax.f32 %v3404_v14, %v3405_v35  ;;  %v3628_v5 = vsel %vm8269_vm6, %v3462_v56, %v3627_v50  ;;  %v3511_v23 = vmax.f32 %v7785_v17, %v3510_v15 }
 0x49b   : > { %v3560_v45 = vmax.f32 %v3558_v25, %v3559_v8  ;;  %v3515_v31 = vrot.slane %v7782_v41, 2  ;;  %v3630_v44 = vsel %vm2454_vm15, %v7772_v10, %v7778_v32  ;;  %v3571_v37 = vrot.slane %v3570_v13, 2  ;;  %v5472_v10 = vld [vmem:[%s8235_s6 + $0x60] sm:$0xff]  ;;  %v5473_v32 = vld [vmem:[%s8235_s6 + $0x68] sm:$0xff] }
 0x49c   : > { %v3621_v9 = vsel %vm8269_vm6, %v3406_v18, %v3620_v30  ;;  %v3631_v0 = vsel %vm2456_vm1, %v7775_v2, %v3630_v44  ;;  %v3567_v61 = vmax.f32 %v3565_v4, %v3566_v60  ;;  %v3637_v57 = vsel %vm2454_vm15, %v3539_v47, %v3636_v1  ;;  %v3980_v1 = vld [vmem:[%s8236_s7 + $0x10] sm:$0xff]  ;;  %v3986_v25 = vld [vmem:[%s8236_s7 + $0x40] sm:$0xff] }
 0x49d   : > { %5872 = vmatprep.mubr.msk.f32.mxu1 %vm1172_vm8, %v3621_v9  ;;  %v3516_v17 = vmax.f32 %v7782_v41, %v3515_v31  ;;  %v3632_v15 = vsel %vm2458_vm3, %v7790_v40, %v3631_v0  ;;  %v3572_v7 = vmax.f32 %v3570_v13, %v3571_v37  ;;  %v3638_v2 = vsel %vm2456_vm1, %v3546_v52, %v3637_v57  ;;  %v3983_v13 = vld [vmem:[%s8236_s7 + $0x28] sm:$0xff]  ;;  %v3984_v52 = vld [vmem:[%s8236_s7 + $0x30] sm:$0xff] }
 0x49e   : > { %5873 = vmatmul.mubr.msk.f32.vlgmr.msra.gmra.mrb[32].mxu1 %vm1172_vm8, %v3628_v5  ;;  %v3633_v55 = vsel %vm2460_vm4, %v7795_v3, %v3632_v15  ;;  %v3639_v41 = vsel %vm2458_vm3, %v3553_v21, %v3638_v2  ;;  %v6169_v6 = vpack.c.bf16 %v5473_v32, %v5472_v10  ;;  %v5474_v3 = vld [vmem:[%s8235_s6 + $0x70] sm:$0xff]  ;;  %v6181_v54 = vpack.c.bf16 %v3981_v39, %v3980_v1 }
 0x49f   : > { %6164 = vmatpush3.bf16.msra.mxu1 %v7666_v20  ;;  %v3517_v40 = vrot.slane %v3516_v17, 1  ;;  %v3634_v29 = vsel %vm8270_vm5, %v3511_v23, %v3633_v55  ;;  %v3573_v11 = vrot.slane %v3572_v7, 1  ;;  %v3640_v51 = vsel %vm2460_vm4, %v3560_v45, %v3639_v41  ;;  %v5475_v20 = vld [vmem:[%s8235_s6 + $0x78] sm:$0xff] }
 0x4a0   : > { %6166 = vmatprep.subr.bf16.mxu1 %v7691_v58  ;;  %v3641_v33 = vsel %vm8270_vm5, %v3567_v61, %v3640_v51  ;;  %v6173_v28 = vpack.c.bf16 %v5475_v20, %v5474_v3  ;;  %v6185_v38 = vpack.c.bf16 %v3983_v13, %v3982_v27  ;;  %v6189_v14 = vpack.c.bf16 %v3985_v62, %v3984_v52 }
 0x4a1   : > { %v3518_v12 = vmax.f32 %v3516_v17, %v3517_v40  ;;  %v3574_v47 = vmax.f32 %v3572_v7, %v3573_v11  ;;  %v6193_v4 = vpack.c.bf16 %v3987_v24, %v3986_v25  ;;  %v6197_v21 = vpack.c.bf16 %v3989_v26, %v3988_v53  ;;  %v4299_v26 = vld [vmem:[%s8238_s9] sm:$0xff] }
 0x4a2   : > { %v3838_v8 = vand.u32 7, %v8327_v59  ;;  %v3845_v50 = vand.u32 7, %v7606_v22  ;;  %v3859_v0 = vand.u32 7, %v8328_v63  ;;  %v3852_v10 = vand.u32 7, %v7612_v19 }
 0x4a3   : > { %v3635_v16 = vsel %vm8269_vm6, %v3518_v12, %v3634_v29  ;;  %6168 = vmatpush3.bf16.msra.mxu1 %v7691_v58  ;;  %v3642_v48 = vsel %vm8269_vm6, %v3574_v47, %v3641_v33  ;;  %v3978_v58 = vld [vmem:[%s8236_s7] sm:$0xff] }
 0x4a4   : > { %5875 = vmatprep.mubr.msk.f32.mxu1 %vm1172_vm8, %v3635_v16  ;;  %6170 = vmatprep.subr.bf16.mxu1 %v6169_v6  ;;  %v6177_v34 = vpack.c.bf16 %v3979_v42, %v3978_v58  ;;  %vm7909_vm11 = vcmp.eq.s32.totalorder %v3838_v8, 7  ;;  %vm7915_vm12 = vcmp.eq.s32.totalorder %v3845_v50, 0  ;;  %vm7919_vm13 = vcmp.eq.s32.totalorder %v3845_v50, 7  ;;  %v4302_v50 = vld [vmem:[%s8238_s9 + $0x18] sm:$0xff] }
 0x4a5   : > { %5876 = vmatmul.mubr.msk.f32.gmra.mrb[34].mxu1 %vm1172_vm8, %v3642_v48  ;;  %vm7924_vm10 = vcmp.eq.s32.totalorder %v3838_v8, 0  ;;  %vm7939_vm6 = vcmp.eq.s32.totalorder %v3859_v0, 0  ;;  %vm7943_vm5 = vcmp.eq.s32.totalorder %v3852_v10, 0 }
 0x4a6   : > { %5894 = vmatprep.mubr.msk.f32.mxu1 %vm1172_vm8, %v3621_v9  ;;  %6178 = vmatprep.subr.bf16.mxu0 %v6177_v34 }
 0x4a7   : > { %6172 = vmatpush3.bf16.msra.mxu1 %v6169_v6  ;;  %6180 = vmatpush3.bf16.msra.mxu0 %v6177_v34 }
 0x4a8   : > { %6174 = vmatprep.subr.bf16.mxu1 %v6173_v28  ;;  %6182 = vmatprep.subr.bf16.mxu0 %v6181_v54 }
 0x4ab   : > { %6176 = vmatpush3.bf16.msra.mxu1 %v6173_v28  ;;  %6184 = vmatpush3.bf16.msra.mxu0 %v6181_v54 }
 0x4ac   : > { %6186 = vmatprep.subr.bf16.mxu0 %v6185_v38 }
 0x4ae   : > { %5895 = vmatmul.mubr.msk.f32.vlgmr.msra.gmra.mrb[36].mxu1 %vm1172_vm8, %v3628_v5 }
 0x4af   : > { %5897 = vmatprep.mubr.msk.f32.mxu1 %vm1172_vm8, %v3635_v16  ;;  %6188 = vmatpush3.bf16.msra.mxu0 %v6185_v38 }
 0x4b0   : > { %6190 = vmatprep.subr.bf16.mxu0 %v6189_v14 }
 0x4b2   : > { %5898 = vmatmul.mubr.msk.f32.gmra.mrb[38].mxu1 %vm1172_vm8, %v3642_v48 }
 0x4b3   : > { %6192 = vmatpush3.bf16.msra.mxu0 %v6189_v14 }
 0x4b4   : > { %6194 = vmatprep.subr.bf16.mxu0 %v6193_v4 }
 0x4b7   : > { %6196 = vmatpush3.bf16.msra.mxu0 %v6193_v4 }
 0x4b8   : > { %6198 = vmatprep.subr.bf16.mxu0 %v6197_v21 }
 0x4bb   : > { %6200 = vmatpush3.bf16.msra.mxu0 %v6197_v21  ;;  %v4300_v21 = vld [vmem:[%s8238_s9 + $0x8] sm:$0xff] }
 0x4bc   : > { %6229 = vmatprep.subr.bf16.mxu0 %v6354_v49  ;;  %v6201_v8 = vpack.c.bf16 %v4300_v21, %v4299_v26 }
 0x4be   : > { %6202 = vmatprep.subr.bf16.mxu1 %v6201_v8 }
 0x4bf   : > { %6204 = vmatpush3.bf16.msra.mxu1 %v6201_v8 }
 0x571   : > { %v5874_v46 = vpop.f32.mrb[32].mxu1 }
 0x572   : > { %v3717_v36 = vpop.f32.mrb[33].mxu1 }
 0x578   : > { %v5877_v56 = vpop.f32.mrb[34].mxu1 }
 0x579   : > { %v3727_v35 = vpop.f32.mrb[35].mxu1 }
 0x581   : > { %v5896_v30 = vpop.f32.mrb[36].mxu1 }
 0x582   : > { %v3831_v60 = vmax.f32 %v5874_v46, %v5896_v30  ;;  %v3811_v18 = vpop.f32.mrb[37].mxu1  ;;  %v4301_v30 = vld [vmem:[%s8238_s9 + $0x10] sm:$0xff] }
 0x583   : > { %v3830_v5 = vmax.f32 %v3717_v36, %v3811_v18  ;;  %v5487_v18 = vld [vmem:[%s8238_s9 + $0x20] sm:$0xff] }
 0x584   : > { %v3887_v23 = vrot.slane %v3831_v60, 7  ;;  %v3899_v45 = vrot.slane %v3831_v60, 1  ;;  %3944 = vrot.lane.b32.xlu1 %v3831_v60, %s6355_s30  ;;  %v6205_v60 = vpack.c.bf16 %v4302_v50, %v4301_v30 }
 0x585   : > { %v3886_v44 = vrot.slane %v3830_v5, 7  ;;  %v3898_v37 = vrot.slane %v3830_v5, 1  ;;  %3942 = vrot.lane.b32.xlu0 %v3830_v5, %s6355_s30  ;;  %v5899_v9 = vpop.f32.mrb[38].mxu1  ;;  %v5488_v5 = vld [vmem:[%s8238_s9 + $0x28] sm:$0xff] }
 0x586   : > { %v3833_v57 = vmax.f32 %v5877_v56, %v5899_v9  ;;  %v3821_v17 = vpop.f32.mrb[39].mxu1  ;;  %6206 = vmatprep.subr.bf16.mxu1 %v6205_v60 }
 0x587   : > { %v3832_v7 = vmax.f32 %v3727_v35, %v3821_v17  ;;  %v3900_v2 = vsel %vm866_vm0, %v3898_v37, %v3899_v45  ;;  %v3888_v63 = vsel %vm817_vm2, %v3886_v44, %v3887_v23  ;;  %v3897_v55 = vsel %vm817_vm2, 0.0, %v3886_v44  ;;  %6208 = vmatpush3.bf16.msra.mxu1 %v6205_v60 }
 0x588   : > { %v3891_v41 = vrot.slane %v3833_v57, 7  ;;  %v3903_v40 = vrot.slane %v3833_v57, 1  ;;  %3948 = vrot.lane.b32.xlu1 %v3833_v57, %s6355_s30  ;;  %v3938_v29 = vsel %vm7909_vm11, 0.0, %v3900_v2  ;;  %v3923_v19 = vsel %vm7915_vm12, 0.0, %v3888_v63 }
 0x589   : > { %v3889_v11 = vrot.slane %v3832_v7, 7  ;;  %v3901_v51 = vrot.slane %v3832_v7, 1  ;;  %3958 = vrot.lane.b32.xlu0 %v3938_v29, %s8292_s29  ;;  %v3922_v6 = vsel %vm7924_vm10, 0.0, %v3897_v55  ;;  %vm3928_vm11 = vcmp.eq.s32.totalorder %v3852_v10, 7 }
 0x58a   : > { %v3909_v58 = vsel %vm866_vm0, %v3903_v40, 0.0  ;;  %vm3929_vm12 = vcmp.eq.s32.totalorder %v3859_v0, 7 }
 0x58b   : > { %v3902_v47 = vsel %vm866_vm0, %v3899_v45, %v3901_v51  ;;  %v3904_v3 = vsel %vm866_vm0, %v3901_v51, %v3903_v40  ;;  %v3892_v20 = vsel %vm817_vm2, %v3889_v11, %v3891_v41  ;;  %v3890_v28 = vsel %vm817_vm2, %v3887_v23, %v3889_v11  ;;  %v5480_v45 = vld [vmem:[%s8237_s8] ss:$0 sm:$0xff] }
 0x58c   : > { %v3939_v16 = vsel %vm7919_vm13, 0.0, %v3902_v47  ;;  %v3925_v48 = vsel %vm7939_vm6, 0.0, %v3892_v20  ;;  %v3924_v42 = vsel %vm7943_vm5, 0.0, %v3890_v28  ;;  %v3940_v1 = vsel %vm3928_vm11, 0.0, %v3904_v3 }
 0x58d   : > { %3946 = vrot.lane.b32.xlu0 %v3832_v7, %s6355_s30  ;;  %3960 = vrot.lane.b32.xlu1 %v3939_v16, %s8292_s29  ;;  %v3941_v34 = vsel %vm3929_vm12, 0.0, %v3909_v58  ;;  %v7992_v23 = vpack.c.bf16 %v5488_v5, %v5487_v18  ;;  %vm8344_vm5 = vcmask 1047559  }
 0x58e   : > { %vm8346_vm13 = vmmov %vm8344_vm5 }
 0x58f   : > { %6210 = vmatprep.subr.bf16.mxu1 %v7992_v23 }
 0x591   : > { %3962 = vrot.lane.b32.xlu0 %v3940_v1, %s8292_s29  ;;  %3964 = vrot.lane.b32.xlu1 %v3941_v34, %s8292_s29  ;;  %s6356_s29 = smov 16  }
 0x5f6   : > { %v3945_v39 = vpop.permute.xlu1 %3944 }
 0x5f7   : > { %v3943_v54 = vpop.permute.xlu0 %3942  ;;  %v3971_v62 = vsel %vm1232_vm7, %v3923_v19, %v3945_v39 }
 0x5f8   : > { %v3970_v13 = vsel %vm1232_vm7, %v3922_v6, %v3943_v54 }
 0x5fa   : > { %v3949_v27 = vpop.permute.xlu1 %3948 }
 0x5fb   : > { %v3959_v38 = vpop.permute.xlu0 %3958  ;;  %v3973_v25 = vsel %vm1232_vm7, %v3925_v48, %v3949_v27 }
 0x5fc   : > { %v3974_v52 = vsel %vm1172_vm8, %v3970_v13, %v3959_v38 }
 0x5fd   : > { %5924 = vmatprep.mubr.msk.f32.mxu0 %vm1155_vm9, %v3974_v52 }
 0x5ff   : > { %v3947_v14 = vpop.permute.xlu0 %3946  ;;  %v3961_v46 = vpop.permute.xlu1 %3960 }
 0x600   : > { %v3975_v36 = vsel %vm1172_vm8, %v3971_v62, %v3961_v46  ;;  %v3972_v24 = vsel %vm1232_vm7, %v3924_v42, %v3947_v14 }
 0x601   : > { %5925 = vmatmul.mubr.msk.f32.vlgmr.msra.gmra.mrb[48].mxu0 %vm1155_vm9, %v3975_v36 }
 0x603   : > { %v3963_v56 = vpop.permute.xlu0 %3962  ;;  %v3965_v4 = vpop.permute.xlu1 %3964 }
 0x604   : > { %v3976_v35 = vsel %vm1172_vm8, %v3972_v24, %v3963_v56  ;;  %v3977_v53 = vsel %vm1172_vm8, %v3973_v25, %v3965_v4  ;;  %vm4186_vm8 = vcmask 254976  }
 0x605   : > { %5927 = vmatprep.mubr.msk.f32.mxu0 %vm1155_vm9, %v3976_v35 }
 0x606   : > { %5928 = vmatmul.mubr.msk.f32.gmra.mrb[50].mxu0 %vm1155_vm9, %v3977_v53  ;;  %vm8343_vm9 = vcmask 1046534  }
 0x607   : > { %vm8345_vm6 = vmmov %vm8343_vm9 }
 0x6d4   : > { %v5926_v31 = vpop.f32.mrb[48].mxu0 }
 0x6d5   : > { %v4081_v44 = vadd.f32 %v5926_v31, %v5480_v45  ;;  %v4075_v37 = vpop.f32.mrb[49].mxu0 }
 0x6d6   : > { %v4076_v9 = vadd.f32 %v5480_v45, %v4075_v37 }
 0x6d7   : > { %v4095_v0 = vmax.f32 %v4081_v44, 0.0 }
 0x6d8   : > { %v4094_v61 = vmax.f32 %v4076_v9, 0.0 }
 0x6d9   : > { %v4119_v57 = vcombine.high %v4095_v0, %v4095_v0  ;;  %v4126_v17 = vrot.slane %v4095_v0, %v6910_v43  ;;  %v5929_v15 = vpop.f32.mrb[50].mxu0 }
 0x6da   : > { %v4102_v10 = vcombine.high %v4094_v61, %v4094_v61  ;;  %v4109_v32 = vrot.slane %v4094_v61, %v6910_v43  ;;  %v4085_v7 = vpop.f32.mrb[51].mxu0  ;;  %v4091_v1 = vadd.f32 %v5929_v15, %v5480_v45 }
 0x6db   : > { %v4133_v2 = vrot.slane %v4119_v57, %v6910_v43  ;;  %v4134_v63 = vcombine.high %v4126_v17, %v4126_v17  ;;  %v4215_v55 = vsel %vm4186_vm8, %v4126_v17, -inf  ;;  %v4086_v24 = vadd.f32 %v5480_v45, %v4085_v7 }
 0x6dc   : > { %v4216_v41 = vrot.slane %v4215_v55, 4  ;;  %v4116_v40 = vrot.slane %v4102_v10, %v6910_v43  ;;  %v4117_v29 = vcombine.high %v4109_v32, %v4109_v32  ;;  %v4187_v19 = vsel %vm4186_vm8, %v4109_v32, -inf }
 0x6dd   : > { %v4135_v11 = vcombine.high %v4133_v2, %v4133_v2  ;;  %v4222_v51 = vsel %vm4186_vm8, %v4134_v63, -inf  ;;  %v4229_v6 = vsel %vm4186_vm8, %v4133_v2, -inf  ;;  %v4188_v33 = vrot.slane %v4187_v19, 4 }
 0x6de   : > { %v4217_v12 = vmax.f32 %v4215_v55, %v4216_v41  ;;  %v4223_v47 = vrot.slane %v4222_v51, 4  ;;  %v4230_v3 = vrot.slane %v4229_v6, 4  ;;  %v4118_v20 = vcombine.high %v4116_v40, %v4116_v40 }
 0x6df   : > { %v4189_v16 = vmax.f32 %v4187_v19, %v4188_v33  ;;  %v4194_v48 = vsel %vm4186_vm8, %v4117_v29, -inf  ;;  %v4201_v28 = vsel %vm4186_vm8, %v4116_v40, -inf  ;;  %v4236_v42 = vsel %vm4186_vm8, %v4135_v11, -inf }
 0x6e0   : > { %v4224_v58 = vmax.f32 %v4222_v51, %v4223_v47  ;;  %v4218_v34 = vrot.slane %v4217_v12, 2  ;;  %v4195_v39 = vrot.slane %v4194_v48, 4  ;;  %v4202_v54 = vrot.slane %v4201_v28, 4 }
 0x6e1   : > { %v4208_v27 = vsel %vm4186_vm8, %v4118_v20, -inf  ;;  %v4231_v13 = vmax.f32 %v4229_v6, %v4230_v3  ;;  %v4190_v38 = vrot.slane %v4189_v16, 2  ;;  %v4237_v36 = vrot.slane %v4236_v42, 4 }
 0x6e2   : > { %v4225_v52 = vrot.slane %v4224_v58, 2  ;;  %v4196_v62 = vmax.f32 %v4194_v48, %v4195_v39  ;;  %v4203_v14 = vmax.f32 %v4201_v28, %v4202_v54  ;;  %v4209_v46 = vrot.slane %v4208_v27, 4 }
 0x6e3   : > { %v4097_v25 = vmax.f32 %v4091_v1, 0.0  ;;  %v4219_v56 = vmax.f32 %v4217_v12, %v4218_v34  ;;  %v4232_v8 = vrot.slane %v4231_v13, 2  ;;  %v4191_v30 = vmax.f32 %v4189_v16, %v4190_v38 }
 0x6e4   : > { %v4197_v4 = vrot.slane %v4196_v62, 2  ;;  %v4204_v35 = vrot.slane %v4203_v14, 2  ;;  %v4210_v53 = vmax.f32 %v4208_v27, %v4209_v46  ;;  %v4226_v21 = vmax.f32 %v4224_v58, %v4225_v52 }
 0x6e5   : > { %v4153_v26 = vcombine.high %v4097_v25, %v4097_v25  ;;  %v4160_v18 = vrot.slane %v4097_v25, %v6910_v43  ;;  %v4096_v31 = vmax.f32 %v4086_v24, 0.0  ;;  %v4220_v44 = vrot.slane %v4219_v56, 1 }
 0x6e6   : > { %v4198_v50 = vmax.f32 %v4196_v62, %v4197_v4  ;;  %v4211_v60 = vrot.slane %v4210_v53, 2  ;;  %v4238_v37 = vmax.f32 %v4236_v42, %v4237_v36  ;;  %v4205_v0 = vmax.f32 %v4203_v14, %v4204_v35 }
 0x6e7   : > { %v4167_v5 = vrot.slane %v4153_v26, %v6910_v43  ;;  %v4168_v45 = vcombine.high %v4160_v18, %v4160_v18  ;;  %v4271_v57 = vsel %vm4186_vm8, %v4160_v18, -inf  ;;  %v4227_v15 = vrot.slane %v4226_v21, 1 }
 0x6e8   : > { %v4199_v9 = vrot.slane %v4198_v50, 1  ;;  %v4233_v10 = vmax.f32 %v4231_v13, %v4232_v8  ;;  %v4192_v32 = vrot.slane %v4191_v30, 1  ;;  %v4272_v7 = vrot.slane %v4271_v57, 4 }
 0x6e9   : > { %v4169_v61 = vcombine.high %v4167_v5, %v4167_v5  ;;  %v4285_v17 = vsel %vm4186_vm8, %v4167_v5, -inf  ;;  %v4212_v2 = vmax.f32 %v4210_v53, %v4211_v60  ;;  %v4278_v63 = vsel %vm4186_vm8, %v4168_v45, -inf }
 0x6ea   : > { %v4286_v55 = vrot.slane %v4285_v17, 4  ;;  %v4136_v41 = vcombine.high %v4096_v31, %v4096_v31  ;;  %v4221_v40 = vmax.f32 %v4219_v56, %v4220_v44  ;;  %v4200_v29 = vmax.f32 %v4198_v50, %v4199_v9 }
 0x6eb   : > { %v4206_v19 = vrot.slane %v4205_v0, 1  ;;  %v4292_v11 = vsel %vm4186_vm8, %v4169_v61, -inf  ;;  %v4273_v51 = vmax.f32 %v4271_v57, %v4272_v7  ;;  %v4279_v6 = vrot.slane %v4278_v63, 4 }
 0x6ec   : > { %v4143_v33 = vrot.slane %v4096_v31, %v6910_v43  ;;  %v4150_v12 = vrot.slane %v4136_v41, %v6910_v43  ;;  %v4228_v47 = vmax.f32 %v4226_v21, %v4227_v15  ;;  %v4234_v3 = vrot.slane %v4233_v10, 1 }
 0x6ed   : > { %v4193_v20 = vmax.f32 %v4191_v30, %v4192_v32  ;;  %v4287_v16 = vmax.f32 %v4285_v17, %v4286_v55  ;;  %v4213_v48 = vrot.slane %v4212_v2, 1  ;;  %v4293_v28 = vrot.slane %v4292_v11, 4 }
 0x6ee   : > { %v4151_v58 = vcombine.high %v4143_v33, %v4143_v33  ;;  %v4152_v42 = vcombine.high %v4150_v12, %v4150_v12  ;;  %v4207_v1 = vmax.f32 %v4205_v0, %v4206_v19  ;;  %v4243_v39 = vsel %vm4186_vm8, %v4143_v33, -inf }
 0x6ef   : > { %v4319_v34 = vsel %vm2452_vm14, %v4200_v29, %v4193_v20  ;;  %v4257_v54 = vsel %vm4186_vm8, %v4150_v12, -inf  ;;  %v4274_v27 = vrot.slane %v4273_v51, 2  ;;  %v4280_v13 = vmax.f32 %v4278_v63, %v4279_v6 }
 0x6f0   : > { %v4244_v38 = vrot.slane %v4243_v39, 4  ;;  %v4250_v52 = vsel %vm4186_vm8, %v4151_v58, -inf  ;;  %v4288_v62 = vrot.slane %v4287_v16, 2  ;;  %v4258_v46 = vrot.slane %v4257_v54, 4 }
 0x6f1   : > { %v4251_v14 = vrot.slane %v4250_v52, 4  ;;  %v4239_v36 = vrot.slane %v4238_v37, 2  ;;  %v4214_v25 = vmax.f32 %v4212_v2, %v4213_v48  ;;  %v4294_v24 = vmax.f32 %v4292_v11, %v4293_v28 }
 0x6f2   : > { %v4245_v56 = vmax.f32 %v4243_v39, %v4244_v38  ;;  %v4264_v4 = vsel %vm4186_vm8, %v4152_v42, -inf  ;;  %v4259_v53 = vmax.f32 %v4257_v54, %v4258_v46  ;;  %v4235_v26 = vmax.f32 %v4233_v10, %v4234_v3  ;;  %v5489_v39 = vld [vmem:[%s8238_s9 + $0x30] sm:$0xff]  ;;  %v5490_v54 = vld [vmem:[%s8238_s9 + $0x38] sm:$0xff] }
 0x6f3   : > { %v4252_v35 = vmax.f32 %v4250_v52, %v4251_v14  ;;  %v4320_v21 = vsel %vm2454_vm15, %v4207_v1, %v4319_v34  ;;  %v4275_v8 = vmax.f32 %v4273_v51, %v4274_v27  ;;  %v4281_v30 = vrot.slane %v4280_v13, 2 }
 0x6f4   : > { %v4246_v50 = vrot.slane %v4245_v56, 2  ;;  %v4265_v60 = vrot.slane %v4264_v4, 4  ;;  %v4289_v18 = vmax.f32 %v4287_v16, %v4288_v62  ;;  %v4260_v31 = vrot.slane %v4259_v53, 2 }
 0x6f5   : > { %v4253_v5 = vrot.slane %v4252_v35, 2  ;;  %v4240_v44 = vmax.f32 %v4238_v37, %v4239_v36  ;;  %v4295_v9 = vrot.slane %v4294_v24, 2  ;;  %v4321_v61 = vsel %vm2456_vm1, %v4214_v25, %v4320_v21  ;;  %v4567_v36 = vld [vmem:[%s8239_s10] sm:$0xff]  ;;  %v4568_v25 = vld [vmem:[%s8239_s10 + $0x8] sm:$0xff] }
 0x6f6   : > { %v4247_v0 = vmax.f32 %v4245_v56, %v4246_v50  ;;  %v4266_v45 = vmax.f32 %v4264_v4, %v4265_v60  ;;  %v4261_v17 = vmax.f32 %v4259_v53, %v4260_v31  ;;  %v4322_v10 = vsel %vm2458_vm3, %v4221_v40, %v4321_v61  ;;  %v4572_v53 = vld [vmem:[%s8239_s10 + $0x28] sm:$0xff] }
 0x6f7   : > { %v4254_v57 = vmax.f32 %v4252_v35, %v4253_v5  ;;  %v4241_v15 = vrot.slane %v4240_v44, 1  ;;  %v4282_v32 = vmax.f32 %v4280_v13, %v4281_v30  ;;  %v4323_v63 = vsel %vm2460_vm4, %v4228_v47, %v4322_v10  ;;  %v4571_v35 = vld [vmem:[%s8239_s10 + $0x20] sm:$0xff] }
 0x6f8   : > { %v4248_v7 = vrot.slane %v4247_v0, 1  ;;  %v4267_v2 = vrot.slane %v4266_v45, 2  ;;  %v4262_v41 = vrot.slane %v4261_v17, 1  ;;  %v4324_v37 = vsel %vm8343_vm9, %v4235_v26, %v4323_v63 }
 0x6f9   : > { %v4255_v55 = vrot.slane %v4254_v57, 1  ;;  %v4242_v29 = vmax.f32 %v4240_v44, %v4241_v15  ;;  %v4276_v19 = vrot.slane %v4275_v8, 1  ;;  %v4296_v11 = vmax.f32 %v4294_v24, %v4295_v9  ;;  %v4569_v24 = vld [vmem:[%s8239_s10 + $0x10] sm:$0xff] }
 0x6fa   : > { %v4268_v51 = vmax.f32 %v4266_v45, %v4267_v2  ;;  %v4249_v6 = vmax.f32 %v4247_v0, %v4248_v7  ;;  %v4263_v12 = vmax.f32 %v4261_v17, %v4262_v41  ;;  %v4283_v20 = vrot.slane %v4282_v32, 1 }
 0x6fb   : > { %v4256_v33 = vmax.f32 %v4254_v57, %v4255_v55  ;;  %v4325_v3 = vsel %vm8344_vm5, %v4242_v29, %v4324_v37  ;;  %v4290_v16 = vrot.slane %v4289_v18, 1  ;;  %v4297_v48 = vrot.slane %v4296_v11, 1 }
 0x6fc   : > { %v4269_v40 = vrot.slane %v4268_v51, 1  ;;  %5938 = vmatprep.mubr.msk.f32.mxu1 %vm1232_vm7, %v4325_v3  ;;  %v4277_v42 = vmax.f32 %v4275_v8, %v4276_v19  ;;  %v4284_v1 = vmax.f32 %v4282_v32, %v4283_v20  ;;  %v6213_v14 = vpack.c.bf16 %v5490_v54, %v5489_v39 }
 0x6fd   : > { %v4326_v47 = vsel %vm2452_vm14, %v4256_v33, %v4249_v6  ;;  %v4291_v27 = vmax.f32 %v4289_v18, %v4290_v16  ;;  %v4298_v38 = vmax.f32 %v4296_v11, %v4297_v48  ;;  %v6217_v56 = vpack.c.bf16 %v4568_v25, %v4567_v36  ;;  %v4765_v33 = vld [vmem:[%s8241_s12] sm:$0xff] }
 0x6fe   : > { %v4270_v28 = vmax.f32 %v4268_v51, %v4269_v40  ;;  %v4327_v58 = vsel %vm2454_vm15, %v4263_v12, %v4326_v47  ;;  %v6225_v26 = vpack.c.bf16 %v4572_v53, %v4571_v35  ;;  %v4505_v30 = vand.u32 3, %v7606_v22  ;;  %v4766_v12 = vld [vmem:[%s8241_s12 + $0x8] sm:$0xff]  ;;  %v5498_v40 = vld [vmem:[%s8241_s12 + $0x18] sm:$0xff]  ;;  %v5493_v48 = vld [vmem:[%s8240_s11] ss:$0 sm:$0xff] }
 0x6ff   : > { %v4498_v50 = vand.u32 3, %v8327_v59  ;;  %vm4562_vm9 = vcmask 130048   ;;  %vm4580_vm5 = vcmask 392192   ;;  %v6230_v20 = vpack.c.bf16 %v4766_v12, %v4765_v33 }
 0x700   : > { %v4328_v34 = vsel %vm2456_vm1, %v4270_v28, %v4327_v58  ;;  %vm4541_vm10 = vcmp.eq.s32.totalorder %v4505_v30, 3  ;;  %vm8070_vm12 = vcmp.eq.s32.totalorder %v4505_v30, 0  ;;  %v6358_v16 = vmov 0.0  }
 0x701   : > { %v4329_v13 = vsel %vm2458_vm3, %v4277_v42, %v4328_v34  ;;  %vm4540_vm11 = vcmp.eq.s32.totalorder %v4498_v50, 3  ;;  %vm8074_vm8 = vcmp.eq.s32.totalorder %v4498_v50, 0  ;;  %6231 = vmatpush3.bf16.msra.mxu0 %v6230_v20 }
 0x702   : > { %v4330_v52 = vsel %vm2460_vm4, %v4284_v1, %v4329_v13  ;;  %6235 = vmatprep.subr.bf16.mxu0 %v6354_v49 }
 0x703   : > { %v4331_v62 = vsel %vm8345_vm6, %v4291_v27, %v4330_v52  ;;  %vm4708_vm6 = vcmask 123904  }
 0x704   : > { %v4332_v46 = vsel %vm8346_vm13, %v4298_v38, %v4331_v62  ;;  %vm8351_vm13 = vcmask 1046534  }
 0x705   : > { %5939 = vmatmul.mubr.msk.f32.vlgmr.msra.gmra.mrb[40].mxu1 %vm1232_vm7, %v4332_v46 }
 0x706   : > { %6212 = vmatpush3.bf16.msra.mxu1 %v7992_v23  ;;  %5949 = vmatprep.mubr.msk.f32.mxu1 %vm1232_vm7, %v4325_v3  ;;  %v4570_v23 = vld [vmem:[%s8239_s10 + $0x18] sm:$0xff]  ;;  %v5497_v3 = vld [vmem:[%s8241_s12 + $0x10] sm:$0xff] }
 0x707   : > { %6214 = vmatprep.subr.bf16.mxu1 %v6213_v14  ;;  %v6221_v4 = vpack.c.bf16 %v4570_v23, %v4569_v24  ;;  %v6233_v47 = vpack.c.bf16 %v5498_v40, %v5497_v3 }
 0x70a   : > { %6216 = vmatpush3.bf16.msra.mxu1 %v6213_v14 }
 0x70b   : > { %6218 = vmatprep.subr.bf16.mxu1 %v6217_v56 }
 0x70d   : > { %5950 = vmatmul.mubr.msk.f32.vlgmr.msra.gmra.mrb[42].mxu1 %vm1232_vm7, %v4332_v46 }
 0x70e   : > { %6220 = vmatpush3.bf16.msra.mxu1 %v6217_v56 }
 0x70f   : > { %6222 = vmatprep.subr.bf16.mxu1 %v6221_v4 }
 0x712   : > { %6224 = vmatpush3.bf16.msra.mxu1 %v6221_v4 }
 0x713   : > { %6226 = vmatprep.subr.bf16.mxu1 %v6225_v26 }
 0x716   : > { %6228 = vmatpush3.bf16.msra.mxu1 %v6225_v26 }
 0x717   : > { %6232 = vmatprep.subr.bf16.mxu1 %v6354_v49 }
 0x7d8   : > { %v5940_v21 = vpop.f32.mrb[40].mxu1 }
 0x7d9   : > { %v4403_v8 = vpop.f32.mrb[41].mxu1 }
 0x7e0   : > { %v5951_v60 = vpop.f32.mrb[42].mxu1 }
 0x7e1   : > { %v4493_v18 = vmax.f32 %v5940_v21, %v5951_v60  ;;  %v4483_v5 = vpop.f32.mrb[43].mxu1 }
 0x7e2   : > { %v4492_v31 = vmax.f32 %v4403_v8, %v4483_v5 }
 0x7e3   : > { %v4521_v44 = vrot.slane %v4493_v18, 7  ;;  %4550 = vrot.lane.b32.xlu1 %v4493_v18, %s6356_s29  ;;  %v4527_v9 = vrot.slane %v4493_v18, 1 }
 0x7e4   : > { %v4520_v0 = vrot.slane %v4492_v31, 7  ;;  %v4526_v45 = vrot.slane %v4492_v31, 1  ;;  %4548 = vrot.lane.b32.xlu0 %v4492_v31, %s6356_s29 }
 0x7e5   : > { %v4531_v57 = vsel %vm866_vm0, %v4527_v9, 0.0 }
 0x7e6   : > { %v4547_v17 = vsel %vm4541_vm10, 0.0, %v4531_v57  ;;  %v4528_v15 = vsel %vm866_vm0, %v4526_v45, %v4527_v9  ;;  %v4522_v10 = vsel %vm817_vm2, %v4520_v0, %v4521_v44  ;;  %v4525_v32 = vsel %vm817_vm2, 0.0, %v4520_v0 }
 0x7e7   : > { %4558 = vrot.lane.b32.xlu1 %v4547_v17, %s6355_s30  ;;  %v4546_v7 = vsel %vm4540_vm11, 0.0, %v4528_v15  ;;  %v4539_v2 = vsel %vm8070_vm12, 0.0, %v4522_v10  ;;  %v4538_v63 = vsel %vm8074_vm8, 0.0, %v4525_v32  ;;  %vm8352_vm10 = vcmask 1047559  }
 0x7e8   : > { %4556 = vrot.lane.b32.xlu0 %v4546_v7, %s6355_s30  ;;  %vm4962_vm11 = vcmask 64512   ;;  %vm4975_vm12 = vcmask 195584   ;;  %s8353_s30 = sld [smem:[#allocation29_spill]] }
 0x7ee   : > { %s8354_s20 = smov %s8353_s30  ;;  %s8187_s3 = scalar_lea.hbm %s8353_s30, %s5509_s1 }
 0x855   : > { %v4551_v55 = vpop.permute.xlu1 %4550 }
 0x856   : > { %v4549_v41 = vpop.permute.xlu0 %4548  ;;  %v4564_v11 = vsel %vm4562_vm9, %v4539_v2, %v4551_v55 }
 0x857   : > { %v4563_v37 = vsel %vm4562_vm9, %v4538_v63, %v4549_v41 }
 0x859   : > { %v4559_v29 = vpop.permute.xlu1 %4558 }
 0x85a   : > { %v4557_v19 = vpop.permute.xlu0 %4556  ;;  %v4566_v6 = vsel %vm1232_vm7, %v4564_v11, %v4559_v29 }
 0x85b   : > { %v4565_v51 = vsel %vm1232_vm7, %v4563_v37, %v4557_v19  ;;  %vm6357_vm7 = vmmov 0  }
 0x85c   : > { %5964 = vmatprep.mubr.msk.f32.mxu1 %vm4580_vm5, %v4565_v51  ;;  %5971 = vmatprep.mubr.msk.f32.mxu0 %vm6357_vm7, %v6358_v16 }
 0x85d   : > { %5965 = vmatmul.mubr.msk.f32.vlgmr.msra.gmra.mrb[44].mxu1 %vm4580_vm5, %v4566_v6 }
 0x85e   : > { %5978 = vmatprep.mubr.msk.f32.mxu1 %vm6357_vm7, %v6358_v16  ;;  %6234 = vmatpush3.bf16.msra.mxu1 %v6233_v47 }
 0x85f   : > { %5990 = vmatprep.subr.mxu1 %v6358_v16 }
 0x930   : > { %v5966_v28 = vpop.f32.mrb[44].mxu1 }
 0x931   : > { %v4659_v58 = vadd.f32 %v5966_v28, %v5493_v48  ;;  %v4653_v42 = vpop.f32.mrb[45].mxu1 }
 0x932   : > { %v4654_v1 = vadd.f32 %v5493_v48, %v4653_v42 }
 0x933   : > { %v4663_v34 = vmax.f32 %v4659_v58, 0.0 }
 0x934   : > { %v4662_v39 = vmax.f32 %v4654_v1, 0.0 }
 0x935   : > { %v4683_v54 = vcombine.high %v4663_v34, %v4663_v34  ;;  %v4690_v27 = vrot.slane %v4663_v34, %v6910_v43 }
 0x936   : > { %v4666_v13 = vcombine.high %v4662_v39, %v4662_v39  ;;  %v4673_v38 = vrot.slane %v4662_v39, %v6910_v43 }
 0x937   : > { %v4697_v49 = vrot.slane %v4683_v54, %v6910_v43  ;;  %v4698_v52 = vcombine.high %v4690_v27, %v4690_v27  ;;  %v4737_v62 = vsel %vm4708_vm6, %v4690_v27, -inf }
 0x938   : > { %v4738_v14 = vrot.slane %v4737_v62, 4  ;;  %v4680_v46 = vrot.slane %v4666_v13, %v6910_v43  ;;  %v4681_v36 = vcombine.high %v4673_v38, %v4673_v38  ;;  %v4709_v25 = vsel %vm4708_vm6, %v4673_v38, -inf }
 0x939   : > { %v4699_v24 = vcombine.high %v4697_v49, %v4697_v49  ;;  %v4744_v56 = vsel %vm4708_vm6, %v4698_v52, -inf  ;;  %v4751_v23 = vsel %vm4708_vm6, %v4697_v49, -inf  ;;  %v4710_v4 = vrot.slane %v4709_v25, 4 }
 0x93a   : > { %v4739_v35 = vmax.f32 %v4737_v62, %v4738_v14  ;;  %v4745_v53 = vrot.slane %v4744_v56, 4  ;;  %v4752_v26 = vrot.slane %v4751_v23, 4  ;;  %v4682_v21 = vcombine.high %v4680_v46, %v4680_v46 }
 0x93b   : > { %v4758_v8 = vsel %vm4708_vm6, %v4699_v24, -inf  ;;  %v4711_v30 = vmax.f32 %v4709_v25, %v4710_v4  ;;  %v4716_v50 = vsel %vm4708_vm6, %v4681_v36, -inf  ;;  %v4723_v60 = vsel %vm4708_vm6, %v4680_v46, -inf }
 0x93c   : > { %v4746_v18 = vmax.f32 %v4744_v56, %v4745_v53  ;;  %v4753_v5 = vmax.f32 %v4751_v23, %v4752_v26  ;;  %v4759_v31 = vrot.slane %v4758_v8, 4  ;;  %v4717_v9 = vrot.slane %v4716_v50, 4  ;;  %v4965_v56 = vld [vmem:[%s8242_s13] sm:$0xff]  ;;  %v4966_v23 = vld [vmem:[%s8242_s13 + $0x8] sm:$0xff] }
 0x93d   : > { %v4712_v44 = vrot.slane %v4711_v30, 2  ;;  %v4724_v0 = vrot.slane %v4723_v60, 4  ;;  %v4730_v45 = vsel %vm4708_vm6, %v4682_v21, -inf  ;;  %v4740_v61 = vrot.slane %v4739_v35, 2 }
 0x93e   : > { %v4747_v22 = vrot.slane %v4746_v18, 2  ;;  %v4760_v57 = vmax.f32 %v4758_v8, %v4759_v31  ;;  %v4718_v15 = vmax.f32 %v4716_v50, %v4717_v9  ;;  %v4731_v32 = vrot.slane %v4730_v45, 4 }
 0x93f   : > { %v4713_v17 = vmax.f32 %v4711_v30, %v4712_v44  ;;  %v4725_v10 = vmax.f32 %v4723_v60, %v4724_v0  ;;  %v4754_v7 = vrot.slane %v4753_v5, 2  ;;  %v4741_v29 = vmax.f32 %v4739_v35, %v4740_v61  ;;  %v4967_v35 = vld [vmem:[%s8242_s13 + $0x10] sm:$0xff] }
 0x940   : > { %v4761_v2 = vrot.slane %v4760_v57, 2  ;;  %v4719_v63 = vrot.slane %v4718_v15, 2  ;;  %v4732_v41 = vmax.f32 %v4730_v45, %v4731_v32  ;;  %v4748_v37 = vmax.f32 %v4746_v18, %v4747_v22  ;;  %v5101_v22 = vld [vmem:[%s8244_s15] sm:$0xff] }
 0x941   : > { %v4726_v55 = vrot.slane %v4725_v10, 2  ;;  %v4714_v19 = vrot.slane %v4713_v17, 1  ;;  %v4755_v33 = vmax.f32 %v4753_v5, %v4754_v7  ;;  %v4742_v47 = vrot.slane %v4741_v29, 1 }
 0x942   : > { %v4720_v11 = vmax.f32 %v4718_v15, %v4719_v63  ;;  %v4733_v6 = vrot.slane %v4732_v41, 2  ;;  %v4762_v12 = vmax.f32 %v4760_v57, %v4761_v2  ;;  %v4749_v48 = vrot.slane %v4748_v37, 1  ;;  %v5500_v57 = vld [vmem:[%s8243_s14] ss:$0 sm:$0xff] }
 0x943   : > { %v4727_v51 = vmax.f32 %v4725_v10, %v4726_v55  ;;  %v4715_v28 = vmax.f32 %v4713_v17, %v4714_v19  ;;  %v4756_v34 = vrot.slane %v4755_v33, 1  ;;  %v4743_v13 = vmax.f32 %v4741_v29, %v4742_v47 }
 0x944   : > { %v4721_v3 = vrot.slane %v4720_v11, 1  ;;  %v4734_v40 = vmax.f32 %v4732_v41, %v4733_v6  ;;  %v4763_v39 = vrot.slane %v4762_v12, 1  ;;  %v4750_v49 = vmax.f32 %v4748_v37, %v4749_v48 }
 0x945   : > { %v4728_v20 = vrot.slane %v4727_v51, 1  ;;  %v4757_v62 = vmax.f32 %v4755_v33, %v4756_v34  ;;  %v6236_v4 = vpack.c.bf16 %v4966_v23, %v4965_v56  ;;  %v4932_v53 = vand.u32 1, %v8327_v59  ;;  %v5254_v56 = vld [vmem:[%s8245_s16] sm:$0xf] }
 0x946   : > { %v4722_v58 = vmax.f32 %v4720_v11, %v4721_v3  ;;  %v4735_v1 = vrot.slane %v4734_v40, 1  ;;  %v4764_v46 = vmax.f32 %v4762_v12, %v4763_v39 }
 0x947   : > { %v4729_v42 = vmax.f32 %v4727_v51, %v4728_v20 }
 0x948   : > { %v4736_v54 = vmax.f32 %v4734_v40, %v4735_v1  ;;  %v4775_v27 = vsel %vm2452_vm14, %v4722_v58, %v4715_v28 }
 0x949   : > { %v4776_v38 = vsel %vm2454_vm15, %v4729_v42, %v4775_v27 }
 0x94a   : > { %v4777_v52 = vsel %vm2456_vm1, %v4736_v54, %v4776_v38 }
 0x94b   : > { %v4778_v14 = vsel %vm2458_vm3, %v4743_v13, %v4777_v52  ;;  %vm4951_vm3 = vcmp.eq.s32.totalorder %v4932_v53, 1 }
 0x94c   : > { %v4779_v36 = vsel %vm2460_vm4, %v4750_v49, %v4778_v14  ;;  %vm4947_vm4 = vcmp.eq.s32.totalorder %v4932_v53, 0 }
 0x94d   : > { %v4780_v25 = vsel %vm8351_vm13, %v4757_v62, %v4779_v36 }
 0x94e   : > { %v4781_v24 = vsel %vm8352_vm10, %v4764_v46, %v4780_v25  ;;  %v5503_v25 = vld [vmem:[%s8244_s15 + $0x8] sm:$0xff] }
 0x94f   : > { %5972 = vmatmul.mubr.msk.f32.vlgmr.msra.gmra.mrb[52].mxu0 %vm4562_vm9, %v4781_v24  ;;  %5979 = vmatmul.mubr.msk.f32.vlgmr.msra.gmra.mrb[46].mxu1 %vm4562_vm9, %v4781_v24 }
 0x950   : > { %5987 = vmatprep.mubr.msk.f32.mxu0 %vm6357_vm7, %v6358_v16  ;;  %5992 = vmatprep.mubr.msk.f32.mxu1 %vm6357_vm7, %v6358_v16 }
 0x951   : > { %6237 = vmatpush3.bf16.msra.mxu0 %v6236_v4  ;;  %5991 = vmatpush3.msra.mxu1 %v5101_v22 }
 0x952   : > { %5985 = vmatprep.subr.mxu0 %v6358_v16  ;;  %5995 = vmatprep.subr.mxu1 %v6358_v16 }
 0x955   : > { %5986 = vmatpush3.msra.mxu0 %v4967_v35 }
 0x956   : > { %6000 = vmatprep.subr.mxu0 %v6358_v16 }
 0xa22   : > { %v4850_v26 = vpop.f32.mrb[52].mxu0  ;;  %v4923_v21 = vpop.f32.mrb[46].mxu1 }
 0xa23   : > { %v4927_v8 = vmax.f32 %v4850_v26, %v4923_v21  ;;  %v5973_v30 = vpop.f32.mrb[53].mxu0  ;;  %v5980_v50 = vpop.f32.mrb[47].mxu1 }
 0xa25   : > { %v4941_v60 = vrot.slane %v4927_v8, 7  ;;  %4955 = vrot.lane.b32.xlu0 %v4927_v8, %s6359_s22  ;;  %v4944_v18 = vrot.slane %v4927_v8, 1  ;;  %s5343_s22 = scalar_lea.sflag [#allocation3], %s567_s21 }
 0xa27   : > { %v4946_v5 = vsel %vm866_vm0, %v4944_v18, 0.0  ;;  %v4943_v31 = vsel %vm817_vm2, 0.0, %v4941_v60  ;;  %vm5072_vm0 = vcmask 58368   ;;  %vm5266_vm2 = vcmask 1043456  }
 0xa28   : > { %v4954_v44 = vsel %vm4951_vm3, 0.0, %v4946_v5  ;;  %v4950_v9 = vsel %vm4947_vm4, 0.0, %v4943_v31 }
 0xa29   : > { %4959 = vrot.lane.b32.xlu1 %v4954_v44, %s6356_s29  ;;  %s569_s29 = scalar_lea.vmem [#allocation2], %s5419_s24  ;;  %s6291_s24 = sshll.u32 %s6360_s0, 4  ;;  %s6292_s24 = int_to_ptr.vmem [resolvable:$false] %s6291_s24 }
 0xa2a   : > { %s5356_s27 = sshll.u32 %s569_s29, 4  ;;  %s6293_s4 = scalar_lea.vmem %s6292_s24, 128  ;;  %s8189_s27 = int_to_ptr.vmem [resolvable:$true] %s5356_s27 }
 0xa2b   : > { %s6287_s23 = scalar_lea.vmem %s8189_s27, 64  ;;  %p6294_p0 = scmp.lt.s32.totalorder %s8189_s27, %s6292_s24 }
 0xa2c   : > { %p6288_p11 = scmp.ne.s32.totalorder %s8189_s27, %s6287_s23  ;;  %p6295_p1 = scmp.lt.s32.totalorder %s6293_s4, %s6287_s23 }
 0xa2e   : > { %p6289_p12 = pnand %p6288_p11, %p6494_p5  ;;  %p6296_p2 = por %p6295_p1, %p6294_p0 }
 0xa30   : > { %p6290_p13 = pneg %p6289_p12 }
 0xa32   : > { %p6297_p3 = pnand %p6296_p2, %p6290_p13 }
 0xa97   : > { %v4956_v59 = vpop.permute.xlu0 %4955 }
 0xa98   : > { %v4963_v0 = vsel %vm4962_vm11, %v4950_v9, %v4956_v59 }
 0xa9b   : > { %v4960_v45 = vpop.permute.xlu1 %4959 }
 0xa9c   : > { %v4964_v61 = vsel %vm4562_vm9, %v4963_v0, %v4960_v45 }
 0xa9d   : > { %5988 = vmatmul.mubr.msk.f32.vlgmr.msra.gmra.mrb[54].mxu0 %vm4975_vm12, %v4964_v61 }
 0xa9e   : > { %6002 = vmatprep.mubr.msk.f32.mxu0 %vm6357_vm7, %v6358_v16  ;;  %6001 = vmatpush3.msk.msra.mxu0 %vm5266_vm2, %v5254_v56 }
 0xb70   : > { %v5045_v17 = vpop.f32.mrb[54].mxu0 }
 0xb71   : > { %v5046_v15 = vadd.f32 %v5500_v57, %v5045_v17  ;;  %v5989_v10 = vpop.f32.mrb[55].mxu0 }
 0xb73   : > { %v5049_v32 = vmax.f32 %v5046_v15, 0.0 }
 0xb75   : > { %v5051_v7 = vcombine.high %v5049_v32, %v5049_v32  ;;  %v5058_v2 = vrot.slane %v5049_v32, %v6910_v43 }
 0xb77   : > { %v5065_v63 = vrot.slane %v5051_v7, %v6910_v43  ;;  %v5066_v55 = vcombine.high %v5058_v2, %v5058_v2  ;;  %v5073_v41 = vsel %vm5072_vm0, %v5058_v2, -inf }
 0xb78   : > { %v5074_v29 = vrot.slane %v5073_v41, 4 }
 0xb79   : > { %v5067_v37 = vcombine.high %v5065_v63, %v5065_v63  ;;  %v5080_v19 = vsel %vm5072_vm0, %v5066_v55, -inf  ;;  %v5087_v11 = vsel %vm5072_vm0, %v5065_v63, -inf }
 0xb7a   : > { %v5075_v51 = vmax.f32 %v5073_v41, %v5074_v29  ;;  %v5081_v6 = vrot.slane %v5080_v19, 4  ;;  %v5088_v33 = vrot.slane %v5087_v11, 4 }
 0xb7b   : > { %v5094_v12 = vsel %vm5072_vm0, %v5067_v37, -inf }
 0xb7c   : > { %v5076_v3 = vrot.slane %v5075_v51, 2  ;;  %v5082_v20 = vmax.f32 %v5080_v19, %v5081_v6  ;;  %v5089_v40 = vmax.f32 %v5087_v11, %v5088_v33  ;;  %v5095_v47 = vrot.slane %v5094_v12, 4 }
 0xb7e   : > { %v5077_v48 = vmax.f32 %v5075_v51, %v5076_v3  ;;  %v5083_v28 = vrot.slane %v5082_v20, 2  ;;  %v5090_v58 = vrot.slane %v5089_v40, 2  ;;  %v5096_v42 = vmax.f32 %v5094_v12, %v5095_v47 }
 0xb80   : > { %v5078_v1 = vrot.slane %v5077_v48, 1  ;;  %v5084_v43 = vmax.f32 %v5082_v20, %v5083_v28  ;;  %v5091_v34 = vmax.f32 %v5089_v40, %v5090_v58  ;;  %v5097_v39 = vrot.slane %v5096_v42, 2 }
 0xb82   : > { %v5085_v54 = vrot.slane %v5084_v43, 1  ;;  %v5092_v27 = vrot.slane %v5091_v34, 1  ;;  %v5098_v13 = vmax.f32 %v5096_v42, %v5097_v39  ;;  %v5079_v38 = vmax.f32 %v5077_v48, %v5078_v1 }
 0xb84   : > { %v5086_v49 = vmax.f32 %v5084_v43, %v5085_v54  ;;  %v5093_v52 = vmax.f32 %v5091_v34, %v5092_v27  ;;  %v5099_v62 = vrot.slane %v5098_v13, 1 }
 0xb86   : > { %v5100_v14 = vmax.f32 %v5098_v13, %v5099_v62  ;;  %v5106_v46 = vsel %vm2452_vm14, %v5086_v49, %v5079_v38  ;;  %vm5262_vm14 = vcmask 31744  }
 0xb87   : > { %v5107_v36 = vsel %vm2454_vm15, %v5093_v52, %v5106_v46  ;;  %vm5340_vm15 = vcmask 76800  }
 0xb88   : > { %v5108_v24 = vsel %vm2456_vm1, %v5100_v14, %v5107_v36 }
 0xb89   : > { %5993 = vmatmul.mubr.msk.f32.vlgmr.msra.gmra.mrb[48].mxu1 %vm4962_vm11, %v5108_v24 }
 0xb8a   : > { %5996 = vmatpush3.msra.mxu1 %v5503_v25  ;;  %5997 = vmatprep.mubr.msk.f32.mxu1 %vm6357_vm7, %v6358_v16  ;;  %v5505_v16 = vld [vmem:[%s8246_s17] ss:$0 sm:$0xff] }
 0xb8d   : > { %5998 = vmatmul.mubr.msk.f32.vlgmr.msra.gmra.mrb[50].mxu1 %vm4962_vm11, %v5108_v24 }
 0xc5c   : > { %v5177_v23 = vpop.f32.mrb[48].mxu1 }
 0xc5d   : > { %v5994_v4 = vpop.f32.mrb[49].mxu1 }
 0xc60   : > { %v5249_v35 = vpop.f32.mrb[50].mxu1 }
 0xc61   : > { %v5253_v53 = vmax.f32 %v5177_v23, %v5249_v35  ;;  %v5999_v26 = vpop.f32.mrb[51].mxu1 }
 0xc63   : > { %6003 = vmatmul.mubr.msk.f32.vlgmr.msra.gmra.mrb[56].mxu0 %vm5262_vm14, %v5253_v53 }
 0xd36   : > { %v5336_v21 = vpop.f32.mrb[56].mxu0 }
 0xd37   : > { %v5337_v8 = vadd.f32 %v5505_v16, %v5336_v21  ;;  %v6004_v30 = vpop.f32.mrb[57].mxu0 }
 0xd39   : > { %5341 = vst.msk [vmem:[%s569_s29] sm:$0xf] %vm5340_vm15, %v5337_v8 }
 0xd3a   : > { %6300 = shalt.err (!%p6297_p3)
}
 0xd3b   : > { %s6301_s21 = scalar_lea.hbm %s8187_s3, 64  ;;  %s6305_s25 = scalar_lea.hbm %s8354_s20, 128 }
 0xd3c   : > { %p6302_p4 = scmp.ne.s32.totalorder %s8187_s3, %s6301_s21  ;;  %p6306_p9 = scmp.lt.u32.totalorder %s8187_s3, %s8354_s20 }
 0xd3d   : > { %p6307_p10 = scmp.lt.u32.totalorder %s6305_s25, %s6301_s21  ;;  %p6309_p12 = scmp.lt.u32.totalorder %s6301_s21, %s8187_s3 }
 0xd3e   : > { %p6303_p7 = pnand %p6302_p4, %p6494_p5 }
 0xd3f   : > { %p6308_p11 = por %p6307_p10, %p6306_p9 }
 0xd40   : > { %p6304_p8 = pneg %p6303_p7 }
 0xd41   : > { %p6310_p13 = por %p6309_p12, %p6308_p11 }
 0xd43   : > { %p6311_p0 = pnand %p6310_p13, %p6304_p8 }
 0xd45   : > { %6314 = shalt.err (!%p6311_p0)
}
 0xd46   : > { %6238 = dma.vmem_to_hbm [thread:$0]  (%p6494_p5), %s8189_s27, 64, %s8187_s3, %s5343_s22  }
 0xd47 PF: > { %s8355_s4 = sld [smem:[#allocation7_spill]]  ;;  %s8356_s23 = sld [smem:[#allocation5_spill]] }
 0xd4d   : > { %p6244_p1 = scmp.ge.s32.totalorder %s8355_s4, 2  ;;  %s5368_s24 = sand.u32 1, %s8356_s23  }
 0xd4e   : > { %s5369_s1 = scalar_lea.sflag [#allocation3], %s5368_s24 }
 0xd4f   : > { %p6241_p2 = pnand %p6244_p1, %p6498_p6 }
 0xd51   : > { %6332 = dma.done.wait (!%p6241_p2), %s5369_s1, 64  }
 0xd52   : > { %6334 = vsyncadd (!%p6241_p2), %s5369_s1, 4294967232  ;;  %s8358_s30 = sld [smem:[#allocation8_spill]]  ;;  %s8359_s21 = sld [smem:[#allocation6_spill]] }
 0xd53   : > { %s8360_s29 = sld [smem:[#allocation9_spill]]  ;;  %s8361_s27 = smov %s6341_s28 }
 0xd58   : > { %p28_p3 = scmp.ge.s32.totalorder %s8358_s30, 4   ;;  %s8362_s28 = smov %s8359_s21 }
 0xd5a   :  { %30 = sbr.rel (!%p28_p3) target bundleno = 10 (0xa), region = 132 }
 0xd61   :  { %5374 = vsyncpa [#allocation3], 1 }
 0xd62   :  { %5376 = vsyncpa [#allocation3 + $0x1], 1 }

</bundles_post_ra>
